<compile_context>
chip_gen: v7x
topology: tpu7x:2x2x1
jax: 0.10.0
libtpu: 0.0.40
codegen_flags: <defaults>
</compile_context>

<pallas_src>
import functools

import numpy as np
import jax
import jax.numpy as jnp
from jax.experimental import pallas as pl
from jax.experimental.pallas import tpu as pltpu

# ---- static KAN hyper-parameters (match the PyTorch defaults) ----------------
NUM_KNOTS = 5
SPLINE_ORDER = 3
GRID_RANGE = (-1.0, 1.0)
N_COEFF = NUM_KNOTS + SPLINE_ORDER          # 8 spline basis functions per input feature
N_FEAT = N_COEFF + 1                        # + SiLU base feature => 9 blocks per input
_H = (GRID_RANGE[1] - GRID_RANGE[0]) / NUM_KNOTS
# extended uniform knot vector: indices -spline_order .. num_knots+spline_order (12 knots)
GRID = tuple(float(i * _H + GRID_RANGE[0])
             for i in range(-SPLINE_ORDER, NUM_KNOTS + SPLINE_ORDER + 1))


def _round_up(n, m):
    return ((n + m - 1) // m) * m


def _r8(n):
    return _round_up(n, 8)


# ---- in-kernel feature construction (batch-in-lanes layout) --------------------
def _kan_features_T(x):
    """x: (in_f, TILE_B) f32 -> (in_f * N_FEAT, TILE_B) f32 feature slab.

    Row blocks: [SiLU(x) ; B_0(x) ; ... ; B_7(x)], each in_f rows.  The batch lives on
    the 128-lane axis, so all VPU/EUP work is full-width and the concat stitches along
    the sublane axis at 8-row (f32 tile) boundaries.
    """
    g = GRID
    # SiLU = x * sigmoid(x) = x / (1 + exp(-x)); exp goes to the EUP slot.
    silu = x / (1.0 + jnp.exp(-x))

    # Cox-de Boor recursion.  Precompute t_j = x - g[j] once per knot; knot values and
    # knot-difference reciprocals are compile-time Python floats (right-term sign folded
    # into the constant), so each level is pure VPU mul/add.
    t = [x - g[j] for j in range(len(g))]                       # 12 subs total
    bases = [((x >= g[j]) & (x < g[j + 1])).astype(jnp.float32)
             for j in range(len(g) - 1)]                        # 11 degree-0 bases
    for k in range(1, SPLINE_ORDER + 1):
        new_bases = []
        for j in range(len(g) - 1 - k):
            inv_l = 1.0 / (g[j + k] - g[j])                     # compile-time constants
            neg_inv_r = -1.0 / (g[j + k + 1] - g[j + 1])
            new_bases.append((t[j] * inv_l) * bases[j]
                             + (t[j + k + 1] * neg_inv_r) * bases[j + 1])
        bases = new_bases                                       # after k=3: N_COEFF bases
    return jnp.concatenate([silu] + bases, axis=0)              # (in_f * 9, TILE_B)


# ---- fused whole-network kernel ------------------------------------------------
def _make_fused_kernel(n_layers):
    def kernel(x_ref, *refs):
        # refs = (w_packed_0, ..., w_packed_{L-1}, o_ref)
        w_refs = refs[:n_layers]
        o_ref = refs[n_layers]
        x = x_ref[...]                                          # (in_f, TILE_B)
        for li in range(n_layers):                              # static unroll over layers
            feats = _kan_features_T(x)                          # (9*in_l, TILE_B)
            x = jnp.dot(w_refs[li][...], feats,                 # one MXU matmul / layer,
                        preferred_element_type=jnp.float32)     # N = TILE_B (lane-dense)
        o_ref[...] = x.astype(o_ref.dtype)                      # unmasked lane-dense store
    return kernel


# ---- one-time weight packing (out of the hot path) -----------------------------
def pack_params(params):
    """params: list of (w_base (out,in), w_spline (out,in,coeff)) ->
       tuple of packed (out, in * N_FEAT) f32 matrices whose column blocks
       [base(in) | coeff0(in) | ... | coeff7(in)] match the _kan_features_T row layout."""
    packed = []
    for (w_base, w_spline) in params:
        cols = [w_base.astype(jnp.float32)]
        cols += [w_spline[:, :, c].astype(jnp.float32) for c in range(N_COEFF)]
        packed.append(jnp.concatenate(cols, axis=1))            # (out, 9*in)
    return tuple(packed)


# ---- generation-aware VMEM budget ----------------------------------------------
def _vmem_budget_bytes():
    """(scratch budget for tiling, vmem_limit_bytes) by TPU generation."""
    try:
        cap = int(pltpu.get_tpu_info().vmem_capacity_bytes)
    except Exception:
        cap = 64 << 20                                          # conservative fallback
    if cap >= (96 << 20):       # v5e / v6e class: 128 MiB physical VMEM
        return (64 << 20), (96 << 20)
    # v7x class: 64 MiB per TensorCore -> stay conservative
    return (28 << 20), min(48 << 20, cap)


# ---- fused forward --------------------------------------------------------------
@functools.partial(jax.jit, static_argnames=("tile_b",))
def kan_forward(x, packed_ws, tile_b=None):
    """x: (B, input_size) ; packed_ws: tuple of (out, in*9) packed weights."""
    B, in_f = x.shape
    n_layers = len(packed_ws)
    out_f = packed_ws[-1].shape[0]

    layer_ins = [w.shape[1] // N_FEAT for w in packed_ws]
    layer_outs = [w.shape[0] for w in packed_ws]
    weight_bytes = sum(int(np.prod(w.shape)) * 4 for w in packed_ws)

    budget, vmem_limit = _vmem_budget_bytes()
    budget = max(budget - 2 * weight_bytes, 4 << 20)            # resident weights (tiny)

    # Per-batch-column f32 footprint with sublane padding of every (rows, TILE_B)
    # intermediate: recursion live set (~24 blocks) + feature slab (9 blocks) +
    # double-buffered in/out tiles.  Lane padding is absorbed by TILE_B itself.
    per_col_rows = max(35 * _r8(fi) + 4 * _r8(fo)
                       for fi, fo in zip(layer_ins, layer_outs))
    max_tb = max(128, (budget // (4 * per_col_rows)) // 128 * 128)
    if tile_b is not None:
        max_tb = min(max_tb, max(128, _round_up(int(tile_b), 128)))

    b_pad_min = _round_up(B, 128)
    # Guarantee >=2 grid steps whenever the batch allows it, so v7x's second TensorCore
    # gets a "parallel" shard (the extra ~0.35us step is negligible on single-TC parts).
    if b_pad_min >= 256:
        max_tb = min(max_tb, max(128, (b_pad_min // 2) // 128 * 128))
    # Balanced tiling: avoid a nearly-empty last tile / ~2x padding waste.
    n_tiles = -(-b_pad_min // max_tb)
    tb = _round_up(-(-b_pad_min // n_tiles), 128)
    b_pad = tb * n_tiles

    xT = jnp.transpose(x.astype(jnp.float32))                   # (in_f, B), once
    if b_pad != B:
        xT = jnp.pad(xT, ((0, 0), (0, b_pad - B)))

    in_specs = [pl.BlockSpec((in_f, tb), lambda i: (0, i))]
    for w in packed_ws:
        in_specs.append(pl.BlockSpec(w.shape, lambda i: (0, 0)))   # weights resident
    out_specs = pl.BlockSpec((out_f, tb), lambda i: (0, i))

    # Advisory cost estimate so XLA schedules surrounding ops sensibly.
    flops = sum(2 * b_pad * (N_FEAT * fi) * fo + 60 * b_pad * fi
                for fi, fo in zip(layer_ins, layer_outs))
    transc = sum(b_pad * fi for fi in layer_ins)                # one exp per element/layer
    bytes_accessed = xT.size * 4 + weight_bytes + b_pad * out_f * 4

    outT = pl.pallas_call(
        _make_fused_kernel(n_layers),
        out_shape=jax.ShapeDtypeStruct((out_f, b_pad), jnp.float32),
        grid_spec=pltpu.PrefetchScalarGridSpec(
            num_scalar_prefetch=0,
            grid=(n_tiles,),
            in_specs=in_specs,
            out_specs=out_specs,
        ),
        compiler_params=pltpu.CompilerParams(
            dimension_semantics=("parallel",),          # shard batch tiles over TCs (v7x)
            vmem_limit_bytes=int(vmem_limit),
        ),
        cost_estimate=pl.CostEstimate(flops=int(flops),
                                      transcendentals=int(transc),
                                      bytes_accessed=int(bytes_accessed)),
    )(xT, *packed_ws)
    return jnp.transpose(outT[:, :B])                           # (B, out_f)


# ---- pure-JAX reference (mirrors the PyTorch efficient-KAN forward) ------------
def _ref_layer(x, w_base, w_spline):
    grid = jnp.asarray(GRID, dtype=jnp.float32)
    base_out = (x * jax.nn.sigmoid(x)) @ w_base.T
    xe = x[:, :, None]
    b = ((xe >= grid[:-1]) & (xe < grid[1:])).astype(x.dtype)
    for k in range(1, SPLINE_ORDER + 1):
        b = ((xe - grid[:-(k + 1)]) / (grid[k:-1] - grid[:-(k + 1)]) * b[:, :, :-1]
             + (grid[k + 1:] - xe) / (grid[k + 1:] - grid[1:-k]) * b[:, :, 1:])
    spline_out = b.reshape(x.shape[0], -1) @ w_spline.reshape(w_spline.shape[0], -1).T
    return base_out + spline_out


def _ref_forward(x, params):
    for (w_base, w_spline) in params:
        x = _ref_layer(x, w_base, w_spline)
    return x


# ---- deterministic parameter construction --------------------------------------
def make_params(key, input_size, hidden_sizes, output_size,
                noise_scale=0.1, base_scale=0.1, spline_scale=1.0):
    sizes = [input_size] + list(hidden_sizes) + [output_size]
    params = []
    for (fin, fout) in zip(sizes[:-1], sizes[1:]):
        key, kb, ks = jax.random.split(key, 3)
        w_base = base_scale * jax.random.normal(kb, (fout, fin), dtype=jnp.float32)
        w_spline = (spline_scale * noise_scale
                    * jax.random.normal(ks, (fout, fin, N_COEFF), dtype=jnp.float32))
        params.append((w_base, w_spline))
    return params


if __name__ == "__main__":
    INPUT_SIZE = 8
    HIDDEN_SIZES = [32, 16]
    OUTPUT_SIZE = 4
    BATCH = 16

    key = jax.random.PRNGKey(0)
    kx, kp = jax.random.split(key)
    x = jax.random.uniform(kx, (BATCH, INPUT_SIZE), minval=-1.0, maxval=1.0,
                           dtype=jnp.float32)
    params = make_params(kp, INPUT_SIZE, HIDDEN_SIZES, OUTPUT_SIZE)
    packed = pack_params(params)   # one-time weight packing (out of the hot path)

    # single-tile path
    out = kan_forward(x, packed)
    out = jax.block_until_ready(out)
    assert out.shape == (BATCH, OUTPUT_SIZE)
    ref = _ref_forward(x, params)
    np.testing.assert_allclose(np.asarray(out), np.asarray(ref), rtol=1e-3, atol=1e-3)

    # multi-tile grid path (exercises batch tiling + padding + "parallel" semantics)
    kx2, _ = jax.random.split(kx)
    x2 = jax.random.uniform(kx2, (300, INPUT_SIZE), minval=-1.0, maxval=1.0,
                            dtype=jnp.float32)
    out2 = jax.block_until_ready(kan_forward(x2, packed, tile_b=128))
    np.testing.assert_allclose(np.asarray(out2), np.asarray(_ref_forward(x2, params)),
                               rtol=1e-3, atol=1e-3)

    # TODO(synk): update_knots=True (adaptive knot refitting) and regularization_loss
    # are training-time utilities, not part of the inference forward pass.
    print("KERNEL_OK")
</pallas_src>

<mosaic_0001>
module attributes {stable_mosaic.version = 11 : i64} {
  func.func @kernel(%arg0: i32, %arg1: memref<8x128xf32, #tpu.memory_space<vmem>>, %arg2: memref<32x72xf32, #tpu.memory_space<vmem>>, %arg3: memref<16x288xf32, #tpu.memory_space<vmem>>, %arg4: memref<4x144xf32, #tpu.memory_space<vmem>>, %arg5: memref<4x128xf32, #tpu.memory_space<vmem>>) attributes {dimension_semantics = [#tpu.dimension_semantics<parallel>], iteration_bounds = array<i64: 1>, scalar_prefetch = 0 : i64, scratch_operands = 0 : i64, tpu.core_type = #tpu.core_type<tc>, window_params = [{transform_indices = @transform_0, window_bounds = array<i64: 8, 128>}, {pipeline_mode = #tpu.pipeline_mode<synchronous>, transform_indices = @transform_1, window_bounds = array<i64: 32, 72>}, {pipeline_mode = #tpu.pipeline_mode<synchronous>, transform_indices = @transform_2, window_bounds = array<i64: 16, 288>}, {pipeline_mode = #tpu.pipeline_mode<synchronous>, transform_indices = @transform_3, window_bounds = array<i64: 4, 144>}, {transform_indices = @transform_4, window_bounds = array<i64: 4, 128>}]} {
    %c0 = arith.constant 0 : index
    %c0_0 = arith.constant 0 : index
    %0 = vector.load %arg1[%c0, %c0_0] : memref<8x128xf32, #tpu.memory_space<vmem>>, vector<8x128xf32>
    %cst = arith.constant 0.000000e+00 : f32
    %1 = vector.broadcast %cst : f32 to vector<8x128xf32>
    %2 = arith.subf %1, %0 : vector<8x128xf32>
    %3 = math.exp %2 : vector<8x128xf32>
    %cst_1 = arith.constant 1.000000e+00 : f32
    %4 = vector.broadcast %cst_1 : f32 to vector<8x128xf32>
    %5 = arith.addf %4, %3 : vector<8x128xf32>
    %6 = arith.divf %0, %5 : vector<8x128xf32>
    %cst_2 = arith.constant -2.200000e+00 : f32
    %7 = vector.broadcast %cst_2 : f32 to vector<8x128xf32>
    %8 = arith.subf %0, %7 : vector<8x128xf32>
    %cst_3 = arith.constant -1.800000e+00 : f32
    %9 = vector.broadcast %cst_3 : f32 to vector<8x128xf32>
    %10 = arith.subf %0, %9 : vector<8x128xf32>
    %cst_4 = arith.constant -1.400000e+00 : f32
    %11 = vector.broadcast %cst_4 : f32 to vector<8x128xf32>
    %12 = arith.subf %0, %11 : vector<8x128xf32>
    %cst_5 = arith.constant -1.000000e+00 : f32
    %13 = vector.broadcast %cst_5 : f32 to vector<8x128xf32>
    %14 = arith.subf %0, %13 : vector<8x128xf32>
    %cst_6 = arith.constant -6.000000e-01 : f32
    %15 = vector.broadcast %cst_6 : f32 to vector<8x128xf32>
    %16 = arith.subf %0, %15 : vector<8x128xf32>
    %cst_7 = arith.constant -2.000000e-01 : f32
    %17 = vector.broadcast %cst_7 : f32 to vector<8x128xf32>
    %18 = arith.subf %0, %17 : vector<8x128xf32>
    %cst_8 = arith.constant 2.000000e-01 : f32
    %19 = vector.broadcast %cst_8 : f32 to vector<8x128xf32>
    %20 = arith.subf %0, %19 : vector<8x128xf32>
    %cst_9 = arith.constant 6.000000e-01 : f32
    %21 = vector.broadcast %cst_9 : f32 to vector<8x128xf32>
    %22 = arith.subf %0, %21 : vector<8x128xf32>
    %cst_10 = arith.constant 1.000000e+00 : f32
    %23 = vector.broadcast %cst_10 : f32 to vector<8x128xf32>
    %24 = arith.subf %0, %23 : vector<8x128xf32>
    %cst_11 = arith.constant 1.400000e+00 : f32
    %25 = vector.broadcast %cst_11 : f32 to vector<8x128xf32>
    %26 = arith.subf %0, %25 : vector<8x128xf32>
    %cst_12 = arith.constant 1.800000e+00 : f32
    %27 = vector.broadcast %cst_12 : f32 to vector<8x128xf32>
    %28 = arith.subf %0, %27 : vector<8x128xf32>
    %cst_13 = arith.constant 2.200000e+00 : f32
    %29 = vector.broadcast %cst_13 : f32 to vector<8x128xf32>
    %30 = arith.subf %0, %29 : vector<8x128xf32>
    %cst_14 = arith.constant -2.200000e+00 : f32
    %31 = vector.broadcast %cst_14 : f32 to vector<8x128xf32>
    %32 = arith.cmpf oge, %0, %31 : vector<8x128xf32>
    %cst_15 = arith.constant -1.800000e+00 : f32
    %33 = vector.broadcast %cst_15 : f32 to vector<8x128xf32>
    %34 = arith.cmpf olt, %0, %33 : vector<8x128xf32>
    %35 = arith.andi %32, %34 : vector<8x128xi1>
    %36 = arith.extui %35 : vector<8x128xi1> to vector<8x128xi32>
    %37 = arith.sitofp %36 : vector<8x128xi32> to vector<8x128xf32>
    %cst_16 = arith.constant -1.800000e+00 : f32
    %38 = vector.broadcast %cst_16 : f32 to vector<8x128xf32>
    %39 = arith.cmpf oge, %0, %38 : vector<8x128xf32>
    %cst_17 = arith.constant -1.400000e+00 : f32
    %40 = vector.broadcast %cst_17 : f32 to vector<8x128xf32>
    %41 = arith.cmpf olt, %0, %40 : vector<8x128xf32>
    %42 = arith.andi %39, %41 : vector<8x128xi1>
    %43 = arith.extui %42 : vector<8x128xi1> to vector<8x128xi32>
    %44 = arith.sitofp %43 : vector<8x128xi32> to vector<8x128xf32>
    %cst_18 = arith.constant -1.400000e+00 : f32
    %45 = vector.broadcast %cst_18 : f32 to vector<8x128xf32>
    %46 = arith.cmpf oge, %0, %45 : vector<8x128xf32>
    %cst_19 = arith.constant -1.000000e+00 : f32
    %47 = vector.broadcast %cst_19 : f32 to vector<8x128xf32>
    %48 = arith.cmpf olt, %0, %47 : vector<8x128xf32>
    %49 = arith.andi %46, %48 : vector<8x128xi1>
    %50 = arith.extui %49 : vector<8x128xi1> to vector<8x128xi32>
    %51 = arith.sitofp %50 : vector<8x128xi32> to vector<8x128xf32>
    %cst_20 = arith.constant -1.000000e+00 : f32
    %52 = vector.broadcast %cst_20 : f32 to vector<8x128xf32>
    %53 = arith.cmpf oge, %0, %52 : vector<8x128xf32>
    %cst_21 = arith.constant -6.000000e-01 : f32
    %54 = vector.broadcast %cst_21 : f32 to vector<8x128xf32>
    %55 = arith.cmpf olt, %0, %54 : vector<8x128xf32>
    %56 = arith.andi %53, %55 : vector<8x128xi1>
    %57 = arith.extui %56 : vector<8x128xi1> to vector<8x128xi32>
    %58 = arith.sitofp %57 : vector<8x128xi32> to vector<8x128xf32>
    %cst_22 = arith.constant -6.000000e-01 : f32
    %59 = vector.broadcast %cst_22 : f32 to vector<8x128xf32>
    %60 = arith.cmpf oge, %0, %59 : vector<8x128xf32>
    %cst_23 = arith.constant -2.000000e-01 : f32
    %61 = vector.broadcast %cst_23 : f32 to vector<8x128xf32>
    %62 = arith.cmpf olt, %0, %61 : vector<8x128xf32>
    %63 = arith.andi %60, %62 : vector<8x128xi1>
    %64 = arith.extui %63 : vector<8x128xi1> to vector<8x128xi32>
    %65 = arith.sitofp %64 : vector<8x128xi32> to vector<8x128xf32>
    %cst_24 = arith.constant -2.000000e-01 : f32
    %66 = vector.broadcast %cst_24 : f32 to vector<8x128xf32>
    %67 = arith.cmpf oge, %0, %66 : vector<8x128xf32>
    %cst_25 = arith.constant 2.000000e-01 : f32
    %68 = vector.broadcast %cst_25 : f32 to vector<8x128xf32>
    %69 = arith.cmpf olt, %0, %68 : vector<8x128xf32>
    %70 = arith.andi %67, %69 : vector<8x128xi1>
    %71 = arith.extui %70 : vector<8x128xi1> to vector<8x128xi32>
    %72 = arith.sitofp %71 : vector<8x128xi32> to vector<8x128xf32>
    %cst_26 = arith.constant 2.000000e-01 : f32
    %73 = vector.broadcast %cst_26 : f32 to vector<8x128xf32>
    %74 = arith.cmpf oge, %0, %73 : vector<8x128xf32>
    %cst_27 = arith.constant 6.000000e-01 : f32
    %75 = vector.broadcast %cst_27 : f32 to vector<8x128xf32>
    %76 = arith.cmpf olt, %0, %75 : vector<8x128xf32>
    %77 = arith.andi %74, %76 : vector<8x128xi1>
    %78 = arith.extui %77 : vector<8x128xi1> to vector<8x128xi32>
    %79 = arith.sitofp %78 : vector<8x128xi32> to vector<8x128xf32>
    %cst_28 = arith.constant 6.000000e-01 : f32
    %80 = vector.broadcast %cst_28 : f32 to vector<8x128xf32>
    %81 = arith.cmpf oge, %0, %80 : vector<8x128xf32>
    %cst_29 = arith.constant 1.000000e+00 : f32
    %82 = vector.broadcast %cst_29 : f32 to vector<8x128xf32>
    %83 = arith.cmpf olt, %0, %82 : vector<8x128xf32>
    %84 = arith.andi %81, %83 : vector<8x128xi1>
    %85 = arith.extui %84 : vector<8x128xi1> to vector<8x128xi32>
    %86 = arith.sitofp %85 : vector<8x128xi32> to vector<8x128xf32>
    %cst_30 = arith.constant 1.000000e+00 : f32
    %87 = vector.broadcast %cst_30 : f32 to vector<8x128xf32>
    %88 = arith.cmpf oge, %0, %87 : vector<8x128xf32>
    %cst_31 = arith.constant 1.400000e+00 : f32
    %89 = vector.broadcast %cst_31 : f32 to vector<8x128xf32>
    %90 = arith.cmpf olt, %0, %89 : vector<8x128xf32>
    %91 = arith.andi %88, %90 : vector<8x128xi1>
    %92 = arith.extui %91 : vector<8x128xi1> to vector<8x128xi32>
    %93 = arith.sitofp %92 : vector<8x128xi32> to vector<8x128xf32>
    %cst_32 = arith.constant 1.400000e+00 : f32
    %94 = vector.broadcast %cst_32 : f32 to vector<8x128xf32>
    %95 = arith.cmpf oge, %0, %94 : vector<8x128xf32>
    %cst_33 = arith.constant 1.800000e+00 : f32
    %96 = vector.broadcast %cst_33 : f32 to vector<8x128xf32>
    %97 = arith.cmpf olt, %0, %96 : vector<8x128xf32>
    %98 = arith.andi %95, %97 : vector<8x128xi1>
    %99 = arith.extui %98 : vector<8x128xi1> to vector<8x128xi32>
    %100 = arith.sitofp %99 : vector<8x128xi32> to vector<8x128xf32>
    %cst_34 = arith.constant 1.800000e+00 : f32
    %101 = vector.broadcast %cst_34 : f32 to vector<8x128xf32>
    %102 = arith.cmpf oge, %0, %101 : vector<8x128xf32>
    %cst_35 = arith.constant 2.200000e+00 : f32
    %103 = vector.broadcast %cst_35 : f32 to vector<8x128xf32>
    %104 = arith.cmpf olt, %0, %103 : vector<8x128xf32>
    %105 = arith.andi %102, %104 : vector<8x128xi1>
    %106 = arith.extui %105 : vector<8x128xi1> to vector<8x128xi32>
    %107 = arith.sitofp %106 : vector<8x128xi32> to vector<8x128xf32>
    %cst_36 = arith.constant 2.500000e+00 : f32
    %108 = vector.broadcast %cst_36 : f32 to vector<8x128xf32>
    %109 = arith.mulf %8, %108 : vector<8x128xf32>
    %110 = arith.mulf %109, %37 : vector<8x128xf32>
    %cst_37 = arith.constant -2.500000e+00 : f32
    %111 = vector.broadcast %cst_37 : f32 to vector<8x128xf32>
    %112 = arith.mulf %12, %111 : vector<8x128xf32>
    %113 = arith.mulf %112, %44 : vector<8x128xf32>
    %114 = arith.addf %110, %113 : vector<8x128xf32>
    %cst_38 = arith.constant 2.500000e+00 : f32
    %115 = vector.broadcast %cst_38 : f32 to vector<8x128xf32>
    %116 = arith.mulf %10, %115 : vector<8x128xf32>
    %117 = arith.mulf %116, %44 : vector<8x128xf32>
    %cst_39 = arith.constant -2.500000e+00 : f32
    %118 = vector.broadcast %cst_39 : f32 to vector<8x128xf32>
    %119 = arith.mulf %14, %118 : vector<8x128xf32>
    %120 = arith.mulf %119, %51 : vector<8x128xf32>
    %121 = arith.addf %117, %120 : vector<8x128xf32>
    %cst_40 = arith.constant 2.500000e+00 : f32
    %122 = vector.broadcast %cst_40 : f32 to vector<8x128xf32>
    %123 = arith.mulf %12, %122 : vector<8x128xf32>
    %124 = arith.mulf %123, %51 : vector<8x128xf32>
    %cst_41 = arith.constant -2.500000e+00 : f32
    %125 = vector.broadcast %cst_41 : f32 to vector<8x128xf32>
    %126 = arith.mulf %16, %125 : vector<8x128xf32>
    %127 = arith.mulf %126, %58 : vector<8x128xf32>
    %128 = arith.addf %124, %127 : vector<8x128xf32>
    %cst_42 = arith.constant 2.500000e+00 : f32
    %129 = vector.broadcast %cst_42 : f32 to vector<8x128xf32>
    %130 = arith.mulf %14, %129 : vector<8x128xf32>
    %131 = arith.mulf %130, %58 : vector<8x128xf32>
    %cst_43 = arith.constant -2.500000e+00 : f32
    %132 = vector.broadcast %cst_43 : f32 to vector<8x128xf32>
    %133 = arith.mulf %18, %132 : vector<8x128xf32>
    %134 = arith.mulf %133, %65 : vector<8x128xf32>
    %135 = arith.addf %131, %134 : vector<8x128xf32>
    %cst_44 = arith.constant 2.500000e+00 : f32
    %136 = vector.broadcast %cst_44 : f32 to vector<8x128xf32>
    %137 = arith.mulf %16, %136 : vector<8x128xf32>
    %138 = arith.mulf %137, %65 : vector<8x128xf32>
    %cst_45 = arith.constant -2.500000e+00 : f32
    %139 = vector.broadcast %cst_45 : f32 to vector<8x128xf32>
    %140 = arith.mulf %20, %139 : vector<8x128xf32>
    %141 = arith.mulf %140, %72 : vector<8x128xf32>
    %142 = arith.addf %138, %141 : vector<8x128xf32>
    %cst_46 = arith.constant 2.500000e+00 : f32
    %143 = vector.broadcast %cst_46 : f32 to vector<8x128xf32>
    %144 = arith.mulf %18, %143 : vector<8x128xf32>
    %145 = arith.mulf %144, %72 : vector<8x128xf32>
    %cst_47 = arith.constant -2.500000e+00 : f32
    %146 = vector.broadcast %cst_47 : f32 to vector<8x128xf32>
    %147 = arith.mulf %22, %146 : vector<8x128xf32>
    %148 = arith.mulf %147, %79 : vector<8x128xf32>
    %149 = arith.addf %145, %148 : vector<8x128xf32>
    %cst_48 = arith.constant 2.500000e+00 : f32
    %150 = vector.broadcast %cst_48 : f32 to vector<8x128xf32>
    %151 = arith.mulf %20, %150 : vector<8x128xf32>
    %152 = arith.mulf %151, %79 : vector<8x128xf32>
    %cst_49 = arith.constant -2.500000e+00 : f32
    %153 = vector.broadcast %cst_49 : f32 to vector<8x128xf32>
    %154 = arith.mulf %24, %153 : vector<8x128xf32>
    %155 = arith.mulf %154, %86 : vector<8x128xf32>
    %156 = arith.addf %152, %155 : vector<8x128xf32>
    %cst_50 = arith.constant 2.500000e+00 : f32
    %157 = vector.broadcast %cst_50 : f32 to vector<8x128xf32>
    %158 = arith.mulf %22, %157 : vector<8x128xf32>
    %159 = arith.mulf %158, %86 : vector<8x128xf32>
    %cst_51 = arith.constant -2.500000e+00 : f32
    %160 = vector.broadcast %cst_51 : f32 to vector<8x128xf32>
    %161 = arith.mulf %26, %160 : vector<8x128xf32>
    %162 = arith.mulf %161, %93 : vector<8x128xf32>
    %163 = arith.addf %159, %162 : vector<8x128xf32>
    %cst_52 = arith.constant 2.500000e+00 : f32
    %164 = vector.broadcast %cst_52 : f32 to vector<8x128xf32>
    %165 = arith.mulf %24, %164 : vector<8x128xf32>
    %166 = arith.mulf %165, %93 : vector<8x128xf32>
    %cst_53 = arith.constant -2.500000e+00 : f32
    %167 = vector.broadcast %cst_53 : f32 to vector<8x128xf32>
    %168 = arith.mulf %28, %167 : vector<8x128xf32>
    %169 = arith.mulf %168, %100 : vector<8x128xf32>
    %170 = arith.addf %166, %169 : vector<8x128xf32>
    %cst_54 = arith.constant 2.500000e+00 : f32
    %171 = vector.broadcast %cst_54 : f32 to vector<8x128xf32>
    %172 = arith.mulf %26, %171 : vector<8x128xf32>
    %173 = arith.mulf %172, %100 : vector<8x128xf32>
    %cst_55 = arith.constant -2.500000e+00 : f32
    %174 = vector.broadcast %cst_55 : f32 to vector<8x128xf32>
    %175 = arith.mulf %30, %174 : vector<8x128xf32>
    %176 = arith.mulf %175, %107 : vector<8x128xf32>
    %177 = arith.addf %173, %176 : vector<8x128xf32>
    %cst_56 = arith.constant 1.250000e+00 : f32
    %178 = vector.broadcast %cst_56 : f32 to vector<8x128xf32>
    %179 = arith.mulf %8, %178 : vector<8x128xf32>
    %180 = arith.mulf %179, %114 : vector<8x128xf32>
    %cst_57 = arith.constant -1.250000e+00 : f32
    %181 = vector.broadcast %cst_57 : f32 to vector<8x128xf32>
    %182 = arith.mulf %14, %181 : vector<8x128xf32>
    %183 = arith.mulf %182, %121 : vector<8x128xf32>
    %184 = arith.addf %180, %183 : vector<8x128xf32>
    %cst_58 = arith.constant 1.250000e+00 : f32
    %185 = vector.broadcast %cst_58 : f32 to vector<8x128xf32>
    %186 = arith.mulf %10, %185 : vector<8x128xf32>
    %187 = arith.mulf %186, %121 : vector<8x128xf32>
    %cst_59 = arith.constant -1.250000e+00 : f32
    %188 = vector.broadcast %cst_59 : f32 to vector<8x128xf32>
    %189 = arith.mulf %16, %188 : vector<8x128xf32>
    %190 = arith.mulf %189, %128 : vector<8x128xf32>
    %191 = arith.addf %187, %190 : vector<8x128xf32>
    %cst_60 = arith.constant 1.250000e+00 : f32
    %192 = vector.broadcast %cst_60 : f32 to vector<8x128xf32>
    %193 = arith.mulf %12, %192 : vector<8x128xf32>
    %194 = arith.mulf %193, %128 : vector<8x128xf32>
    %cst_61 = arith.constant -1.250000e+00 : f32
    %195 = vector.broadcast %cst_61 : f32 to vector<8x128xf32>
    %196 = arith.mulf %18, %195 : vector<8x128xf32>
    %197 = arith.mulf %196, %135 : vector<8x128xf32>
    %198 = arith.addf %194, %197 : vector<8x128xf32>
    %cst_62 = arith.constant 1.250000e+00 : f32
    %199 = vector.broadcast %cst_62 : f32 to vector<8x128xf32>
    %200 = arith.mulf %14, %199 : vector<8x128xf32>
    %201 = arith.mulf %200, %135 : vector<8x128xf32>
    %cst_63 = arith.constant -1.250000e+00 : f32
    %202 = vector.broadcast %cst_63 : f32 to vector<8x128xf32>
    %203 = arith.mulf %20, %202 : vector<8x128xf32>
    %204 = arith.mulf %203, %142 : vector<8x128xf32>
    %205 = arith.addf %201, %204 : vector<8x128xf32>
    %cst_64 = arith.constant 1.250000e+00 : f32
    %206 = vector.broadcast %cst_64 : f32 to vector<8x128xf32>
    %207 = arith.mulf %16, %206 : vector<8x128xf32>
    %208 = arith.mulf %207, %142 : vector<8x128xf32>
    %cst_65 = arith.constant -1.250000e+00 : f32
    %209 = vector.broadcast %cst_65 : f32 to vector<8x128xf32>
    %210 = arith.mulf %22, %209 : vector<8x128xf32>
    %211 = arith.mulf %210, %149 : vector<8x128xf32>
    %212 = arith.addf %208, %211 : vector<8x128xf32>
    %cst_66 = arith.constant 1.250000e+00 : f32
    %213 = vector.broadcast %cst_66 : f32 to vector<8x128xf32>
    %214 = arith.mulf %18, %213 : vector<8x128xf32>
    %215 = arith.mulf %214, %149 : vector<8x128xf32>
    %cst_67 = arith.constant -1.250000e+00 : f32
    %216 = vector.broadcast %cst_67 : f32 to vector<8x128xf32>
    %217 = arith.mulf %24, %216 : vector<8x128xf32>
    %218 = arith.mulf %217, %156 : vector<8x128xf32>
    %219 = arith.addf %215, %218 : vector<8x128xf32>
    %cst_68 = arith.constant 1.250000e+00 : f32
    %220 = vector.broadcast %cst_68 : f32 to vector<8x128xf32>
    %221 = arith.mulf %20, %220 : vector<8x128xf32>
    %222 = arith.mulf %221, %156 : vector<8x128xf32>
    %cst_69 = arith.constant -1.250000e+00 : f32
    %223 = vector.broadcast %cst_69 : f32 to vector<8x128xf32>
    %224 = arith.mulf %26, %223 : vector<8x128xf32>
    %225 = arith.mulf %224, %163 : vector<8x128xf32>
    %226 = arith.addf %222, %225 : vector<8x128xf32>
    %cst_70 = arith.constant 1.250000e+00 : f32
    %227 = vector.broadcast %cst_70 : f32 to vector<8x128xf32>
    %228 = arith.mulf %22, %227 : vector<8x128xf32>
    %229 = arith.mulf %228, %163 : vector<8x128xf32>
    %cst_71 = arith.constant -1.250000e+00 : f32
    %230 = vector.broadcast %cst_71 : f32 to vector<8x128xf32>
    %231 = arith.mulf %28, %230 : vector<8x128xf32>
    %232 = arith.mulf %231, %170 : vector<8x128xf32>
    %233 = arith.addf %229, %232 : vector<8x128xf32>
    %cst_72 = arith.constant 1.250000e+00 : f32
    %234 = vector.broadcast %cst_72 : f32 to vector<8x128xf32>
    %235 = arith.mulf %24, %234 : vector<8x128xf32>
    %236 = arith.mulf %235, %170 : vector<8x128xf32>
    %cst_73 = arith.constant -1.250000e+00 : f32
    %237 = vector.broadcast %cst_73 : f32 to vector<8x128xf32>
    %238 = arith.mulf %30, %237 : vector<8x128xf32>
    %239 = arith.mulf %238, %177 : vector<8x128xf32>
    %240 = arith.addf %236, %239 : vector<8x128xf32>
    %cst_74 = arith.constant 0.833333313 : f32
    %241 = vector.broadcast %cst_74 : f32 to vector<8x128xf32>
    %242 = arith.mulf %8, %241 : vector<8x128xf32>
    %243 = arith.mulf %242, %184 : vector<8x128xf32>
    %cst_75 = arith.constant -0.833333313 : f32
    %244 = vector.broadcast %cst_75 : f32 to vector<8x128xf32>
    %245 = arith.mulf %16, %244 : vector<8x128xf32>
    %246 = arith.mulf %245, %191 : vector<8x128xf32>
    %247 = arith.addf %243, %246 : vector<8x128xf32>
    %cst_76 = arith.constant 0.833333313 : f32
    %248 = vector.broadcast %cst_76 : f32 to vector<8x128xf32>
    %249 = arith.mulf %10, %248 : vector<8x128xf32>
    %250 = arith.mulf %249, %191 : vector<8x128xf32>
    %cst_77 = arith.constant -0.833333313 : f32
    %251 = vector.broadcast %cst_77 : f32 to vector<8x128xf32>
    %252 = arith.mulf %18, %251 : vector<8x128xf32>
    %253 = arith.mulf %252, %198 : vector<8x128xf32>
    %254 = arith.addf %250, %253 : vector<8x128xf32>
    %cst_78 = arith.constant 0.833333313 : f32
    %255 = vector.broadcast %cst_78 : f32 to vector<8x128xf32>
    %256 = arith.mulf %12, %255 : vector<8x128xf32>
    %257 = arith.mulf %256, %198 : vector<8x128xf32>
    %cst_79 = arith.constant -0.833333313 : f32
    %258 = vector.broadcast %cst_79 : f32 to vector<8x128xf32>
    %259 = arith.mulf %20, %258 : vector<8x128xf32>
    %260 = arith.mulf %259, %205 : vector<8x128xf32>
    %261 = arith.addf %257, %260 : vector<8x128xf32>
    %cst_80 = arith.constant 0.833333313 : f32
    %262 = vector.broadcast %cst_80 : f32 to vector<8x128xf32>
    %263 = arith.mulf %14, %262 : vector<8x128xf32>
    %264 = arith.mulf %263, %205 : vector<8x128xf32>
    %cst_81 = arith.constant -0.833333313 : f32
    %265 = vector.broadcast %cst_81 : f32 to vector<8x128xf32>
    %266 = arith.mulf %22, %265 : vector<8x128xf32>
    %267 = arith.mulf %266, %212 : vector<8x128xf32>
    %268 = arith.addf %264, %267 : vector<8x128xf32>
    %cst_82 = arith.constant 0.833333313 : f32
    %269 = vector.broadcast %cst_82 : f32 to vector<8x128xf32>
    %270 = arith.mulf %16, %269 : vector<8x128xf32>
    %271 = arith.mulf %270, %212 : vector<8x128xf32>
    %cst_83 = arith.constant -0.833333313 : f32
    %272 = vector.broadcast %cst_83 : f32 to vector<8x128xf32>
    %273 = arith.mulf %24, %272 : vector<8x128xf32>
    %274 = arith.mulf %273, %219 : vector<8x128xf32>
    %275 = arith.addf %271, %274 : vector<8x128xf32>
    %cst_84 = arith.constant 0.833333313 : f32
    %276 = vector.broadcast %cst_84 : f32 to vector<8x128xf32>
    %277 = arith.mulf %18, %276 : vector<8x128xf32>
    %278 = arith.mulf %277, %219 : vector<8x128xf32>
    %cst_85 = arith.constant -0.833333313 : f32
    %279 = vector.broadcast %cst_85 : f32 to vector<8x128xf32>
    %280 = arith.mulf %26, %279 : vector<8x128xf32>
    %281 = arith.mulf %280, %226 : vector<8x128xf32>
    %282 = arith.addf %278, %281 : vector<8x128xf32>
    %cst_86 = arith.constant 0.833333313 : f32
    %283 = vector.broadcast %cst_86 : f32 to vector<8x128xf32>
    %284 = arith.mulf %20, %283 : vector<8x128xf32>
    %285 = arith.mulf %284, %226 : vector<8x128xf32>
    %cst_87 = arith.constant -0.833333313 : f32
    %286 = vector.broadcast %cst_87 : f32 to vector<8x128xf32>
    %287 = arith.mulf %28, %286 : vector<8x128xf32>
    %288 = arith.mulf %287, %233 : vector<8x128xf32>
    %289 = arith.addf %285, %288 : vector<8x128xf32>
    %cst_88 = arith.constant 0.833333313 : f32
    %290 = vector.broadcast %cst_88 : f32 to vector<8x128xf32>
    %291 = arith.mulf %22, %290 : vector<8x128xf32>
    %292 = arith.mulf %291, %233 : vector<8x128xf32>
    %cst_89 = arith.constant -0.833333313 : f32
    %293 = vector.broadcast %cst_89 : f32 to vector<8x128xf32>
    %294 = arith.mulf %30, %293 : vector<8x128xf32>
    %295 = arith.mulf %294, %240 : vector<8x128xf32>
    %296 = arith.addf %292, %295 : vector<8x128xf32>
    %297 = tpu.concatenate %6, %247, %254, %261, %268, %275, %282, %289, %296 in 0 : vector<8x128xf32>, vector<8x128xf32>, vector<8x128xf32>, vector<8x128xf32>, vector<8x128xf32>, vector<8x128xf32>, vector<8x128xf32>, vector<8x128xf32>, vector<8x128xf32> -> vector<72x128xf32>
    %c0_90 = arith.constant 0 : index
    %c0_91 = arith.constant 0 : index
    %298 = vector.load %arg2[%c0_90, %c0_91] : memref<32x72xf32, #tpu.memory_space<vmem>>, vector<32x72xf32>
    %cst_92 = arith.constant dense<0.000000e+00> : vector<32x128xf32>
    %299 = tpu.matmul %298, %297, %cst_92 {dimension_numbers = #tpu.dot_dimension_numbers<[1], [0], [0], [1], [0, 0, 1, 1], [], []>} : vector<32x72xf32>, vector<72x128xf32>, vector<32x128xf32> -> vector<32x128xf32>
    %cst_93 = arith.constant 0.000000e+00 : f32
    %300 = vector.broadcast %cst_93 : f32 to vector<32x128xf32>
    %301 = arith.subf %300, %299 : vector<32x128xf32>
    %302 = math.exp %301 : vector<32x128xf32>
    %cst_94 = arith.constant 1.000000e+00 : f32
    %303 = vector.broadcast %cst_94 : f32 to vector<32x128xf32>
    %304 = arith.addf %303, %302 : vector<32x128xf32>
    %305 = arith.divf %299, %304 : vector<32x128xf32>
    %cst_95 = arith.constant -2.200000e+00 : f32
    %306 = vector.broadcast %cst_95 : f32 to vector<32x128xf32>
    %307 = arith.subf %299, %306 : vector<32x128xf32>
    %cst_96 = arith.constant -1.800000e+00 : f32
    %308 = vector.broadcast %cst_96 : f32 to vector<32x128xf32>
    %309 = arith.subf %299, %308 : vector<32x128xf32>
    %cst_97 = arith.constant -1.400000e+00 : f32
    %310 = vector.broadcast %cst_97 : f32 to vector<32x128xf32>
    %311 = arith.subf %299, %310 : vector<32x128xf32>
    %cst_98 = arith.constant -1.000000e+00 : f32
    %312 = vector.broadcast %cst_98 : f32 to vector<32x128xf32>
    %313 = arith.subf %299, %312 : vector<32x128xf32>
    %cst_99 = arith.constant -6.000000e-01 : f32
    %314 = vector.broadcast %cst_99 : f32 to vector<32x128xf32>
    %315 = arith.subf %299, %314 : vector<32x128xf32>
    %cst_100 = arith.constant -2.000000e-01 : f32
    %316 = vector.broadcast %cst_100 : f32 to vector<32x128xf32>
    %317 = arith.subf %299, %316 : vector<32x128xf32>
    %cst_101 = arith.constant 2.000000e-01 : f32
    %318 = vector.broadcast %cst_101 : f32 to vector<32x128xf32>
    %319 = arith.subf %299, %318 : vector<32x128xf32>
    %cst_102 = arith.constant 6.000000e-01 : f32
    %320 = vector.broadcast %cst_102 : f32 to vector<32x128xf32>
    %321 = arith.subf %299, %320 : vector<32x128xf32>
    %cst_103 = arith.constant 1.000000e+00 : f32
    %322 = vector.broadcast %cst_103 : f32 to vector<32x128xf32>
    %323 = arith.subf %299, %322 : vector<32x128xf32>
    %cst_104 = arith.constant 1.400000e+00 : f32
    %324 = vector.broadcast %cst_104 : f32 to vector<32x128xf32>
    %325 = arith.subf %299, %324 : vector<32x128xf32>
    %cst_105 = arith.constant 1.800000e+00 : f32
    %326 = vector.broadcast %cst_105 : f32 to vector<32x128xf32>
    %327 = arith.subf %299, %326 : vector<32x128xf32>
    %cst_106 = arith.constant 2.200000e+00 : f32
    %328 = vector.broadcast %cst_106 : f32 to vector<32x128xf32>
    %329 = arith.subf %299, %328 : vector<32x128xf32>
    %cst_107 = arith.constant -2.200000e+00 : f32
    %330 = vector.broadcast %cst_107 : f32 to vector<32x128xf32>
    %331 = arith.cmpf oge, %299, %330 : vector<32x128xf32>
    %cst_108 = arith.constant -1.800000e+00 : f32
    %332 = vector.broadcast %cst_108 : f32 to vector<32x128xf32>
    %333 = arith.cmpf olt, %299, %332 : vector<32x128xf32>
    %334 = arith.andi %331, %333 : vector<32x128xi1>
    %335 = arith.extui %334 : vector<32x128xi1> to vector<32x128xi32>
    %336 = arith.sitofp %335 : vector<32x128xi32> to vector<32x128xf32>
    %cst_109 = arith.constant -1.800000e+00 : f32
    %337 = vector.broadcast %cst_109 : f32 to vector<32x128xf32>
    %338 = arith.cmpf oge, %299, %337 : vector<32x128xf32>
    %cst_110 = arith.constant -1.400000e+00 : f32
    %339 = vector.broadcast %cst_110 : f32 to vector<32x128xf32>
    %340 = arith.cmpf olt, %299, %339 : vector<32x128xf32>
    %341 = arith.andi %338, %340 : vector<32x128xi1>
    %342 = arith.extui %341 : vector<32x128xi1> to vector<32x128xi32>
    %343 = arith.sitofp %342 : vector<32x128xi32> to vector<32x128xf32>
    %cst_111 = arith.constant -1.400000e+00 : f32
    %344 = vector.broadcast %cst_111 : f32 to vector<32x128xf32>
    %345 = arith.cmpf oge, %299, %344 : vector<32x128xf32>
    %cst_112 = arith.constant -1.000000e+00 : f32
    %346 = vector.broadcast %cst_112 : f32 to vector<32x128xf32>
    %347 = arith.cmpf olt, %299, %346 : vector<32x128xf32>
    %348 = arith.andi %345, %347 : vector<32x128xi1>
    %349 = arith.extui %348 : vector<32x128xi1> to vector<32x128xi32>
    %350 = arith.sitofp %349 : vector<32x128xi32> to vector<32x128xf32>
    %cst_113 = arith.constant -1.000000e+00 : f32
    %351 = vector.broadcast %cst_113 : f32 to vector<32x128xf32>
    %352 = arith.cmpf oge, %299, %351 : vector<32x128xf32>
    %cst_114 = arith.constant -6.000000e-01 : f32
    %353 = vector.broadcast %cst_114 : f32 to vector<32x128xf32>
    %354 = arith.cmpf olt, %299, %353 : vector<32x128xf32>
    %355 = arith.andi %352, %354 : vector<32x128xi1>
    %356 = arith.extui %355 : vector<32x128xi1> to vector<32x128xi32>
    %357 = arith.sitofp %356 : vector<32x128xi32> to vector<32x128xf32>
    %cst_115 = arith.constant -6.000000e-01 : f32
    %358 = vector.broadcast %cst_115 : f32 to vector<32x128xf32>
    %359 = arith.cmpf oge, %299, %358 : vector<32x128xf32>
    %cst_116 = arith.constant -2.000000e-01 : f32
    %360 = vector.broadcast %cst_116 : f32 to vector<32x128xf32>
    %361 = arith.cmpf olt, %299, %360 : vector<32x128xf32>
    %362 = arith.andi %359, %361 : vector<32x128xi1>
    %363 = arith.extui %362 : vector<32x128xi1> to vector<32x128xi32>
    %364 = arith.sitofp %363 : vector<32x128xi32> to vector<32x128xf32>
    %cst_117 = arith.constant -2.000000e-01 : f32
    %365 = vector.broadcast %cst_117 : f32 to vector<32x128xf32>
    %366 = arith.cmpf oge, %299, %365 : vector<32x128xf32>
    %cst_118 = arith.constant 2.000000e-01 : f32
    %367 = vector.broadcast %cst_118 : f32 to vector<32x128xf32>
    %368 = arith.cmpf olt, %299, %367 : vector<32x128xf32>
    %369 = arith.andi %366, %368 : vector<32x128xi1>
    %370 = arith.extui %369 : vector<32x128xi1> to vector<32x128xi32>
    %371 = arith.sitofp %370 : vector<32x128xi32> to vector<32x128xf32>
    %cst_119 = arith.constant 2.000000e-01 : f32
    %372 = vector.broadcast %cst_119 : f32 to vector<32x128xf32>
    %373 = arith.cmpf oge, %299, %372 : vector<32x128xf32>
    %cst_120 = arith.constant 6.000000e-01 : f32
    %374 = vector.broadcast %cst_120 : f32 to vector<32x128xf32>
    %375 = arith.cmpf olt, %299, %374 : vector<32x128xf32>
    %376 = arith.andi %373, %375 : vector<32x128xi1>
    %377 = arith.extui %376 : vector<32x128xi1> to vector<32x128xi32>
    %378 = arith.sitofp %377 : vector<32x128xi32> to vector<32x128xf32>
    %cst_121 = arith.constant 6.000000e-01 : f32
    %379 = vector.broadcast %cst_121 : f32 to vector<32x128xf32>
    %380 = arith.cmpf oge, %299, %379 : vector<32x128xf32>
    %cst_122 = arith.constant 1.000000e+00 : f32
    %381 = vector.broadcast %cst_122 : f32 to vector<32x128xf32>
    %382 = arith.cmpf olt, %299, %381 : vector<32x128xf32>
    %383 = arith.andi %380, %382 : vector<32x128xi1>
    %384 = arith.extui %383 : vector<32x128xi1> to vector<32x128xi32>
    %385 = arith.sitofp %384 : vector<32x128xi32> to vector<32x128xf32>
    %cst_123 = arith.constant 1.000000e+00 : f32
    %386 = vector.broadcast %cst_123 : f32 to vector<32x128xf32>
    %387 = arith.cmpf oge, %299, %386 : vector<32x128xf32>
    %cst_124 = arith.constant 1.400000e+00 : f32
    %388 = vector.broadcast %cst_124 : f32 to vector<32x128xf32>
    %389 = arith.cmpf olt, %299, %388 : vector<32x128xf32>
    %390 = arith.andi %387, %389 : vector<32x128xi1>
    %391 = arith.extui %390 : vector<32x128xi1> to vector<32x128xi32>
    %392 = arith.sitofp %391 : vector<32x128xi32> to vector<32x128xf32>
    %cst_125 = arith.constant 1.400000e+00 : f32
    %393 = vector.broadcast %cst_125 : f32 to vector<32x128xf32>
    %394 = arith.cmpf oge, %299, %393 : vector<32x128xf32>
    %cst_126 = arith.constant 1.800000e+00 : f32
    %395 = vector.broadcast %cst_126 : f32 to vector<32x128xf32>
    %396 = arith.cmpf olt, %299, %395 : vector<32x128xf32>
    %397 = arith.andi %394, %396 : vector<32x128xi1>
    %398 = arith.extui %397 : vector<32x128xi1> to vector<32x128xi32>
    %399 = arith.sitofp %398 : vector<32x128xi32> to vector<32x128xf32>
    %cst_127 = arith.constant 1.800000e+00 : f32
    %400 = vector.broadcast %cst_127 : f32 to vector<32x128xf32>
    %401 = arith.cmpf oge, %299, %400 : vector<32x128xf32>
    %cst_128 = arith.constant 2.200000e+00 : f32
    %402 = vector.broadcast %cst_128 : f32 to vector<32x128xf32>
    %403 = arith.cmpf olt, %299, %402 : vector<32x128xf32>
    %404 = arith.andi %401, %403 : vector<32x128xi1>
    %405 = arith.extui %404 : vector<32x128xi1> to vector<32x128xi32>
    %406 = arith.sitofp %405 : vector<32x128xi32> to vector<32x128xf32>
    %cst_129 = arith.constant 2.500000e+00 : f32
    %407 = vector.broadcast %cst_129 : f32 to vector<32x128xf32>
    %408 = arith.mulf %307, %407 : vector<32x128xf32>
    %409 = arith.mulf %408, %336 : vector<32x128xf32>
    %cst_130 = arith.constant -2.500000e+00 : f32
    %410 = vector.broadcast %cst_130 : f32 to vector<32x128xf32>
    %411 = arith.mulf %311, %410 : vector<32x128xf32>
    %412 = arith.mulf %411, %343 : vector<32x128xf32>
    %413 = arith.addf %409, %412 : vector<32x128xf32>
    %cst_131 = arith.constant 2.500000e+00 : f32
    %414 = vector.broadcast %cst_131 : f32 to vector<32x128xf32>
    %415 = arith.mulf %309, %414 : vector<32x128xf32>
    %416 = arith.mulf %415, %343 : vector<32x128xf32>
    %cst_132 = arith.constant -2.500000e+00 : f32
    %417 = vector.broadcast %cst_132 : f32 to vector<32x128xf32>
    %418 = arith.mulf %313, %417 : vector<32x128xf32>
    %419 = arith.mulf %418, %350 : vector<32x128xf32>
    %420 = arith.addf %416, %419 : vector<32x128xf32>
    %cst_133 = arith.constant 2.500000e+00 : f32
    %421 = vector.broadcast %cst_133 : f32 to vector<32x128xf32>
    %422 = arith.mulf %311, %421 : vector<32x128xf32>
    %423 = arith.mulf %422, %350 : vector<32x128xf32>
    %cst_134 = arith.constant -2.500000e+00 : f32
    %424 = vector.broadcast %cst_134 : f32 to vector<32x128xf32>
    %425 = arith.mulf %315, %424 : vector<32x128xf32>
    %426 = arith.mulf %425, %357 : vector<32x128xf32>
    %427 = arith.addf %423, %426 : vector<32x128xf32>
    %cst_135 = arith.constant 2.500000e+00 : f32
    %428 = vector.broadcast %cst_135 : f32 to vector<32x128xf32>
    %429 = arith.mulf %313, %428 : vector<32x128xf32>
    %430 = arith.mulf %429, %357 : vector<32x128xf32>
    %cst_136 = arith.constant -2.500000e+00 : f32
    %431 = vector.broadcast %cst_136 : f32 to vector<32x128xf32>
    %432 = arith.mulf %317, %431 : vector<32x128xf32>
    %433 = arith.mulf %432, %364 : vector<32x128xf32>
    %434 = arith.addf %430, %433 : vector<32x128xf32>
    %cst_137 = arith.constant 2.500000e+00 : f32
    %435 = vector.broadcast %cst_137 : f32 to vector<32x128xf32>
    %436 = arith.mulf %315, %435 : vector<32x128xf32>
    %437 = arith.mulf %436, %364 : vector<32x128xf32>
    %cst_138 = arith.constant -2.500000e+00 : f32
    %438 = vector.broadcast %cst_138 : f32 to vector<32x128xf32>
    %439 = arith.mulf %319, %438 : vector<32x128xf32>
    %440 = arith.mulf %439, %371 : vector<32x128xf32>
    %441 = arith.addf %437, %440 : vector<32x128xf32>
    %cst_139 = arith.constant 2.500000e+00 : f32
    %442 = vector.broadcast %cst_139 : f32 to vector<32x128xf32>
    %443 = arith.mulf %317, %442 : vector<32x128xf32>
    %444 = arith.mulf %443, %371 : vector<32x128xf32>
    %cst_140 = arith.constant -2.500000e+00 : f32
    %445 = vector.broadcast %cst_140 : f32 to vector<32x128xf32>
    %446 = arith.mulf %321, %445 : vector<32x128xf32>
    %447 = arith.mulf %446, %378 : vector<32x128xf32>
    %448 = arith.addf %444, %447 : vector<32x128xf32>
    %cst_141 = arith.constant 2.500000e+00 : f32
    %449 = vector.broadcast %cst_141 : f32 to vector<32x128xf32>
    %450 = arith.mulf %319, %449 : vector<32x128xf32>
    %451 = arith.mulf %450, %378 : vector<32x128xf32>
    %cst_142 = arith.constant -2.500000e+00 : f32
    %452 = vector.broadcast %cst_142 : f32 to vector<32x128xf32>
    %453 = arith.mulf %323, %452 : vector<32x128xf32>
    %454 = arith.mulf %453, %385 : vector<32x128xf32>
    %455 = arith.addf %451, %454 : vector<32x128xf32>
    %cst_143 = arith.constant 2.500000e+00 : f32
    %456 = vector.broadcast %cst_143 : f32 to vector<32x128xf32>
    %457 = arith.mulf %321, %456 : vector<32x128xf32>
    %458 = arith.mulf %457, %385 : vector<32x128xf32>
    %cst_144 = arith.constant -2.500000e+00 : f32
    %459 = vector.broadcast %cst_144 : f32 to vector<32x128xf32>
    %460 = arith.mulf %325, %459 : vector<32x128xf32>
    %461 = arith.mulf %460, %392 : vector<32x128xf32>
    %462 = arith.addf %458, %461 : vector<32x128xf32>
    %cst_145 = arith.constant 2.500000e+00 : f32
    %463 = vector.broadcast %cst_145 : f32 to vector<32x128xf32>
    %464 = arith.mulf %323, %463 : vector<32x128xf32>
    %465 = arith.mulf %464, %392 : vector<32x128xf32>
    %cst_146 = arith.constant -2.500000e+00 : f32
    %466 = vector.broadcast %cst_146 : f32 to vector<32x128xf32>
    %467 = arith.mulf %327, %466 : vector<32x128xf32>
    %468 = arith.mulf %467, %399 : vector<32x128xf32>
    %469 = arith.addf %465, %468 : vector<32x128xf32>
    %cst_147 = arith.constant 2.500000e+00 : f32
    %470 = vector.broadcast %cst_147 : f32 to vector<32x128xf32>
    %471 = arith.mulf %325, %470 : vector<32x128xf32>
    %472 = arith.mulf %471, %399 : vector<32x128xf32>
    %cst_148 = arith.constant -2.500000e+00 : f32
    %473 = vector.broadcast %cst_148 : f32 to vector<32x128xf32>
    %474 = arith.mulf %329, %473 : vector<32x128xf32>
    %475 = arith.mulf %474, %406 : vector<32x128xf32>
    %476 = arith.addf %472, %475 : vector<32x128xf32>
    %cst_149 = arith.constant 1.250000e+00 : f32
    %477 = vector.broadcast %cst_149 : f32 to vector<32x128xf32>
    %478 = arith.mulf %307, %477 : vector<32x128xf32>
    %479 = arith.mulf %478, %413 : vector<32x128xf32>
    %cst_150 = arith.constant -1.250000e+00 : f32
    %480 = vector.broadcast %cst_150 : f32 to vector<32x128xf32>
    %481 = arith.mulf %313, %480 : vector<32x128xf32>
    %482 = arith.mulf %481, %420 : vector<32x128xf32>
    %483 = arith.addf %479, %482 : vector<32x128xf32>
    %cst_151 = arith.constant 1.250000e+00 : f32
    %484 = vector.broadcast %cst_151 : f32 to vector<32x128xf32>
    %485 = arith.mulf %309, %484 : vector<32x128xf32>
    %486 = arith.mulf %485, %420 : vector<32x128xf32>
    %cst_152 = arith.constant -1.250000e+00 : f32
    %487 = vector.broadcast %cst_152 : f32 to vector<32x128xf32>
    %488 = arith.mulf %315, %487 : vector<32x128xf32>
    %489 = arith.mulf %488, %427 : vector<32x128xf32>
    %490 = arith.addf %486, %489 : vector<32x128xf32>
    %cst_153 = arith.constant 1.250000e+00 : f32
    %491 = vector.broadcast %cst_153 : f32 to vector<32x128xf32>
    %492 = arith.mulf %311, %491 : vector<32x128xf32>
    %493 = arith.mulf %492, %427 : vector<32x128xf32>
    %cst_154 = arith.constant -1.250000e+00 : f32
    %494 = vector.broadcast %cst_154 : f32 to vector<32x128xf32>
    %495 = arith.mulf %317, %494 : vector<32x128xf32>
    %496 = arith.mulf %495, %434 : vector<32x128xf32>
    %497 = arith.addf %493, %496 : vector<32x128xf32>
    %cst_155 = arith.constant 1.250000e+00 : f32
    %498 = vector.broadcast %cst_155 : f32 to vector<32x128xf32>
    %499 = arith.mulf %313, %498 : vector<32x128xf32>
    %500 = arith.mulf %499, %434 : vector<32x128xf32>
    %cst_156 = arith.constant -1.250000e+00 : f32
    %501 = vector.broadcast %cst_156 : f32 to vector<32x128xf32>
    %502 = arith.mulf %319, %501 : vector<32x128xf32>
    %503 = arith.mulf %502, %441 : vector<32x128xf32>
    %504 = arith.addf %500, %503 : vector<32x128xf32>
    %cst_157 = arith.constant 1.250000e+00 : f32
    %505 = vector.broadcast %cst_157 : f32 to vector<32x128xf32>
    %506 = arith.mulf %315, %505 : vector<32x128xf32>
    %507 = arith.mulf %506, %441 : vector<32x128xf32>
    %cst_158 = arith.constant -1.250000e+00 : f32
    %508 = vector.broadcast %cst_158 : f32 to vector<32x128xf32>
    %509 = arith.mulf %321, %508 : vector<32x128xf32>
    %510 = arith.mulf %509, %448 : vector<32x128xf32>
    %511 = arith.addf %507, %510 : vector<32x128xf32>
    %cst_159 = arith.constant 1.250000e+00 : f32
    %512 = vector.broadcast %cst_159 : f32 to vector<32x128xf32>
    %513 = arith.mulf %317, %512 : vector<32x128xf32>
    %514 = arith.mulf %513, %448 : vector<32x128xf32>
    %cst_160 = arith.constant -1.250000e+00 : f32
    %515 = vector.broadcast %cst_160 : f32 to vector<32x128xf32>
    %516 = arith.mulf %323, %515 : vector<32x128xf32>
    %517 = arith.mulf %516, %455 : vector<32x128xf32>
    %518 = arith.addf %514, %517 : vector<32x128xf32>
    %cst_161 = arith.constant 1.250000e+00 : f32
    %519 = vector.broadcast %cst_161 : f32 to vector<32x128xf32>
    %520 = arith.mulf %319, %519 : vector<32x128xf32>
    %521 = arith.mulf %520, %455 : vector<32x128xf32>
    %cst_162 = arith.constant -1.250000e+00 : f32
    %522 = vector.broadcast %cst_162 : f32 to vector<32x128xf32>
    %523 = arith.mulf %325, %522 : vector<32x128xf32>
    %524 = arith.mulf %523, %462 : vector<32x128xf32>
    %525 = arith.addf %521, %524 : vector<32x128xf32>
    %cst_163 = arith.constant 1.250000e+00 : f32
    %526 = vector.broadcast %cst_163 : f32 to vector<32x128xf32>
    %527 = arith.mulf %321, %526 : vector<32x128xf32>
    %528 = arith.mulf %527, %462 : vector<32x128xf32>
    %cst_164 = arith.constant -1.250000e+00 : f32
    %529 = vector.broadcast %cst_164 : f32 to vector<32x128xf32>
    %530 = arith.mulf %327, %529 : vector<32x128xf32>
    %531 = arith.mulf %530, %469 : vector<32x128xf32>
    %532 = arith.addf %528, %531 : vector<32x128xf32>
    %cst_165 = arith.constant 1.250000e+00 : f32
    %533 = vector.broadcast %cst_165 : f32 to vector<32x128xf32>
    %534 = arith.mulf %323, %533 : vector<32x128xf32>
    %535 = arith.mulf %534, %469 : vector<32x128xf32>
    %cst_166 = arith.constant -1.250000e+00 : f32
    %536 = vector.broadcast %cst_166 : f32 to vector<32x128xf32>
    %537 = arith.mulf %329, %536 : vector<32x128xf32>
    %538 = arith.mulf %537, %476 : vector<32x128xf32>
    %539 = arith.addf %535, %538 : vector<32x128xf32>
    %cst_167 = arith.constant 0.833333313 : f32
    %540 = vector.broadcast %cst_167 : f32 to vector<32x128xf32>
    %541 = arith.mulf %307, %540 : vector<32x128xf32>
    %542 = arith.mulf %541, %483 : vector<32x128xf32>
    %cst_168 = arith.constant -0.833333313 : f32
    %543 = vector.broadcast %cst_168 : f32 to vector<32x128xf32>
    %544 = arith.mulf %315, %543 : vector<32x128xf32>
    %545 = arith.mulf %544, %490 : vector<32x128xf32>
    %546 = arith.addf %542, %545 : vector<32x128xf32>
    %cst_169 = arith.constant 0.833333313 : f32
    %547 = vector.broadcast %cst_169 : f32 to vector<32x128xf32>
    %548 = arith.mulf %309, %547 : vector<32x128xf32>
    %549 = arith.mulf %548, %490 : vector<32x128xf32>
    %cst_170 = arith.constant -0.833333313 : f32
    %550 = vector.broadcast %cst_170 : f32 to vector<32x128xf32>
    %551 = arith.mulf %317, %550 : vector<32x128xf32>
    %552 = arith.mulf %551, %497 : vector<32x128xf32>
    %553 = arith.addf %549, %552 : vector<32x128xf32>
    %cst_171 = arith.constant 0.833333313 : f32
    %554 = vector.broadcast %cst_171 : f32 to vector<32x128xf32>
    %555 = arith.mulf %311, %554 : vector<32x128xf32>
    %556 = arith.mulf %555, %497 : vector<32x128xf32>
    %cst_172 = arith.constant -0.833333313 : f32
    %557 = vector.broadcast %cst_172 : f32 to vector<32x128xf32>
    %558 = arith.mulf %319, %557 : vector<32x128xf32>
    %559 = arith.mulf %558, %504 : vector<32x128xf32>
    %560 = arith.addf %556, %559 : vector<32x128xf32>
    %cst_173 = arith.constant 0.833333313 : f32
    %561 = vector.broadcast %cst_173 : f32 to vector<32x128xf32>
    %562 = arith.mulf %313, %561 : vector<32x128xf32>
    %563 = arith.mulf %562, %504 : vector<32x128xf32>
    %cst_174 = arith.constant -0.833333313 : f32
    %564 = vector.broadcast %cst_174 : f32 to vector<32x128xf32>
    %565 = arith.mulf %321, %564 : vector<32x128xf32>
    %566 = arith.mulf %565, %511 : vector<32x128xf32>
    %567 = arith.addf %563, %566 : vector<32x128xf32>
    %cst_175 = arith.constant 0.833333313 : f32
    %568 = vector.broadcast %cst_175 : f32 to vector<32x128xf32>
    %569 = arith.mulf %315, %568 : vector<32x128xf32>
    %570 = arith.mulf %569, %511 : vector<32x128xf32>
    %cst_176 = arith.constant -0.833333313 : f32
    %571 = vector.broadcast %cst_176 : f32 to vector<32x128xf32>
    %572 = arith.mulf %323, %571 : vector<32x128xf32>
    %573 = arith.mulf %572, %518 : vector<32x128xf32>
    %574 = arith.addf %570, %573 : vector<32x128xf32>
    %cst_177 = arith.constant 0.833333313 : f32
    %575 = vector.broadcast %cst_177 : f32 to vector<32x128xf32>
    %576 = arith.mulf %317, %575 : vector<32x128xf32>
    %577 = arith.mulf %576, %518 : vector<32x128xf32>
    %cst_178 = arith.constant -0.833333313 : f32
    %578 = vector.broadcast %cst_178 : f32 to vector<32x128xf32>
    %579 = arith.mulf %325, %578 : vector<32x128xf32>
    %580 = arith.mulf %579, %525 : vector<32x128xf32>
    %581 = arith.addf %577, %580 : vector<32x128xf32>
    %cst_179 = arith.constant 0.833333313 : f32
    %582 = vector.broadcast %cst_179 : f32 to vector<32x128xf32>
    %583 = arith.mulf %319, %582 : vector<32x128xf32>
    %584 = arith.mulf %583, %525 : vector<32x128xf32>
    %cst_180 = arith.constant -0.833333313 : f32
    %585 = vector.broadcast %cst_180 : f32 to vector<32x128xf32>
    %586 = arith.mulf %327, %585 : vector<32x128xf32>
    %587 = arith.mulf %586, %532 : vector<32x128xf32>
    %588 = arith.addf %584, %587 : vector<32x128xf32>
    %cst_181 = arith.constant 0.833333313 : f32
    %589 = vector.broadcast %cst_181 : f32 to vector<32x128xf32>
    %590 = arith.mulf %321, %589 : vector<32x128xf32>
    %591 = arith.mulf %590, %532 : vector<32x128xf32>
    %cst_182 = arith.constant -0.833333313 : f32
    %592 = vector.broadcast %cst_182 : f32 to vector<32x128xf32>
    %593 = arith.mulf %329, %592 : vector<32x128xf32>
    %594 = arith.mulf %593, %539 : vector<32x128xf32>
    %595 = arith.addf %591, %594 : vector<32x128xf32>
    %596 = tpu.concatenate %305, %546, %553, %560, %567, %574, %581, %588, %595 in 0 : vector<32x128xf32>, vector<32x128xf32>, vector<32x128xf32>, vector<32x128xf32>, vector<32x128xf32>, vector<32x128xf32>, vector<32x128xf32>, vector<32x128xf32>, vector<32x128xf32> -> vector<288x128xf32>
    %c0_183 = arith.constant 0 : index
    %c0_184 = arith.constant 0 : index
    %597 = vector.load %arg3[%c0_183, %c0_184] : memref<16x288xf32, #tpu.memory_space<vmem>>, vector<16x288xf32>
    %cst_185 = arith.constant dense<0.000000e+00> : vector<16x128xf32>
    %598 = tpu.matmul %597, %596, %cst_185 {dimension_numbers = #tpu.dot_dimension_numbers<[1], [0], [0], [1], [0, 0, 1, 1], [], []>} : vector<16x288xf32>, vector<288x128xf32>, vector<16x128xf32> -> vector<16x128xf32>
    %cst_186 = arith.constant 0.000000e+00 : f32
    %599 = vector.broadcast %cst_186 : f32 to vector<16x128xf32>
    %600 = arith.subf %599, %598 : vector<16x128xf32>
    %601 = math.exp %600 : vector<16x128xf32>
    %cst_187 = arith.constant 1.000000e+00 : f32
    %602 = vector.broadcast %cst_187 : f32 to vector<16x128xf32>
    %603 = arith.addf %602, %601 : vector<16x128xf32>
    %604 = arith.divf %598, %603 : vector<16x128xf32>
    %cst_188 = arith.constant -2.200000e+00 : f32
    %605 = vector.broadcast %cst_188 : f32 to vector<16x128xf32>
    %606 = arith.subf %598, %605 : vector<16x128xf32>
    %cst_189 = arith.constant -1.800000e+00 : f32
    %607 = vector.broadcast %cst_189 : f32 to vector<16x128xf32>
    %608 = arith.subf %598, %607 : vector<16x128xf32>
    %cst_190 = arith.constant -1.400000e+00 : f32
    %609 = vector.broadcast %cst_190 : f32 to vector<16x128xf32>
    %610 = arith.subf %598, %609 : vector<16x128xf32>
    %cst_191 = arith.constant -1.000000e+00 : f32
    %611 = vector.broadcast %cst_191 : f32 to vector<16x128xf32>
    %612 = arith.subf %598, %611 : vector<16x128xf32>
    %cst_192 = arith.constant -6.000000e-01 : f32
    %613 = vector.broadcast %cst_192 : f32 to vector<16x128xf32>
    %614 = arith.subf %598, %613 : vector<16x128xf32>
    %cst_193 = arith.constant -2.000000e-01 : f32
    %615 = vector.broadcast %cst_193 : f32 to vector<16x128xf32>
    %616 = arith.subf %598, %615 : vector<16x128xf32>
    %cst_194 = arith.constant 2.000000e-01 : f32
    %617 = vector.broadcast %cst_194 : f32 to vector<16x128xf32>
    %618 = arith.subf %598, %617 : vector<16x128xf32>
    %cst_195 = arith.constant 6.000000e-01 : f32
    %619 = vector.broadcast %cst_195 : f32 to vector<16x128xf32>
    %620 = arith.subf %598, %619 : vector<16x128xf32>
    %cst_196 = arith.constant 1.000000e+00 : f32
    %621 = vector.broadcast %cst_196 : f32 to vector<16x128xf32>
    %622 = arith.subf %598, %621 : vector<16x128xf32>
    %cst_197 = arith.constant 1.400000e+00 : f32
    %623 = vector.broadcast %cst_197 : f32 to vector<16x128xf32>
    %624 = arith.subf %598, %623 : vector<16x128xf32>
    %cst_198 = arith.constant 1.800000e+00 : f32
    %625 = vector.broadcast %cst_198 : f32 to vector<16x128xf32>
    %626 = arith.subf %598, %625 : vector<16x128xf32>
    %cst_199 = arith.constant 2.200000e+00 : f32
    %627 = vector.broadcast %cst_199 : f32 to vector<16x128xf32>
    %628 = arith.subf %598, %627 : vector<16x128xf32>
    %cst_200 = arith.constant -2.200000e+00 : f32
    %629 = vector.broadcast %cst_200 : f32 to vector<16x128xf32>
    %630 = arith.cmpf oge, %598, %629 : vector<16x128xf32>
    %cst_201 = arith.constant -1.800000e+00 : f32
    %631 = vector.broadcast %cst_201 : f32 to vector<16x128xf32>
    %632 = arith.cmpf olt, %598, %631 : vector<16x128xf32>
    %633 = arith.andi %630, %632 : vector<16x128xi1>
    %634 = arith.extui %633 : vector<16x128xi1> to vector<16x128xi32>
    %635 = arith.sitofp %634 : vector<16x128xi32> to vector<16x128xf32>
    %cst_202 = arith.constant -1.800000e+00 : f32
    %636 = vector.broadcast %cst_202 : f32 to vector<16x128xf32>
    %637 = arith.cmpf oge, %598, %636 : vector<16x128xf32>
    %cst_203 = arith.constant -1.400000e+00 : f32
    %638 = vector.broadcast %cst_203 : f32 to vector<16x128xf32>
    %639 = arith.cmpf olt, %598, %638 : vector<16x128xf32>
    %640 = arith.andi %637, %639 : vector<16x128xi1>
    %641 = arith.extui %640 : vector<16x128xi1> to vector<16x128xi32>
    %642 = arith.sitofp %641 : vector<16x128xi32> to vector<16x128xf32>
    %cst_204 = arith.constant -1.400000e+00 : f32
    %643 = vector.broadcast %cst_204 : f32 to vector<16x128xf32>
    %644 = arith.cmpf oge, %598, %643 : vector<16x128xf32>
    %cst_205 = arith.constant -1.000000e+00 : f32
    %645 = vector.broadcast %cst_205 : f32 to vector<16x128xf32>
    %646 = arith.cmpf olt, %598, %645 : vector<16x128xf32>
    %647 = arith.andi %644, %646 : vector<16x128xi1>
    %648 = arith.extui %647 : vector<16x128xi1> to vector<16x128xi32>
    %649 = arith.sitofp %648 : vector<16x128xi32> to vector<16x128xf32>
    %cst_206 = arith.constant -1.000000e+00 : f32
    %650 = vector.broadcast %cst_206 : f32 to vector<16x128xf32>
    %651 = arith.cmpf oge, %598, %650 : vector<16x128xf32>
    %cst_207 = arith.constant -6.000000e-01 : f32
    %652 = vector.broadcast %cst_207 : f32 to vector<16x128xf32>
    %653 = arith.cmpf olt, %598, %652 : vector<16x128xf32>
    %654 = arith.andi %651, %653 : vector<16x128xi1>
    %655 = arith.extui %654 : vector<16x128xi1> to vector<16x128xi32>
    %656 = arith.sitofp %655 : vector<16x128xi32> to vector<16x128xf32>
    %cst_208 = arith.constant -6.000000e-01 : f32
    %657 = vector.broadcast %cst_208 : f32 to vector<16x128xf32>
    %658 = arith.cmpf oge, %598, %657 : vector<16x128xf32>
    %cst_209 = arith.constant -2.000000e-01 : f32
    %659 = vector.broadcast %cst_209 : f32 to vector<16x128xf32>
    %660 = arith.cmpf olt, %598, %659 : vector<16x128xf32>
    %661 = arith.andi %658, %660 : vector<16x128xi1>
    %662 = arith.extui %661 : vector<16x128xi1> to vector<16x128xi32>
    %663 = arith.sitofp %662 : vector<16x128xi32> to vector<16x128xf32>
    %cst_210 = arith.constant -2.000000e-01 : f32
    %664 = vector.broadcast %cst_210 : f32 to vector<16x128xf32>
    %665 = arith.cmpf oge, %598, %664 : vector<16x128xf32>
    %cst_211 = arith.constant 2.000000e-01 : f32
    %666 = vector.broadcast %cst_211 : f32 to vector<16x128xf32>
    %667 = arith.cmpf olt, %598, %666 : vector<16x128xf32>
    %668 = arith.andi %665, %667 : vector<16x128xi1>
    %669 = arith.extui %668 : vector<16x128xi1> to vector<16x128xi32>
    %670 = arith.sitofp %669 : vector<16x128xi32> to vector<16x128xf32>
    %cst_212 = arith.constant 2.000000e-01 : f32
    %671 = vector.broadcast %cst_212 : f32 to vector<16x128xf32>
    %672 = arith.cmpf oge, %598, %671 : vector<16x128xf32>
    %cst_213 = arith.constant 6.000000e-01 : f32
    %673 = vector.broadcast %cst_213 : f32 to vector<16x128xf32>
    %674 = arith.cmpf olt, %598, %673 : vector<16x128xf32>
    %675 = arith.andi %672, %674 : vector<16x128xi1>
    %676 = arith.extui %675 : vector<16x128xi1> to vector<16x128xi32>
    %677 = arith.sitofp %676 : vector<16x128xi32> to vector<16x128xf32>
    %cst_214 = arith.constant 6.000000e-01 : f32
    %678 = vector.broadcast %cst_214 : f32 to vector<16x128xf32>
    %679 = arith.cmpf oge, %598, %678 : vector<16x128xf32>
    %cst_215 = arith.constant 1.000000e+00 : f32
    %680 = vector.broadcast %cst_215 : f32 to vector<16x128xf32>
    %681 = arith.cmpf olt, %598, %680 : vector<16x128xf32>
    %682 = arith.andi %679, %681 : vector<16x128xi1>
    %683 = arith.extui %682 : vector<16x128xi1> to vector<16x128xi32>
    %684 = arith.sitofp %683 : vector<16x128xi32> to vector<16x128xf32>
    %cst_216 = arith.constant 1.000000e+00 : f32
    %685 = vector.broadcast %cst_216 : f32 to vector<16x128xf32>
    %686 = arith.cmpf oge, %598, %685 : vector<16x128xf32>
    %cst_217 = arith.constant 1.400000e+00 : f32
    %687 = vector.broadcast %cst_217 : f32 to vector<16x128xf32>
    %688 = arith.cmpf olt, %598, %687 : vector<16x128xf32>
    %689 = arith.andi %686, %688 : vector<16x128xi1>
    %690 = arith.extui %689 : vector<16x128xi1> to vector<16x128xi32>
    %691 = arith.sitofp %690 : vector<16x128xi32> to vector<16x128xf32>
    %cst_218 = arith.constant 1.400000e+00 : f32
    %692 = vector.broadcast %cst_218 : f32 to vector<16x128xf32>
    %693 = arith.cmpf oge, %598, %692 : vector<16x128xf32>
    %cst_219 = arith.constant 1.800000e+00 : f32
    %694 = vector.broadcast %cst_219 : f32 to vector<16x128xf32>
    %695 = arith.cmpf olt, %598, %694 : vector<16x128xf32>
    %696 = arith.andi %693, %695 : vector<16x128xi1>
    %697 = arith.extui %696 : vector<16x128xi1> to vector<16x128xi32>
    %698 = arith.sitofp %697 : vector<16x128xi32> to vector<16x128xf32>
    %cst_220 = arith.constant 1.800000e+00 : f32
    %699 = vector.broadcast %cst_220 : f32 to vector<16x128xf32>
    %700 = arith.cmpf oge, %598, %699 : vector<16x128xf32>
    %cst_221 = arith.constant 2.200000e+00 : f32
    %701 = vector.broadcast %cst_221 : f32 to vector<16x128xf32>
    %702 = arith.cmpf olt, %598, %701 : vector<16x128xf32>
    %703 = arith.andi %700, %702 : vector<16x128xi1>
    %704 = arith.extui %703 : vector<16x128xi1> to vector<16x128xi32>
    %705 = arith.sitofp %704 : vector<16x128xi32> to vector<16x128xf32>
    %cst_222 = arith.constant 2.500000e+00 : f32
    %706 = vector.broadcast %cst_222 : f32 to vector<16x128xf32>
    %707 = arith.mulf %606, %706 : vector<16x128xf32>
    %708 = arith.mulf %707, %635 : vector<16x128xf32>
    %cst_223 = arith.constant -2.500000e+00 : f32
    %709 = vector.broadcast %cst_223 : f32 to vector<16x128xf32>
    %710 = arith.mulf %610, %709 : vector<16x128xf32>
    %711 = arith.mulf %710, %642 : vector<16x128xf32>
    %712 = arith.addf %708, %711 : vector<16x128xf32>
    %cst_224 = arith.constant 2.500000e+00 : f32
    %713 = vector.broadcast %cst_224 : f32 to vector<16x128xf32>
    %714 = arith.mulf %608, %713 : vector<16x128xf32>
    %715 = arith.mulf %714, %642 : vector<16x128xf32>
    %cst_225 = arith.constant -2.500000e+00 : f32
    %716 = vector.broadcast %cst_225 : f32 to vector<16x128xf32>
    %717 = arith.mulf %612, %716 : vector<16x128xf32>
    %718 = arith.mulf %717, %649 : vector<16x128xf32>
    %719 = arith.addf %715, %718 : vector<16x128xf32>
    %cst_226 = arith.constant 2.500000e+00 : f32
    %720 = vector.broadcast %cst_226 : f32 to vector<16x128xf32>
    %721 = arith.mulf %610, %720 : vector<16x128xf32>
    %722 = arith.mulf %721, %649 : vector<16x128xf32>
    %cst_227 = arith.constant -2.500000e+00 : f32
    %723 = vector.broadcast %cst_227 : f32 to vector<16x128xf32>
    %724 = arith.mulf %614, %723 : vector<16x128xf32>
    %725 = arith.mulf %724, %656 : vector<16x128xf32>
    %726 = arith.addf %722, %725 : vector<16x128xf32>
    %cst_228 = arith.constant 2.500000e+00 : f32
    %727 = vector.broadcast %cst_228 : f32 to vector<16x128xf32>
    %728 = arith.mulf %612, %727 : vector<16x128xf32>
    %729 = arith.mulf %728, %656 : vector<16x128xf32>
    %cst_229 = arith.constant -2.500000e+00 : f32
    %730 = vector.broadcast %cst_229 : f32 to vector<16x128xf32>
    %731 = arith.mulf %616, %730 : vector<16x128xf32>
    %732 = arith.mulf %731, %663 : vector<16x128xf32>
    %733 = arith.addf %729, %732 : vector<16x128xf32>
    %cst_230 = arith.constant 2.500000e+00 : f32
    %734 = vector.broadcast %cst_230 : f32 to vector<16x128xf32>
    %735 = arith.mulf %614, %734 : vector<16x128xf32>
    %736 = arith.mulf %735, %663 : vector<16x128xf32>
    %cst_231 = arith.constant -2.500000e+00 : f32
    %737 = vector.broadcast %cst_231 : f32 to vector<16x128xf32>
    %738 = arith.mulf %618, %737 : vector<16x128xf32>
    %739 = arith.mulf %738, %670 : vector<16x128xf32>
    %740 = arith.addf %736, %739 : vector<16x128xf32>
    %cst_232 = arith.constant 2.500000e+00 : f32
    %741 = vector.broadcast %cst_232 : f32 to vector<16x128xf32>
    %742 = arith.mulf %616, %741 : vector<16x128xf32>
    %743 = arith.mulf %742, %670 : vector<16x128xf32>
    %cst_233 = arith.constant -2.500000e+00 : f32
    %744 = vector.broadcast %cst_233 : f32 to vector<16x128xf32>
    %745 = arith.mulf %620, %744 : vector<16x128xf32>
    %746 = arith.mulf %745, %677 : vector<16x128xf32>
    %747 = arith.addf %743, %746 : vector<16x128xf32>
    %cst_234 = arith.constant 2.500000e+00 : f32
    %748 = vector.broadcast %cst_234 : f32 to vector<16x128xf32>
    %749 = arith.mulf %618, %748 : vector<16x128xf32>
    %750 = arith.mulf %749, %677 : vector<16x128xf32>
    %cst_235 = arith.constant -2.500000e+00 : f32
    %751 = vector.broadcast %cst_235 : f32 to vector<16x128xf32>
    %752 = arith.mulf %622, %751 : vector<16x128xf32>
    %753 = arith.mulf %752, %684 : vector<16x128xf32>
    %754 = arith.addf %750, %753 : vector<16x128xf32>
    %cst_236 = arith.constant 2.500000e+00 : f32
    %755 = vector.broadcast %cst_236 : f32 to vector<16x128xf32>
    %756 = arith.mulf %620, %755 : vector<16x128xf32>
    %757 = arith.mulf %756, %684 : vector<16x128xf32>
    %cst_237 = arith.constant -2.500000e+00 : f32
    %758 = vector.broadcast %cst_237 : f32 to vector<16x128xf32>
    %759 = arith.mulf %624, %758 : vector<16x128xf32>
    %760 = arith.mulf %759, %691 : vector<16x128xf32>
    %761 = arith.addf %757, %760 : vector<16x128xf32>
    %cst_238 = arith.constant 2.500000e+00 : f32
    %762 = vector.broadcast %cst_238 : f32 to vector<16x128xf32>
    %763 = arith.mulf %622, %762 : vector<16x128xf32>
    %764 = arith.mulf %763, %691 : vector<16x128xf32>
    %cst_239 = arith.constant -2.500000e+00 : f32
    %765 = vector.broadcast %cst_239 : f32 to vector<16x128xf32>
    %766 = arith.mulf %626, %765 : vector<16x128xf32>
    %767 = arith.mulf %766, %698 : vector<16x128xf32>
    %768 = arith.addf %764, %767 : vector<16x128xf32>
    %cst_240 = arith.constant 2.500000e+00 : f32
    %769 = vector.broadcast %cst_240 : f32 to vector<16x128xf32>
    %770 = arith.mulf %624, %769 : vector<16x128xf32>
    %771 = arith.mulf %770, %698 : vector<16x128xf32>
    %cst_241 = arith.constant -2.500000e+00 : f32
    %772 = vector.broadcast %cst_241 : f32 to vector<16x128xf32>
    %773 = arith.mulf %628, %772 : vector<16x128xf32>
    %774 = arith.mulf %773, %705 : vector<16x128xf32>
    %775 = arith.addf %771, %774 : vector<16x128xf32>
    %cst_242 = arith.constant 1.250000e+00 : f32
    %776 = vector.broadcast %cst_242 : f32 to vector<16x128xf32>
    %777 = arith.mulf %606, %776 : vector<16x128xf32>
    %778 = arith.mulf %777, %712 : vector<16x128xf32>
    %cst_243 = arith.constant -1.250000e+00 : f32
    %779 = vector.broadcast %cst_243 : f32 to vector<16x128xf32>
    %780 = arith.mulf %612, %779 : vector<16x128xf32>
    %781 = arith.mulf %780, %719 : vector<16x128xf32>
    %782 = arith.addf %778, %781 : vector<16x128xf32>
    %cst_244 = arith.constant 1.250000e+00 : f32
    %783 = vector.broadcast %cst_244 : f32 to vector<16x128xf32>
    %784 = arith.mulf %608, %783 : vector<16x128xf32>
    %785 = arith.mulf %784, %719 : vector<16x128xf32>
    %cst_245 = arith.constant -1.250000e+00 : f32
    %786 = vector.broadcast %cst_245 : f32 to vector<16x128xf32>
    %787 = arith.mulf %614, %786 : vector<16x128xf32>
    %788 = arith.mulf %787, %726 : vector<16x128xf32>
    %789 = arith.addf %785, %788 : vector<16x128xf32>
    %cst_246 = arith.constant 1.250000e+00 : f32
    %790 = vector.broadcast %cst_246 : f32 to vector<16x128xf32>
    %791 = arith.mulf %610, %790 : vector<16x128xf32>
    %792 = arith.mulf %791, %726 : vector<16x128xf32>
    %cst_247 = arith.constant -1.250000e+00 : f32
    %793 = vector.broadcast %cst_247 : f32 to vector<16x128xf32>
    %794 = arith.mulf %616, %793 : vector<16x128xf32>
    %795 = arith.mulf %794, %733 : vector<16x128xf32>
    %796 = arith.addf %792, %795 : vector<16x128xf32>
    %cst_248 = arith.constant 1.250000e+00 : f32
    %797 = vector.broadcast %cst_248 : f32 to vector<16x128xf32>
    %798 = arith.mulf %612, %797 : vector<16x128xf32>
    %799 = arith.mulf %798, %733 : vector<16x128xf32>
    %cst_249 = arith.constant -1.250000e+00 : f32
    %800 = vector.broadcast %cst_249 : f32 to vector<16x128xf32>
    %801 = arith.mulf %618, %800 : vector<16x128xf32>
    %802 = arith.mulf %801, %740 : vector<16x128xf32>
    %803 = arith.addf %799, %802 : vector<16x128xf32>
    %cst_250 = arith.constant 1.250000e+00 : f32
    %804 = vector.broadcast %cst_250 : f32 to vector<16x128xf32>
    %805 = arith.mulf %614, %804 : vector<16x128xf32>
    %806 = arith.mulf %805, %740 : vector<16x128xf32>
    %cst_251 = arith.constant -1.250000e+00 : f32
    %807 = vector.broadcast %cst_251 : f32 to vector<16x128xf32>
    %808 = arith.mulf %620, %807 : vector<16x128xf32>
    %809 = arith.mulf %808, %747 : vector<16x128xf32>
    %810 = arith.addf %806, %809 : vector<16x128xf32>
    %cst_252 = arith.constant 1.250000e+00 : f32
    %811 = vector.broadcast %cst_252 : f32 to vector<16x128xf32>
    %812 = arith.mulf %616, %811 : vector<16x128xf32>
    %813 = arith.mulf %812, %747 : vector<16x128xf32>
    %cst_253 = arith.constant -1.250000e+00 : f32
    %814 = vector.broadcast %cst_253 : f32 to vector<16x128xf32>
    %815 = arith.mulf %622, %814 : vector<16x128xf32>
    %816 = arith.mulf %815, %754 : vector<16x128xf32>
    %817 = arith.addf %813, %816 : vector<16x128xf32>
    %cst_254 = arith.constant 1.250000e+00 : f32
    %818 = vector.broadcast %cst_254 : f32 to vector<16x128xf32>
    %819 = arith.mulf %618, %818 : vector<16x128xf32>
    %820 = arith.mulf %819, %754 : vector<16x128xf32>
    %cst_255 = arith.constant -1.250000e+00 : f32
    %821 = vector.broadcast %cst_255 : f32 to vector<16x128xf32>
    %822 = arith.mulf %624, %821 : vector<16x128xf32>
    %823 = arith.mulf %822, %761 : vector<16x128xf32>
    %824 = arith.addf %820, %823 : vector<16x128xf32>
    %cst_256 = arith.constant 1.250000e+00 : f32
    %825 = vector.broadcast %cst_256 : f32 to vector<16x128xf32>
    %826 = arith.mulf %620, %825 : vector<16x128xf32>
    %827 = arith.mulf %826, %761 : vector<16x128xf32>
    %cst_257 = arith.constant -1.250000e+00 : f32
    %828 = vector.broadcast %cst_257 : f32 to vector<16x128xf32>
    %829 = arith.mulf %626, %828 : vector<16x128xf32>
    %830 = arith.mulf %829, %768 : vector<16x128xf32>
    %831 = arith.addf %827, %830 : vector<16x128xf32>
    %cst_258 = arith.constant 1.250000e+00 : f32
    %832 = vector.broadcast %cst_258 : f32 to vector<16x128xf32>
    %833 = arith.mulf %622, %832 : vector<16x128xf32>
    %834 = arith.mulf %833, %768 : vector<16x128xf32>
    %cst_259 = arith.constant -1.250000e+00 : f32
    %835 = vector.broadcast %cst_259 : f32 to vector<16x128xf32>
    %836 = arith.mulf %628, %835 : vector<16x128xf32>
    %837 = arith.mulf %836, %775 : vector<16x128xf32>
    %838 = arith.addf %834, %837 : vector<16x128xf32>
    %cst_260 = arith.constant 0.833333313 : f32
    %839 = vector.broadcast %cst_260 : f32 to vector<16x128xf32>
    %840 = arith.mulf %606, %839 : vector<16x128xf32>
    %841 = arith.mulf %840, %782 : vector<16x128xf32>
    %cst_261 = arith.constant -0.833333313 : f32
    %842 = vector.broadcast %cst_261 : f32 to vector<16x128xf32>
    %843 = arith.mulf %614, %842 : vector<16x128xf32>
    %844 = arith.mulf %843, %789 : vector<16x128xf32>
    %845 = arith.addf %841, %844 : vector<16x128xf32>
    %cst_262 = arith.constant 0.833333313 : f32
    %846 = vector.broadcast %cst_262 : f32 to vector<16x128xf32>
    %847 = arith.mulf %608, %846 : vector<16x128xf32>
    %848 = arith.mulf %847, %789 : vector<16x128xf32>
    %cst_263 = arith.constant -0.833333313 : f32
    %849 = vector.broadcast %cst_263 : f32 to vector<16x128xf32>
    %850 = arith.mulf %616, %849 : vector<16x128xf32>
    %851 = arith.mulf %850, %796 : vector<16x128xf32>
    %852 = arith.addf %848, %851 : vector<16x128xf32>
    %cst_264 = arith.constant 0.833333313 : f32
    %853 = vector.broadcast %cst_264 : f32 to vector<16x128xf32>
    %854 = arith.mulf %610, %853 : vector<16x128xf32>
    %855 = arith.mulf %854, %796 : vector<16x128xf32>
    %cst_265 = arith.constant -0.833333313 : f32
    %856 = vector.broadcast %cst_265 : f32 to vector<16x128xf32>
    %857 = arith.mulf %618, %856 : vector<16x128xf32>
    %858 = arith.mulf %857, %803 : vector<16x128xf32>
    %859 = arith.addf %855, %858 : vector<16x128xf32>
    %cst_266 = arith.constant 0.833333313 : f32
    %860 = vector.broadcast %cst_266 : f32 to vector<16x128xf32>
    %861 = arith.mulf %612, %860 : vector<16x128xf32>
    %862 = arith.mulf %861, %803 : vector<16x128xf32>
    %cst_267 = arith.constant -0.833333313 : f32
    %863 = vector.broadcast %cst_267 : f32 to vector<16x128xf32>
    %864 = arith.mulf %620, %863 : vector<16x128xf32>
    %865 = arith.mulf %864, %810 : vector<16x128xf32>
    %866 = arith.addf %862, %865 : vector<16x128xf32>
    %cst_268 = arith.constant 0.833333313 : f32
    %867 = vector.broadcast %cst_268 : f32 to vector<16x128xf32>
    %868 = arith.mulf %614, %867 : vector<16x128xf32>
    %869 = arith.mulf %868, %810 : vector<16x128xf32>
    %cst_269 = arith.constant -0.833333313 : f32
    %870 = vector.broadcast %cst_269 : f32 to vector<16x128xf32>
    %871 = arith.mulf %622, %870 : vector<16x128xf32>
    %872 = arith.mulf %871, %817 : vector<16x128xf32>
    %873 = arith.addf %869, %872 : vector<16x128xf32>
    %cst_270 = arith.constant 0.833333313 : f32
    %874 = vector.broadcast %cst_270 : f32 to vector<16x128xf32>
    %875 = arith.mulf %616, %874 : vector<16x128xf32>
    %876 = arith.mulf %875, %817 : vector<16x128xf32>
    %cst_271 = arith.constant -0.833333313 : f32
    %877 = vector.broadcast %cst_271 : f32 to vector<16x128xf32>
    %878 = arith.mulf %624, %877 : vector<16x128xf32>
    %879 = arith.mulf %878, %824 : vector<16x128xf32>
    %880 = arith.addf %876, %879 : vector<16x128xf32>
    %cst_272 = arith.constant 0.833333313 : f32
    %881 = vector.broadcast %cst_272 : f32 to vector<16x128xf32>
    %882 = arith.mulf %618, %881 : vector<16x128xf32>
    %883 = arith.mulf %882, %824 : vector<16x128xf32>
    %cst_273 = arith.constant -0.833333313 : f32
    %884 = vector.broadcast %cst_273 : f32 to vector<16x128xf32>
    %885 = arith.mulf %626, %884 : vector<16x128xf32>
    %886 = arith.mulf %885, %831 : vector<16x128xf32>
    %887 = arith.addf %883, %886 : vector<16x128xf32>
    %cst_274 = arith.constant 0.833333313 : f32
    %888 = vector.broadcast %cst_274 : f32 to vector<16x128xf32>
    %889 = arith.mulf %620, %888 : vector<16x128xf32>
    %890 = arith.mulf %889, %831 : vector<16x128xf32>
    %cst_275 = arith.constant -0.833333313 : f32
    %891 = vector.broadcast %cst_275 : f32 to vector<16x128xf32>
    %892 = arith.mulf %628, %891 : vector<16x128xf32>
    %893 = arith.mulf %892, %838 : vector<16x128xf32>
    %894 = arith.addf %890, %893 : vector<16x128xf32>
    %895 = tpu.concatenate %604, %845, %852, %859, %866, %873, %880, %887, %894 in 0 : vector<16x128xf32>, vector<16x128xf32>, vector<16x128xf32>, vector<16x128xf32>, vector<16x128xf32>, vector<16x128xf32>, vector<16x128xf32>, vector<16x128xf32>, vector<16x128xf32> -> vector<144x128xf32>
    %c0_276 = arith.constant 0 : index
    %c0_277 = arith.constant 0 : index
    %896 = vector.load %arg4[%c0_276, %c0_277] : memref<4x144xf32, #tpu.memory_space<vmem>>, vector<4x144xf32>
    %cst_278 = arith.constant dense<0.000000e+00> : vector<4x128xf32>
    %897 = tpu.matmul %896, %895, %cst_278 {dimension_numbers = #tpu.dot_dimension_numbers<[1], [0], [0], [1], [0, 0, 1, 1], [], []>} : vector<4x144xf32>, vector<144x128xf32>, vector<4x128xf32> -> vector<4x128xf32>
    %c0_279 = arith.constant 0 : index
    %c0_280 = arith.constant 0 : index
    %898 = vector.load %arg5[%c0_279, %c0_280] : memref<4x128xf32, #tpu.memory_space<vmem>>, vector<4x128xf32>
    tpu.vector_store %arg5[%c0_279, %c0_280], %897 {strides = array<i32>} : memref<4x128xf32, #tpu.memory_space<vmem>>, vector<4x128xf32>,
    return
  }
  func.func @transform_0(%arg0: i32) -> (i32, i32) {
    %c0_i32 = arith.constant 0 : i32
    %c0_i32_0 = arith.constant 0 : i32
    return %c0_i32, %arg0 : i32, i32
  }
  func.func @transform_1(%arg0: i32) -> (i32, i32) {
    %c0_i32 = arith.constant 0 : i32
    %c0_i32_0 = arith.constant 0 : i32
    %c0_i32_1 = arith.constant 0 : i32
    return %c0_i32, %c0_i32_0 : i32, i32
  }
  func.func @transform_2(%arg0: i32) -> (i32, i32) {
    %c0_i32 = arith.constant 0 : i32
    %c0_i32_0 = arith.constant 0 : i32
    %c0_i32_1 = arith.constant 0 : i32
    return %c0_i32, %c0_i32_0 : i32, i32
  }
  func.func @transform_3(%arg0: i32) -> (i32, i32) {
    %c0_i32 = arith.constant 0 : i32
    %c0_i32_0 = arith.constant 0 : i32
    %c0_i32_1 = arith.constant 0 : i32
    return %c0_i32, %c0_i32_0 : i32, i32
  }
  func.func @transform_4(%arg0: i32) -> (i32, i32) {
    %c0_i32 = arith.constant 0 : i32
    %c0_i32_0 = arith.constant 0 : i32
    return %c0_i32, %arg0 : i32, i32
  }
}

</mosaic_0001>

<bundles_post_ra>
// kernel: kan_forward.1
= control target key start
LH: loop header
LB: loop body
LE: loop exit
PB: predicated region body
PF: predicated region fallthrough
CT: control target
= control target key end

     0   :  { %9 = vsyncpa [#allocation3], 0  ;;  %s3490_s0 = inlined_call_operand.vmem [shape: f32[8,128], index: 0, kind: input, shape index: {}]   ;;  %s3491_s1 = inlined_call_operand.hbm [shape: f32[32,72], index: 1, kind: input, shape index: {}]   ;;  %s3492_s2 = inlined_call_operand.hbm [shape: f32[16,288], index: 2, kind: input, shape index: {}]   ;;  %s3493_s3 = inlined_call_operand.vmem [shape: f32[4,144], index: 3, kind: input, shape index: {}]   ;;  %s3494_s4 = inlined_call_operand.vmem [shape: f32[4,128], index: 4, kind: output, shape index: {}]  }
   0x1   :  { %10 = vsyncpa [#allocation5], 0  ;;  %s2278_s15 = smov [#allocation2]   ;;  %s2230_s19 = scalar_lea.hbm %s3491_s1, 512 }
   0x2   :  { %s18_s16 = sshll.u32 %s2278_s15, 4  ;;  %p2231_p0 = scmp.ne.s32.totalorder %s3491_s1, %s2230_s19  ;;  %s19_s16 = int_to_ptr.vmem [resolvable:$true] %s18_s16 }
   0x3   :  { %p2234_p1 = scmp.lt.u32.totalorder %s2230_s19, %s3491_s1 }
   0x5   :  { %p2236_p2 = pnand %p2234_p1, %p2231_p0 }
   0x7   :  { %2239 = shalt.err (!%p2236_p2)
}
   0x8   :  { %s2240_s24 = scalar_lea.vmem %s19_s16, 512  ;;  %p2245_p4 = scmp.lt.s32.totalorder %s19_s16, %s19_s16 }
   0x9   :  { %p2241_p3 = scmp.ne.s32.totalorder %s19_s16, %s2240_s24  ;;  %p2246_p5 = scmp.lt.s32.totalorder %s2240_s24, %s2240_s24 }
   0xb   :  { %p2247_p6 = por %p2246_p5, %p2245_p4 }
   0xd   :  { %p2248_p7 = pnand %p2247_p6, %p2241_p3 }
   0xf   :  { %2251 = shalt.err (!%p2248_p7)
}
  0x10   :  { %s2279_s25 = smov 128   ;;  %s2280_s26 = smov 8  }
  0x11   :  { %24 = dma.hbm_to_vmem [thread:$0]  %s3491_s1, 512, %s19_s16, [#allocation3], %s2279_s25, %s2279_s25, %s2280_s26  }
  0x12   :  { %s2281_s29 = smov [#allocation4]   ;;  %s2252_s7 = scalar_lea.hbm %s3492_s2, 768 }
  0x13   :  { %s30_s30 = sshll.u32 %s2281_s29, 4  ;;  %p2253_p8 = scmp.ne.s32.totalorder %s3492_s2, %s2252_s7  ;;  %s31_s30 = int_to_ptr.vmem [resolvable:$true] %s30_s30 }
  0x14   :  { %p2256_p9 = scmp.lt.u32.totalorder %s2252_s7, %s3492_s2 }
  0x16   :  { %p2258_p10 = pnand %p2256_p9, %p2253_p8 }
  0x18   :  { %2261 = shalt.err (!%p2258_p10)
}
  0x19   :  { %s2262_s12 = scalar_lea.vmem %s31_s30, 768  ;;  %p2267_p12 = scmp.lt.s32.totalorder %s31_s30, %s31_s30 }
  0x1a   :  { %p2263_p11 = scmp.ne.s32.totalorder %s31_s30, %s2262_s12  ;;  %p2268_p13 = scmp.lt.s32.totalorder %s2262_s12, %s2262_s12 }
  0x1c   :  { %p2269_p0 = por %p2268_p13, %p2267_p12 }
  0x1e   :  { %p2270_p1 = pnand %p2269_p0, %p2263_p11 }
  0x20   :  { %2273 = shalt.err (!%p2270_p1)
}
  0x21   :  { %s2282_s1 = smov 384   ;;  %s2283_s13 = smov 24  }
  0x22   :  { %36 = dma.hbm_to_vmem [thread:$0]  %s3492_s2, 768, %s31_s30, [#allocation5], %s2282_s1, %s2282_s1, %s2283_s13  }
  0x23   :  { %2274 = dma.done.wait [#allocation3], 512  }
  0x24   :  { %2275 = vsyncadd [#allocation3], 4294966784 }
  0x25   :  { %2276 = dma.done.wait [#allocation5], 768  }
  0x26   :  { %2277 = vsyncadd [#allocation5], 4294966528  ;;  %vm258_vm0 = vcmask 588800   ;;  %v2338_v0 = vld [vmem:[%s3490_s0] sm:$0xff]  ;;  %v3495_v9 = vmov 0.0  }
  0x27   :  { %v254_v1 = vld [vmem:[#allocation2] sm:$0xff]  ;;  %v46_v2 = vsub.f32 0.0, %v2338_v0  ;;  %v1850_v3 = vadd.f32 2.2, %v2338_v0  ;;  %v2343_v4 = vadd.f32 1.8, %v2338_v0 }
  0x28   :  { %v2346_v5 = vadd.f32 1.0, %v2338_v0  ;;  %2093 = vmatprep.mubr.msk.f32.mxu1 %vm258_vm0, %v254_v1  ;;  %v2350_v6 = vadd.f32 1.4, %v2338_v0  ;;  %v2353_v7 = vadd.f32 0.6, %v2338_v0  ;;  %vm75_vm7 = vcmp.lt.f32.partialorder %v2338_v0, -1.0 }
  0x29   :  { %vm64_vm1 = vcmp.ge.f32.partialorder %v2338_v0, -2.2  ;;  %v47_v8 = vmul.f32 1.442695, %v46_v2  ;;  %vm65_vm2 = vcmp.lt.f32.partialorder %v2338_v0, -1.8 }
  0x2a   :  { %vm69_vm3 = vcmp.ge.f32.partialorder %v2338_v0, -1.8  ;;  %vm66_vm4 = vmand %vm64_vm1, %vm65_vm2  ;;  %vm70_vm5 = vcmp.lt.f32.partialorder %v2338_v0, -1.4  ;;  %vm74_vm6 = vcmp.ge.f32.partialorder %v2338_v0, -1.4 }
  0x2b   :  { %vm79_vm8 = vcmp.ge.f32.partialorder %v2338_v0, -1.0  ;;  %2202 = vpow2.f32 %v47_v8  ;;  %v1862_v10 = vsel %vm66_vm4, 1.0, %v3495_v9  ;;  %vm71_vm9 = vmand %vm69_vm3, %vm70_vm5  ;;  %vm80_vm10 = vcmp.lt.f32.partialorder %v2338_v0, -0.6 }
  0x2c   :  { %v119_v11 = vmul.f32 2.5, %v1850_v3  ;;  %v1863_v12 = vsel %vm71_vm9, 1.0, %v3495_v9  ;;  %vm76_vm11 = vmand %vm74_vm6, %vm75_vm7  ;;  %v121_v13 = vmul.f32 -2.5, %v2350_v6  ;;  %v124_v14 = vmul.f32 2.5, %v2343_v4 }
  0x2d   :  { %v126_v15 = vmul.f32 -2.5, %v2346_v5  ;;  %v1864_v16 = vsel %vm76_vm11, 1.0, %v3495_v9  ;;  %vm81_vm12 = vmand %vm79_vm8, %vm80_vm10  ;;  %v129_v18 = vmul.f32 2.5, %v2350_v6  ;;  %v131_v19 = vmul.f32 -2.5, %v2353_v7 }
  0x2e   :  { %v120_v17 = vmul.f32 %v1862_v10, %v119_v11  ;;  %v1865_v20 = vsel %vm81_vm12, 1.0, %v3495_v9  ;;  %v122_v21 = vmul.f32 %v1863_v12, %v121_v13  ;;  %v125_v22 = vmul.f32 %v1863_v12, %v124_v14 }
  0x2f   :  { %v127_v23 = vmul.f32 %v1864_v16, %v126_v15  ;;  %v130_v24 = vmul.f32 %v1864_v16, %v129_v18  ;;  %v132_v25 = vmul.f32 %v1865_v20, %v131_v19  ;;  %v134_v26 = vmul.f32 2.5, %v2346_v5 }
  0x30   :  { %v169_v27 = vmul.f32 1.25, %v1850_v3  ;;  %v123_v28 = vadd.f32 %v122_v21, %v120_v17  ;;  %v171_v30 = vmul.f32 -1.25, %v2346_v5  ;;  %v174_v31 = vmul.f32 1.25, %v2343_v4 }
  0x31   :  { %v128_v29 = vadd.f32 %v127_v23, %v125_v22  ;;  %v133_v32 = vadd.f32 %v132_v25, %v130_v24  ;;  %v135_v33 = vmul.f32 %v1865_v20, %v134_v26  ;;  %v176_v34 = vmul.f32 -1.25, %v2353_v7 }
  0x32   :  { %v214_v35 = vmul.f32 0.8333333, %v1850_v3  ;;  %v170_v36 = vmul.f32 %v169_v27, %v123_v28  ;;  %v216_v39 = vmul.f32 -0.8333333, %v2353_v7  ;;  %v2378_v41 = vadd.f32 0.2, %v2338_v0 }
  0x33   :  { %v172_v37 = vmul.f32 %v171_v30, %v128_v29  ;;  %v175_v38 = vmul.f32 %v174_v31, %v128_v29  ;;  %v177_v40 = vmul.f32 %v176_v34, %v133_v32  ;;  %v2381_v42 = vadd.f32 -0.2, %v2338_v0 }
  0x34   :  { %vm84_vm13 = vcmp.ge.f32.partialorder %v2338_v0, -0.6  ;;  %vm85_vm14 = vcmp.lt.f32.partialorder %v2338_v0, -0.2  ;;  %vm89_vm15 = vcmp.ge.f32.partialorder %v2338_v0, -0.2 }
  0x35   :  { %v173_v43 = vadd.f32 %v172_v37, %v170_v36  ;;  %vm90_vm1 = vcmp.lt.f32.partialorder %v2338_v0, 0.2  ;;  %v2203_v44 = vpop.eup %2202  ;;  %v178_v45 = vadd.f32 %v177_v40, %v175_v38  ;;  %vm86_vm2 = vmand %vm84_vm13, %vm85_vm14  ;;  %v136_v46 = vmul.f32 -2.5, %v2378_v41 }
  0x36   :  { %v139_v47 = vmul.f32 2.5, %v2353_v7  ;;  %v141_v48 = vmul.f32 -2.5, %v2381_v42  ;;  %v49_v49 = vadd.f32 1.0, %v2203_v44  ;;  %v1866_v51 = vsel %vm86_vm2, 1.0, %v3495_v9  ;;  %vm91_vm3 = vmand %vm89_vm15, %vm90_vm1 }
  0x37   :  { %v215_v50 = vmul.f32 %v214_v35, %v173_v43  ;;  %v179_v52 = vmul.f32 1.25, %v2350_v6  ;;  %v217_v53 = vmul.f32 %v216_v39, %v178_v45  ;;  %v1867_v54 = vsel %vm91_vm3, 1.0, %v3495_v9 }
  0x38   :  { %v137_v55 = vmul.f32 %v1866_v51, %v136_v46  ;;  %v140_v56 = vmul.f32 %v1866_v51, %v139_v47  ;;  %2204 = vrcp.f32 %v49_v49  ;;  %v142_v57 = vmul.f32 %v1867_v54, %v141_v48 }
  0x39   :  { %v180_v58 = vmul.f32 %v179_v52, %v133_v32  ;;  %v181_v59 = vmul.f32 -1.25, %v2378_v41  ;;  %v218_v60 = vadd.f32 %v217_v53, %v215_v50  ;;  %v184_v62 = vmul.f32 1.25, %v2346_v5 }
  0x3a   :  { %v138_v61 = vadd.f32 %v137_v55, %v135_v33  ;;  %v186_v63 = vmul.f32 -1.25, %v2381_v42  ;;  %v143_v1 = vadd.f32 %v142_v57, %v140_v56  ;;  %v219_v2 = vmul.f32 0.8333333, %v2343_v4 }
  0x3b   :  { %v221_v3 = vmul.f32 -0.8333333, %v2378_v41  ;;  %v224_v8 = vmul.f32 0.8333333, %v2350_v6  ;;  %v226_v12 = vmul.f32 -0.8333333, %v2381_v42 }
  0x3c   :  { %v182_v10 = vmul.f32 %v181_v59, %v138_v61  ;;  %v185_v11 = vmul.f32 %v184_v62, %v138_v61  ;;  %v2401_v13 = vadd.f32 -0.6, %v2338_v0  ;;  %v187_v14 = vmul.f32 %v186_v63, %v143_v1 }
  0x3d   :  { %v220_v15 = vmul.f32 %v219_v2, %v178_v45  ;;  %v2404_v16 = vadd.f32 -1.0, %v2338_v0  ;;  %vm94_vm4 = vcmp.ge.f32.partialorder %v2338_v0, 0.2  ;;  %vm95_vm5 = vcmp.lt.f32.partialorder %v2338_v0, 0.6 }
  0x3e   :  { %v183_v17 = vadd.f32 %v182_v10, %v180_v58  ;;  %vm99_vm6 = vcmp.ge.f32.partialorder %v2338_v0, 0.6  ;;  %vm100_vm7 = vcmp.lt.f32.partialorder %v2338_v0, 1.0  ;;  %v188_v4 = vadd.f32 %v187_v14, %v185_v11  ;;  %vm96_vm8 = vmand %vm94_vm4, %vm95_vm5 }
  0x3f   :  { %v144_v6 = vmul.f32 2.5, %v2378_v41  ;;  %v146_v18 = vmul.f32 -2.5, %v2401_v13  ;;  %v149_v19 = vmul.f32 2.5, %v2381_v42  ;;  %v1868_v22 = vsel %vm96_vm8, 1.0, %v3495_v9  ;;  %vm101_vm9 = vmand %vm99_vm6, %vm100_vm7 }
  0x40   :  { %v222_v20 = vmul.f32 %v221_v3, %v183_v17  ;;  %v225_v21 = vmul.f32 %v224_v8, %v183_v17  ;;  %v151_v23 = vmul.f32 -2.5, %v2404_v16  ;;  %v227_v24 = vmul.f32 %v226_v12, %v188_v4 }
  0x41   :  { %v1869_v25 = vsel %vm101_vm9, 1.0, %v3495_v9  ;;  %v145_v26 = vmul.f32 %v1867_v54, %v144_v6  ;;  %v147_v27 = vmul.f32 %v1868_v22, %v146_v18  ;;  %v150_v29 = vmul.f32 %v1868_v22, %v149_v19 }
  0x42   :  { %v223_v28 = vadd.f32 %v222_v20, %v220_v15  ;;  %v152_v30 = vmul.f32 %v1869_v25, %v151_v23  ;;  %v189_v31 = vmul.f32 1.25, %v2353_v7  ;;  %v2205_v32 = vpop.eup %2204  ;;  %v228_v33 = vadd.f32 %v227_v24, %v225_v21 }
  0x43   :  { %v148_v34 = vadd.f32 %v147_v27, %v145_v26  ;;  %v191_v35 = vmul.f32 -1.25, %v2401_v13  ;;  %v194_v36 = vmul.f32 1.25, %v2378_v41  ;;  %v51_v37 = vmul.f32 %v2205_v32, %v2338_v0 }
  0x44   :  { %v153_v38 = vadd.f32 %v152_v30, %v150_v29  ;;  %v190_v39 = vmul.f32 %v189_v31, %v143_v1  ;;  %v196_v40 = vmul.f32 -1.25, %v2404_v16  ;;  %v2114_v43 = vpack.c.bf16 %v228_v33, %v223_v28 }
  0x45   :  { %v192_v44 = vmul.f32 %v191_v35, %v148_v34  ;;  %v195_v45 = vmul.f32 %v194_v36, %v148_v34  ;;  %v229_v46 = vmul.f32 0.8333333, %v2346_v5  ;;  %v2110_v47 = vpack.c.bf16 %v218_v60, %v51_v37 }
  0x46   :  { %v197_v48 = vmul.f32 %v196_v40, %v153_v38  ;;  %v231_v49 = vmul.f32 -0.8333333, %v2401_v13  ;;  %v234_v50 = vmul.f32 0.8333333, %v2353_v7  ;;  %v236_v53 = vmul.f32 -0.8333333, %v2404_v16 }
  0x47   :  { %v193_v51 = vadd.f32 %v192_v44, %v190_v39  ;;  %v230_v52 = vmul.f32 %v229_v46, %v188_v4  ;;  %v1859_v54 = vadd.f32 -1.4, %v2338_v0  ;;  %2111 = vmatprep.subr.bf16.mxu1 %v2110_v47  ;;  %v1860_v56 = vadd.f32 -1.8, %v2338_v0 }
  0x48   :  { %v198_v55 = vadd.f32 %v197_v48, %v195_v45  ;;  %vm104_vm10 = vcmp.ge.f32.partialorder %v2338_v0, 1.0  ;;  %vm105_vm11 = vcmp.lt.f32.partialorder %v2338_v0, 1.4  ;;  %2113 = vmatpush3.bf16.msra.mxu1 %v2110_v47  ;;  %vm109_vm13 = vcmp.ge.f32.partialorder %v2338_v0, 1.4 }
  0x49   :  { %v232_v5 = vmul.f32 %v231_v49, %v193_v51  ;;  %v235_v57 = vmul.f32 %v234_v50, %v193_v51  ;;  %vm106_vm12 = vmand %vm104_vm10, %vm105_vm11  ;;  %vm110_vm14 = vcmp.lt.f32.partialorder %v2338_v0, 1.8  ;;  %2115 = vmatprep.subr.bf16.mxu1 %v2114_v43  ;;  %v154_v59 = vmul.f32 2.5, %v2401_v13  ;;  %v255_v51 = vld [vmem:[#allocation2 + $0x8] sm:$0xff] }
  0x4a   :  { %v237_v7 = vmul.f32 %v236_v53, %v198_v55  ;;  %v1870_v58 = vsel %vm106_vm12, 1.0, %v3495_v9  ;;  %vm111_vm15 = vmand %vm109_vm13, %vm110_vm14  ;;  %v156_v60 = vmul.f32 -2.5, %v1859_v54  ;;  %v159_v63 = vmul.f32 2.5, %v2404_v16  ;;  %v257_v53 = vld [vmem:[#allocation2 + $0x18] sm:$0xff] }
  0x4b   :  { %v233_v61 = vadd.f32 %v232_v5, %v230_v52  ;;  %v1871_v62 = vsel %vm111_vm15, 1.0, %v3495_v9  ;;  %v161_v1 = vmul.f32 -2.5, %v1860_v56  ;;  %v155_v3 = vmul.f32 %v1869_v25, %v154_v59  ;;  %v256_v52 = vld [vmem:[#allocation2 + $0x10] sm:$0xff] }
  0x4c   :  { %v238_v2 = vadd.f32 %v237_v7, %v235_v57  ;;  %v157_v8 = vmul.f32 %v1870_v58, %v156_v60  ;;  %v199_v10 = vmul.f32 1.25, %v2381_v42  ;;  %2117 = vmatpush3.bf16.msra.mxu1 %v2114_v43  ;;  %v160_v11 = vmul.f32 %v1870_v58, %v159_v63 }
  0x4d   :  { %v162_v12 = vmul.f32 %v1871_v62, %v161_v1  ;;  %v201_v14 = vmul.f32 -1.25, %v1859_v54  ;;  %v204_v15 = vmul.f32 1.25, %v2401_v13  ;;  %v206_v18 = vmul.f32 -1.25, %v1860_v56 }
  0x4e   :  { %v2118_v17 = vpack.c.bf16 %v238_v2, %v233_v61  ;;  %v158_v4 = vadd.f32 %v157_v8, %v155_v3  ;;  %v200_v6 = vmul.f32 %v199_v10, %v153_v38  ;;  %v239_v20 = vmul.f32 0.8333333, %v2378_v41 }
  0x4f   :  { %v163_v19 = vadd.f32 %v162_v12, %v160_v11  ;;  %v241_v21 = vmul.f32 -0.8333333, %v1859_v54  ;;  %v244_v22 = vmul.f32 0.8333333, %v2381_v42  ;;  %v246_v25 = vmul.f32 -0.8333333, %v1860_v56 }
  0x50   :  { %2119 = vmatprep.subr.bf16.mxu1 %v2118_v17  ;;  %v202_v23 = vmul.f32 %v201_v14, %v158_v4  ;;  %v205_v24 = vmul.f32 %v204_v15, %v158_v4  ;;  %v1861_v26 = vadd.f32 -2.2, %v2338_v0  ;;  %v240_v28 = vmul.f32 %v239_v20, %v198_v55 }
  0x51   :  { %2121 = vmatpush3.bf16.msra.mxu1 %v2118_v17  ;;  %v207_v27 = vmul.f32 %v206_v18, %v163_v19  ;;  %vm114_vm1 = vcmp.ge.f32.partialorder %v2338_v0, 1.8  ;;  %vm115_vm2 = vcmp.lt.f32.partialorder %v2338_v0, 2.2  ;;  %v164_v30 = vmul.f32 2.5, %v1859_v54 }
  0x52   :  { %v203_v29 = vadd.f32 %v202_v23, %v200_v6  ;;  %vm116_vm3 = vmand %vm114_vm1, %vm115_vm2  ;;  %v166_v41 = vmul.f32 -2.5, %v1861_v26  ;;  %v209_v31 = vmul.f32 1.25, %v2404_v16  ;;  %v211_v33 = vmul.f32 -1.25, %v1861_v26 }
  0x53   :  { %v208_v42 = vadd.f32 %v207_v27, %v205_v24  ;;  %v1872_v32 = vsel %vm116_vm3, 1.0, %v3495_v9  ;;  %v165_v36 = vmul.f32 %v1871_v62, %v164_v30  ;;  %v249_v0 = vmul.f32 0.8333333, %v2401_v13 }
  0x54   :  { %v242_v34 = vmul.f32 %v241_v21, %v203_v29  ;;  %v245_v35 = vmul.f32 %v244_v22, %v203_v29  ;;  %v167_v37 = vmul.f32 %v1872_v32, %v166_v41  ;;  %v210_v43 = vmul.f32 %v209_v31, %v163_v19 }
  0x55   :  { %v247_v38 = vmul.f32 %v246_v25, %v208_v42  ;;  %v251_v46 = vmul.f32 -0.8333333, %v1861_v26  ;;  %v250_v16 = vmul.f32 %v249_v0, %v208_v42 }
  0x56   :  { %v243_v39 = vadd.f32 %v242_v34, %v240_v28  ;;  %v168_v40 = vadd.f32 %v167_v37, %v165_v36 }
  0x57   :  { %v248_v44 = vadd.f32 %v247_v38, %v245_v35 }
  0x58   :  { %v212_v45 = vmul.f32 %v211_v33, %v168_v40 }
  0x59   :  { %v2122_v47 = vpack.c.bf16 %v248_v44, %v243_v39 }
  0x5a   :  { %v213_v48 = vadd.f32 %v212_v45, %v210_v43 }
  0x5b   :  { %2123 = vmatprep.subr.bf16.mxu1 %v2122_v47 }
  0x5c   :  { %2125 = vmatpush3.bf16.msra.mxu1 %v2122_v47  ;;  %v252_v49 = vmul.f32 %v251_v46, %v213_v48 }
  0x5e   :  { %v253_v50 = vadd.f32 %v252_v49, %v250_v16 }
  0x60   :  { %2091 = vmatprep.subr.mxu1 %v253_v50 }
  0x61   :  { %2092 = vmatpush3.msra.mxu1 %v253_v50 }
  0x62   :  { %2094 = vmatmul.mubr.msk.f32.vlgmr.msra.gmra.mrb[0].mxu1 %vm258_vm0, %v255_v51 }
  0x63   :  { %2096 = vmatprep.mubr.msk.f32.mxu1 %vm258_vm0, %v256_v52 }
  0x66   :  { %2097 = vmatmul.mubr.msk.f32.gmra.mrb[2].mxu1 %vm258_vm0, %v257_v53 }
 0x135   :  { %v2448_v13 = vpop.f32.mrb[0].mxu1 }
 0x136   :  { %v2450_v54 = vpop.f32.mrb[1].mxu1  ;;  %v2453_v55 = vadd.f32 0.6, %v2448_v13  ;;  %v2456_v56 = vadd.f32 1.0, %v2448_v13  ;;  %v2462_v57 = vadd.f32 0.2, %v2448_v13 }
 0x137   :  { %v2459_v5 = vadd.f32 0.6, %v2450_v54  ;;  %vm488_vm4 = vcmp.ge.f32.partialorder %v2450_v54, -1.0  ;;  %v2466_v7 = vadd.f32 0.2, %v2450_v54  ;;  %vm489_vm0 = vcmp.ge.f32.partialorder %v2448_v13, -1.0 }
 0x138   :  { %3536 = vst [vmem:[#allocation8_spill] sm:$0xff] %v2462_v57  ;;  %v2469_v58 = vadd.f32 -0.2, %v2450_v54  ;;  %v2472_v59 = vadd.f32 -0.2, %v2448_v13  ;;  %v2484_v63 = vadd.f32 1.0, %v2450_v54 }
 0x139   :  { %3537 = vst [vmem:[#allocation9_spill] sm:$0xff] %v2466_v7  ;;  %v2474_v60 = vpop.f32.mrb[2].mxu1  ;;  %v2477_v61 = vadd.f32 -0.6, %v2450_v54  ;;  %vm492_vm5 = vcmp.lt.f32.partialorder %v2450_v54, -0.6 }
 0x13a   :  { %v2481_v62 = vpop.f32.mrb[3].mxu1  ;;  %vm493_vm6 = vcmp.lt.f32.partialorder %v2448_v13, -0.6  ;;  %vm496_vm7 = vmand %vm488_vm4, %vm492_vm5  ;;  %vm508_vm8 = vcmp.ge.f32.partialorder %v2450_v54, -0.6  ;;  %v2499_v3 = vmul.f32 -2.5, %v2459_v5 }
 0x13b   :  { %v2489_v1 = vadd.f32 -0.6, %v2448_v13  ;;  %vm497_vm9 = vmand %vm489_vm0, %vm493_vm6  ;;  %vm509_vm10 = vcmp.ge.f32.partialorder %v2448_v13, -0.6  ;;  %vm512_vm11 = vcmp.lt.f32.partialorder %v2450_v54, -0.2 }
 0x13c   :  { %v2494_v2 = vsel %vm496_vm7, 1.0, %v3495_v9  ;;  %vm513_vm12 = vcmp.lt.f32.partialorder %v2448_v13, -0.2  ;;  %vm516_vm13 = vmand %vm508_vm8, %vm512_vm11  ;;  %vm528_vm14 = vcmp.ge.f32.partialorder %v2450_v54, -0.2  ;;  %v2502_v8 = vsel %vm497_vm9, 1.0, %v3495_v9 }
 0x13d   :  { %vm517_vm15 = vmand %vm509_vm10, %vm513_vm12  ;;  %v1941_v10 = vsel %vm516_vm13, 1.0, %v3495_v9  ;;  %vm529_vm1 = vcmp.ge.f32.partialorder %v2448_v13, -0.2  ;;  %vm532_vm2 = vcmp.lt.f32.partialorder %v2450_v54, 0.2  ;;  %v708_v12 = vmul.f32 2.5, %v2484_v63 }
 0x13e   :  { %v1942_v11 = vsel %vm517_vm15, 1.0, %v3495_v9  ;;  %vm533_vm3 = vcmp.lt.f32.partialorder %v2448_v13, 0.2  ;;  %vm536_vm4 = vmand %vm528_vm14, %vm532_vm2  ;;  %vm548_vm0 = vcmp.ge.f32.partialorder %v2450_v54, 0.2  ;;  %v709_v15 = vmul.f32 2.5, %v2456_v56 }
 0x13f   :  { %vm537_vm5 = vmand %vm529_vm1, %vm533_vm3  ;;  %v1945_v14 = vsel %vm536_vm4, 1.0, %v3495_v9  ;;  %vm549_vm6 = vcmp.ge.f32.partialorder %v2448_v13, 0.2  ;;  %vm552_vm7 = vcmp.lt.f32.partialorder %v2450_v54, 0.6  ;;  %v712_v4 = vmul.f32 %v2494_v2, %v708_v12 }
 0x140   :  { %v1946_v17 = vsel %vm537_vm5, 1.0, %v3495_v9  ;;  %vm553_vm8 = vcmp.lt.f32.partialorder %v2448_v13, 0.6  ;;  %vm556_vm9 = vmand %vm548_vm0, %vm552_vm7  ;;  %v716_v6 = vmul.f32 -2.5, %v2466_v7  ;;  %v713_v19 = vmul.f32 %v2502_v8, %v709_v15 }
 0x141   :  { %vm557_vm10 = vmand %vm549_vm6, %vm553_vm8  ;;  %v2520_v18 = vsel %vm556_vm9, 1.0, %v3495_v9  ;;  %v717_v20 = vmul.f32 -2.5, %v2462_v57  ;;  %v728_v21 = vmul.f32 2.5, %v2459_v5  ;;  %v729_v24 = vmul.f32 2.5, %v2453_v55 }
 0x142   :  { %v2526_v22 = vsel %vm557_vm10, 1.0, %v3495_v9  ;;  %v720_v23 = vmul.f32 %v1941_v10, %v716_v6  ;;  %v736_v25 = vmul.f32 -2.5, %v2469_v58  ;;  %v737_v28 = vmul.f32 -2.5, %v2472_v59 }
 0x143   :  { %v721_v26 = vmul.f32 %v1942_v11, %v717_v20  ;;  %v732_v27 = vmul.f32 %v1941_v10, %v728_v21  ;;  %v748_v29 = vmul.f32 2.5, %v2466_v7  ;;  %v733_v41 = vmul.f32 %v1942_v11, %v729_v24 }
 0x144   :  { %v2532_v30 = vadd.f32 %v720_v23, %v712_v4  ;;  %v740_v31 = vmul.f32 %v1945_v14, %v736_v25  ;;  %v749_v42 = vmul.f32 2.5, %v2462_v57  ;;  %v741_v33 = vmul.f32 %v1946_v17, %v737_v28 }
 0x145   :  { %v2535_v32 = vadd.f32 %v721_v26, %v713_v19  ;;  %v752_v34 = vmul.f32 %v1945_v14, %v748_v29  ;;  %v756_v35 = vmul.f32 -2.5, %v2477_v61  ;;  %v757_v38 = vmul.f32 -2.5, %v2489_v1 }
 0x146   :  { %3538 = vst [vmem:[#allocation10_spill] sm:$0xff] %v2532_v30  ;;  %v744_v36 = vadd.f32 %v740_v31, %v732_v27  ;;  %v753_v37 = vmul.f32 %v1946_v17, %v749_v42  ;;  %v908_v39 = vmul.f32 1.25, %v2484_v63  ;;  %v745_v40 = vadd.f32 %v741_v33, %v733_v41 }
 0x147   :  { %3539 = vst [vmem:[#allocation11_spill] sm:$0xff] %v2535_v32  ;;  %v760_v43 = vmul.f32 %v2520_v18, %v756_v35  ;;  %v909_v0 = vmul.f32 1.25, %v2456_v56  ;;  %v916_v44 = vmul.f32 -1.25, %v2469_v58  ;;  %v761_v45 = vmul.f32 %v2526_v22, %v757_v38 }
 0x148   :  { %v912_v46 = vmul.f32 %v908_v39, %v2532_v30  ;;  %v917_v47 = vmul.f32 -1.25, %v2472_v59  ;;  %v928_v48 = vmul.f32 1.25, %v2459_v5  ;;  %v929_v51 = vmul.f32 1.25, %v2453_v55 }
 0x149   :  { %v2547_v16 = vadd.f32 %v760_v43, %v752_v34  ;;  %v913_v49 = vmul.f32 %v909_v0, %v2535_v32  ;;  %v920_v50 = vmul.f32 %v916_v44, %v744_v36  ;;  %v2551_v52 = vadd.f32 %v761_v45, %v753_v37 }
 0x14a   :  { %v921_v53 = vmul.f32 %v917_v47, %v745_v40  ;;  %v932_v10 = vmul.f32 %v928_v48, %v744_v36  ;;  %v936_v11 = vmul.f32 -1.25, %v2477_v61  ;;  %v933_v14 = vmul.f32 %v929_v51, %v745_v40 }
 0x14b   :  { %v2554_v12 = vadd.f32 %v920_v50, %v912_v46  ;;  %v937_v15 = vmul.f32 -1.25, %v2489_v1  ;;  %v1088_v17 = vmul.f32 0.8333333, %v2484_v63  ;;  %v697_v4 = vmul.f32 -2.5, %v2453_v55 }
 0x14c   :  { %v2559_v6 = vadd.f32 %v921_v53, %v913_v49  ;;  %v940_v19 = vmul.f32 %v936_v11, %v2547_v16  ;;  %v1089_v20 = vmul.f32 0.8333333, %v2456_v56  ;;  %v2565_v21 = vmul.f32 %v2494_v2, %v2499_v3 }
 0x14d   :  { %3540 = vst [vmem:[#allocation12_spill] sm:$0xff] %v2554_v12  ;;  %v941_v23 = vmul.f32 %v937_v15, %v2551_v52  ;;  %v1092_v24 = vmul.f32 %v1088_v17, %v2554_v12  ;;  %v1096_v25 = vmul.f32 -0.8333333, %v2477_v61  ;;  %v1097_v28 = vmul.f32 -0.8333333, %v2489_v1 }
 0x14e   :  { %3541 = vst [vmem:[#allocation13_spill] sm:$0xff] %v2559_v6  ;;  %v2570_v26 = vadd.f32 %v940_v19, %v932_v10  ;;  %v1093_v27 = vmul.f32 %v1089_v20, %v2559_v6  ;;  %v2575_v29 = vadd.f32 -1.0, %v2450_v54  ;;  %v2580_v2 = vadd.f32 -1.0, %v2448_v13 }
 0x14f   :  { %v2577_v41 = vadd.f32 %v941_v23, %v933_v14  ;;  %v2583_v3 = vadd.f32 -1.4, %v2450_v54  ;;  %v2586_v31 = vadd.f32 -1.4, %v2448_v13  ;;  %v2590_v33 = vadd.f32 -1.8, %v2450_v54 }
 0x150   :  { %v1100_v42 = vmul.f32 %v1096_v25, %v2570_v26  ;;  %v2593_v34 = vadd.f32 -1.8, %v2448_v13  ;;  %vm568_vm11 = vcmp.ge.f32.partialorder %v2450_v54, 0.6  ;;  %vm569_vm12 = vcmp.ge.f32.partialorder %v2448_v13, 0.6 }
 0x151   :  { %3542 = vst [vmem:[#allocation14_spill] sm:$0xff] %v2583_v3  ;;  %3543 = vst [vmem:[#allocation15_spill] sm:$0xff] %v2586_v31  ;;  %v1101_v35 = vmul.f32 %v1097_v28, %v2577_v41  ;;  %vm572_vm13 = vcmp.lt.f32.partialorder %v2450_v54, 1.0  ;;  %vm573_vm14 = vcmp.lt.f32.partialorder %v2448_v13, 1.0  ;;  %vm588_vm1 = vcmp.ge.f32.partialorder %v2450_v54, 1.0 }
 0x152   :  { %3544 = vst [vmem:[#allocation16_spill] sm:$0xff] %v2590_v33  ;;  %3545 = vst [vmem:[#allocation17_spill] sm:$0xff] %v2593_v34  ;;  %v1104_v36 = vadd.f32 %v1100_v42, %v1092_v24  ;;  %vm589_vm2 = vcmp.ge.f32.partialorder %v2448_v13, 1.0  ;;  %vm592_vm3 = vcmp.lt.f32.partialorder %v2450_v54, 1.4  ;;  %v2609_v39 = vmul.f32 %v2502_v8, %v697_v4 }
 0x153   :  { %vm576_vm15 = vmand %vm568_vm11, %vm572_vm13  ;;  %v1105_v37 = vadd.f32 %v1101_v35, %v1093_v27  ;;  %v2604_v38 = vadd.f32 -2.2, %v2450_v54  ;;  %vm593_vm0 = vcmp.lt.f32.partialorder %v2448_v13, 1.4  ;;  %vm608_vm5 = vcmp.ge.f32.partialorder %v2450_v54, 1.4 }
 0x154   :  { %vm577_vm4 = vmand %vm569_vm12, %vm573_vm14  ;;  %v2612_v40 = vadd.f32 -2.2, %v2448_v13  ;;  %vm609_vm7 = vcmp.ge.f32.partialorder %v2448_v13, 1.4  ;;  %vm612_vm8 = vcmp.lt.f32.partialorder %v2450_v54, 1.8 }
 0x155   :  { %vm596_vm6 = vmand %vm588_vm1, %vm592_vm3  ;;  %v2126_v43 = vpack.c.bf16 %v1105_v37, %v1104_v36  ;;  %v2617_v0 = vsel %vm576_vm15, 1.0, %v3495_v9  ;;  %vm613_vm10 = vcmp.lt.f32.partialorder %v2448_v13, 1.8  ;;  %vm628_vm11 = vcmp.ge.f32.partialorder %v2450_v54, 1.8 }
 0x156   :  { %vm597_vm9 = vmand %vm589_vm2, %vm593_vm0  ;;  %v2622_v8 = vsel %vm577_vm4, 1.0, %v3495_v9  ;;  %vm629_vm13 = vcmp.ge.f32.partialorder %v2448_v13, 1.8  ;;  %vm632_vm14 = vcmp.lt.f32.partialorder %v2450_v54, 2.2  ;;  %v2627_v44 = vmul.f32 -2.5, %v2575_v29 }
 0x157   :  { %vm616_vm12 = vmand %vm608_vm5, %vm612_vm8  ;;  %2127 = vmatprep.subr.bf16.mxu1 %v2126_v43  ;;  %v1957_v45 = vsel %vm596_vm6, 1.0, %v3495_v9  ;;  %v1958_v46 = vsel %vm597_vm9, 1.0, %v3495_v9  ;;  %vm633_vm1 = vcmp.lt.f32.partialorder %v2448_v13, 2.2  ;;  %v788_v47 = vmul.f32 2.5, %v2477_v61 }
 0x158   :  { %vm617_vm15 = vmand %vm609_vm7, %vm613_vm10  ;;  %v1961_v48 = vsel %vm616_vm12, 1.0, %v3495_v9  ;;  %v789_v50 = vmul.f32 2.5, %v2489_v1  ;;  %v796_v51 = vmul.f32 -2.5, %v2583_v3  ;;  %v797_v11 = vmul.f32 -2.5, %v2586_v31 }
 0x159   :  { %v1962_v49 = vsel %vm617_vm15, 1.0, %v3495_v9  ;;  %vm636_vm2 = vmand %vm628_vm11, %vm632_vm14  ;;  %v792_v10 = vmul.f32 %v2617_v0, %v788_v47  ;;  %v808_v14 = vmul.f32 2.5, %v2575_v29  ;;  %v809_v19 = vmul.f32 2.5, %v2580_v2 }
 0x15a   :  { %vm637_vm3 = vmand %vm629_vm13, %vm633_vm1  ;;  %v1965_v53 = vsel %vm636_vm2, 1.0, %v3495_v9  ;;  %v793_v17 = vmul.f32 %v2622_v8, %v789_v50  ;;  %v800_v4 = vmul.f32 %v1957_v45, %v796_v51  ;;  %v801_v20 = vmul.f32 %v1958_v46, %v797_v11 }
 0x15b   :  { %v1966_v15 = vsel %vm637_vm3, 1.0, %v3495_v9  ;;  %v812_v23 = vmul.f32 %v1957_v45, %v808_v14  ;;  %v816_v24 = vmul.f32 -2.5, %v2590_v33  ;;  %v817_v25 = vmul.f32 -2.5, %v2593_v34 }
 0x15c   :  { %v2648_v27 = vadd.f32 %v800_v4, %v792_v10  ;;  %v813_v28 = vmul.f32 %v1958_v46, %v809_v19  ;;  %v828_v42 = vmul.f32 2.5, %v2583_v3  ;;  %v829_v35 = vmul.f32 2.5, %v2586_v31 }
 0x15d   :  { %v2652_v36 = vadd.f32 %v801_v20, %v793_v17  ;;  %v820_v37 = vmul.f32 %v1961_v48, %v816_v24  ;;  %v821_v43 = vmul.f32 %v1962_v49, %v817_v25  ;;  %v836_v47 = vmul.f32 -2.5, %v2604_v38 }
 0x15e   :  { %3546 = vst [vmem:[#allocation18_spill] sm:$0xff] %v2648_v27  ;;  %v832_v50 = vmul.f32 %v1961_v48, %v828_v42  ;;  %v833_v51 = vmul.f32 %v1962_v49, %v829_v35  ;;  %v837_v45 = vmul.f32 -2.5, %v2612_v40  ;;  %v988_v11 = vmul.f32 1.25, %v2477_v61 }
 0x15f   :  { %3547 = vst [vmem:[#allocation19_spill] sm:$0xff] %v2652_v36  ;;  %v824_v14 = vadd.f32 %v820_v37, %v812_v23  ;;  %v825_v10 = vadd.f32 %v821_v43, %v813_v28  ;;  %v840_v4 = vmul.f32 %v1965_v53, %v836_v47  ;;  %v989_v46 = vmul.f32 1.25, %v2489_v1 }
 0x160   :  { %v841_v19 = vmul.f32 %v1966_v15, %v837_v45  ;;  %v992_v9 = vmul.f32 %v988_v11, %v2648_v27  ;;  %v996_v17 = vmul.f32 -1.25, %v2590_v33  ;;  %v997_v20 = vmul.f32 -1.25, %v2593_v34 }
 0x161   :  { %v844_v24 = vadd.f32 %v840_v4, %v832_v50  ;;  %v993_v48 = vmul.f32 %v989_v46, %v2652_v36  ;;  %v1008_v49 = vmul.f32 1.25, %v2575_v29  ;;  %v1009_v25 = vmul.f32 1.25, %v2580_v2 }
 0x162   :  { %v845_v42 = vadd.f32 %v841_v19, %v833_v51  ;;  %v1000_v23 = vmul.f32 %v996_v17, %v824_v14  ;;  %v1001_v28 = vmul.f32 %v997_v20, %v825_v10  ;;  %v1016_v53 = vmul.f32 -1.25, %v2604_v38 }
 0x163   :  { %v1012_v35 = vmul.f32 %v1008_v49, %v824_v14  ;;  %v1013_v15 = vmul.f32 %v1009_v25, %v825_v10  ;;  %v1017_v37 = vmul.f32 -1.25, %v2612_v40  ;;  %v1168_v43 = vmul.f32 0.8333333, %v2477_v61 }
 0x164   :  { %v2667_v47 = vadd.f32 %v1000_v23, %v992_v9  ;;  %v2669_v50 = vadd.f32 %v1001_v28, %v993_v48  ;;  %v1020_v45 = vmul.f32 %v1016_v53, %v844_v24  ;;  %v1169_v11 = vmul.f32 0.8333333, %v2489_v1 }
 0x165   :  { %v1021_v4 = vmul.f32 %v1017_v37, %v845_v42  ;;  %v1176_v51 = vmul.f32 -0.8333333, %v2604_v38  ;;  %v1177_v46 = vmul.f32 -0.8333333, %v2612_v40  ;;  %v2675_v19 = vadd.f32 -0.6, %v2481_v62 }
 0x166   :  { %3548 = vst [vmem:[#allocation20_spill] sm:$0xff] %v2667_v47  ;;  %3549 = vst [vmem:[#allocation21_spill] sm:$0xff] %v2669_v50  ;;  %v1024_v14 = vadd.f32 %v1020_v45, %v1012_v35  ;;  %v1172_v10 = vmul.f32 %v1168_v43, %v2667_v47  ;;  %v1173_v61 = vmul.f32 %v1169_v11, %v2669_v50  ;;  %v2680_v9 = vadd.f32 -0.6, %v2474_v60 }
 0x167   :  { %v1025_v17 = vadd.f32 %v1021_v4, %v1013_v15  ;;  %v2683_v20 = vadd.f32 -1.0, %v2481_v62  ;;  %v2686_v1 = vadd.f32 -1.0, %v2474_v60  ;;  %v2689_v38 = vadd.f32 -1.4, %v2481_v62 }
 0x168   :  { %v1180_v40 = vmul.f32 %v1176_v51, %v1024_v14  ;;  %v2692_v24 = vadd.f32 -1.4, %v2474_v60  ;;  %v2695_v48 = vadd.f32 -1.8, %v2481_v62  ;;  %v2698_v49 = vadd.f32 -1.8, %v2474_v60 }
 0x169   :  { %3550 = vst [vmem:[#allocation22_spill] sm:$0xff] %v2689_v38  ;;  %v1181_v25 = vmul.f32 %v1177_v46, %v1025_v17  ;;  %v2701_v42 = vadd.f32 -2.2, %v2481_v62  ;;  %v2704_v23 = vadd.f32 -2.2, %v2474_v60  ;;  %vm574_vm5 = vcmp.lt.f32.partialorder %v2481_v62, 1.0 }
 0x16a   :  { %3551 = vst [vmem:[#allocation23_spill] sm:$0xff] %v2692_v24  ;;  %3552 = vst [vmem:[#allocation24_spill] sm:$0xff] %v2695_v48  ;;  %vm570_vm4 = vcmp.ge.f32.partialorder %v2481_v62, 0.6  ;;  %v1184_v28 = vadd.f32 %v1180_v40, %v1172_v10  ;;  %vm571_vm0 = vcmp.ge.f32.partialorder %v2474_v60, 0.6 }
 0x16b   :  { %3553 = vst [vmem:[#allocation25_spill] sm:$0xff] %v2698_v49  ;;  %vm575_vm6 = vcmp.lt.f32.partialorder %v2474_v60, 1.0  ;;  %v1185_v53 = vadd.f32 %v1181_v25, %v1173_v61  ;;  %vm578_vm7 = vmand %vm570_vm4, %vm574_vm5  ;;  %vm590_vm8 = vcmp.ge.f32.partialorder %v2481_v62, 1.0  ;;  %vm591_vm9 = vcmp.ge.f32.partialorder %v2474_v60, 1.0 }
 0x16c   :  { %vm594_vm10 = vcmp.lt.f32.partialorder %v2481_v62, 1.4  ;;  %vm579_vm11 = vmand %vm571_vm0, %vm575_vm6  ;;  %v3554_v35 = vmov 0.0   ;;  %vm595_vm12 = vcmp.lt.f32.partialorder %v2474_v60, 1.4  ;;  %v790_v37 = vmul.f32 2.5, %v2675_v19 }
 0x16d   :  { %v2714_v15 = vsel %vm578_vm7, 1.0, %v3554_v35  ;;  %vm610_vm13 = vcmp.ge.f32.partialorder %v2481_v62, 1.4  ;;  %v2158_v43 = vpack.c.bf16 %v1185_v53, %v1184_v28  ;;  %v2720_v45 = vsel %vm579_vm11, 1.0, %v3554_v35  ;;  %vm598_vm14 = vmand %vm590_vm8, %vm594_vm10 }
 0x16e   :  { %3555 = vst [vmem:[#allocation26_spill] sm:$0xff] %v2714_v15  ;;  %3556 = vst [vmem:[#allocation27_spill] sm:$0xff] %v2720_v45  ;;  %vm611_vm15 = vcmp.ge.f32.partialorder %v2474_v60, 1.4  ;;  %vm614_vm1 = vcmp.lt.f32.partialorder %v2481_v62, 1.8  ;;  %v794_v46 = vmul.f32 %v2714_v15, %v790_v37 }
 0x16f   :  { %vm599_vm2 = vmand %vm591_vm9, %vm595_vm12  ;;  %v1959_v11 = vsel %vm598_vm14, 1.0, %v3554_v35  ;;  %vm615_vm3 = vcmp.lt.f32.partialorder %v2474_v60, 1.8  ;;  %vm630_vm4 = vcmp.ge.f32.partialorder %v2481_v62, 1.8  ;;  %v791_v4 = vmul.f32 2.5, %v2680_v9  ;;  %2159 = vmatprep.subr.bf16.mxu0 %v2158_v43 }
 0x170   :  { %v1960_v51 = vsel %vm599_vm2, 1.0, %v3554_v35  ;;  %vm618_vm0 = vmand %vm610_vm13, %vm614_vm1  ;;  %vm631_vm5 = vcmp.ge.f32.partialorder %v2474_v60, 1.8  ;;  %vm634_vm6 = vcmp.lt.f32.partialorder %v2481_v62, 2.2  ;;  %2161 = vmatpush3.bf16.msra.mxu0 %v2158_v43  ;;  %v798_v61 = vmul.f32 -2.5, %v2689_v38 }
 0x171   :  { %vm619_vm7 = vmand %vm611_vm15, %vm615_vm3  ;;  %v1963_v14 = vsel %vm618_vm0, 1.0, %v3554_v35  ;;  %vm635_vm8 = vcmp.lt.f32.partialorder %v2474_v60, 2.2  ;;  %v795_v10 = vmul.f32 %v2720_v45, %v791_v4  ;;  %v799_v40 = vmul.f32 -2.5, %v2692_v24 }
 0x172   :  { %v1964_v17 = vsel %vm619_vm7, 1.0, %v3554_v35  ;;  %vm638_vm9 = vmand %vm630_vm4, %vm634_vm6  ;;  %v810_v25 = vmul.f32 2.5, %v2683_v20  ;;  %v811_v28 = vmul.f32 2.5, %v2686_v1  ;;  %v802_v37 = vmul.f32 %v1959_v11, %v798_v61 }
 0x173   :  { %vm639_vm10 = vmand %vm631_vm5, %vm635_vm8  ;;  %v1967_v53 = vsel %vm638_vm9, 1.0, %v3554_v35  ;;  %v818_v43 = vmul.f32 -2.5, %v2695_v48  ;;  %v819_v4 = vmul.f32 -2.5, %v2698_v49  ;;  %v803_v12 = vmul.f32 %v1960_v51, %v799_v40 }
 0x174   :  { %v1968_v6 = vsel %vm639_vm10, 1.0, %v3554_v35  ;;  %v814_v50 = vmul.f32 %v1959_v11, %v810_v25  ;;  %v815_v47 = vmul.f32 %v1960_v51, %v811_v28  ;;  %v2746_v34 = vadd.f32 %v802_v37, %v794_v46 }
 0x175   :  { %v822_v33 = vmul.f32 %v1963_v14, %v818_v43  ;;  %v823_v32 = vmul.f32 %v1964_v17, %v819_v4  ;;  %v830_v30 = vmul.f32 2.5, %v2689_v38  ;;  %v2749_v36 = vadd.f32 %v803_v12, %v795_v10 }
 0x176   :  { %3557 = vst [vmem:[#allocation28_spill] sm:$0xff] %v2746_v34  ;;  %v831_v27 = vmul.f32 2.5, %v2692_v24  ;;  %v838_v61 = vmul.f32 -2.5, %v2701_v42  ;;  %v839_v31 = vmul.f32 -2.5, %v2704_v23  ;;  %v990_v11 = vmul.f32 1.25, %v2675_v19 }
 0x177   :  { %3558 = vst [vmem:[#allocation29_spill] sm:$0xff] %v2749_v36  ;;  %v826_v3 = vadd.f32 %v822_v33, %v814_v50  ;;  %v827_v45 = vadd.f32 %v823_v32, %v815_v47  ;;  %v834_v15 = vmul.f32 %v1963_v14, %v830_v30  ;;  %v991_v25 = vmul.f32 1.25, %v2680_v9 }
 0x178   :  { %v835_v51 = vmul.f32 %v1964_v17, %v831_v27  ;;  %v842_v46 = vmul.f32 %v1967_v53, %v838_v61  ;;  %v843_v40 = vmul.f32 %v1968_v6, %v839_v31  ;;  %v994_v28 = vmul.f32 %v990_v11, %v2746_v34 }
 0x179   :  { %v998_v12 = vmul.f32 -1.25, %v2695_v48  ;;  %v999_v10 = vmul.f32 -1.25, %v2698_v49  ;;  %v1010_v37 = vmul.f32 1.25, %v2683_v20  ;;  %v995_v32 = vmul.f32 %v991_v25, %v2749_v36 }
 0x17a   :  { %v846_v43 = vadd.f32 %v842_v46, %v834_v15  ;;  %v847_v4 = vadd.f32 %v843_v40, %v835_v51  ;;  %v1011_v30 = vmul.f32 1.25, %v2686_v1  ;;  %v1018_v6 = vmul.f32 -1.25, %v2701_v42  ;;  %v1189_v15 = vld [vmem:[#allocation4 + $0x8] sm:$0xff] }
 0x17b   :  { %v1002_v33 = vmul.f32 %v998_v12, %v826_v3  ;;  %v1003_v27 = vmul.f32 %v999_v10, %v827_v45  ;;  %v1014_v47 = vmul.f32 %v1010_v37, %v826_v3  ;;  %v777_v31 = vmul.f32 -2.5, %v2580_v2  ;;  %1265 = vmatprep.mubr.f32.mxu1 %v1189_v15 }
 0x17c   :  { %v2766_v50 = vmul.f32 %v2617_v0, %v2627_v44  ;;  %v1015_v14 = vmul.f32 %v1011_v30, %v827_v45  ;;  %v1019_v17 = vmul.f32 -1.25, %v2704_v23  ;;  %v1022_v11 = vmul.f32 %v1018_v6, %v846_v43 }
 0x17d   :  { %v2769_v53 = vadd.f32 %v1002_v33, %v994_v28  ;;  %v2771_v61 = vadd.f32 %v1003_v27, %v995_v32  ;;  %v1170_v51 = vmul.f32 0.8333333, %v2675_v19  ;;  %v1171_v46 = vmul.f32 0.8333333, %v2680_v9 }
 0x17e   :  { %v1023_v3 = vmul.f32 %v1019_v17, %v847_v4  ;;  %v356_v40 = vsub.f32 0.0, %v2450_v54  ;;  %v357_v0 = vsub.f32 0.0, %v2448_v13  ;;  %v1026_v44 = vadd.f32 %v1022_v11, %v1014_v47 }
 0x17f   :  { %3559 = vst [vmem:[#allocation30_spill] sm:$0xff] %v2769_v53  ;;  %3560 = vst [vmem:[#allocation31_spill] sm:$0xff] %v2771_v61  ;;  %v1174_v45 = vmul.f32 %v1170_v51, %v2769_v53  ;;  %v1178_v25 = vmul.f32 -0.8333333, %v2701_v42  ;;  %v1179_v28 = vmul.f32 -0.8333333, %v2704_v23  ;;  %v1175_v10 = vmul.f32 %v1171_v46, %v2771_v61 }
 0x180   :  { %v1027_v12 = vadd.f32 %v1023_v3, %v1015_v14  ;;  %v360_v37 = vmul.f32 1.442695, %v356_v40  ;;  %v362_v43 = vmul.f32 1.442695, %v357_v0  ;;  %v2782_v4 = vadd.f32 1.0, %v2481_v62 }
 0x181   :  { %v1182_v32 = vmul.f32 %v1178_v25, %v1026_v44  ;;  %v2785_v30 = vadd.f32 0.6, %v2481_v62  ;;  %v2788_v33 = vadd.f32 0.6, %v2474_v60  ;;  %v2791_v42 = vadd.f32 0.2, %v2481_v62 }
 0x182   :  { %v1183_v27 = vmul.f32 %v1179_v28, %v1027_v12  ;;  %2206 = vpow2.f32 %v360_v37  ;;  %v2794_v23 = vadd.f32 0.2, %v2474_v60  ;;  %v2797_v6 = vadd.f32 -0.2, %v2481_v62 }
 0x183   :  { %v1186_v47 = vadd.f32 %v1182_v32, %v1174_v45  ;;  %2208 = vpow2.f32 %v362_v43  ;;  %vm490_vm11 = vcmp.ge.f32.partialorder %v2481_v62, -1.0  ;;  %vm491_vm12 = vcmp.ge.f32.partialorder %v2474_v60, -1.0 }
 0x184   :  { %v1187_v14 = vadd.f32 %v1183_v27, %v1175_v10  ;;  %vm494_vm13 = vcmp.lt.f32.partialorder %v2481_v62, -0.6  ;;  %vm495_vm14 = vcmp.lt.f32.partialorder %v2474_v60, -0.6  ;;  %v2804_v17 = vmul.f32 %v2622_v8, %v777_v31 }
 0x185   :  { %vm498_vm15 = vmand %vm490_vm11, %vm494_vm13  ;;  %vm510_vm1 = vcmp.ge.f32.partialorder %v2481_v62, -0.6  ;;  %vm511_vm2 = vcmp.ge.f32.partialorder %v2474_v60, -0.6  ;;  %vm514_vm3 = vcmp.lt.f32.partialorder %v2481_v62, -0.2 }
 0x186   :  { %v2162_v15 = vpack.c.bf16 %v1187_v14, %v1186_v47  ;;  %v2810_v11 = vadd.f32 -0.2, %v2474_v60  ;;  %vm499_vm4 = vmand %vm491_vm12, %vm495_vm14  ;;  %vm515_vm0 = vcmp.lt.f32.partialorder %v2474_v60, -0.2  ;;  %vm530_vm5 = vcmp.ge.f32.partialorder %v2481_v62, -0.2 }
 0x187   :  { %v2815_v51 = vadd.f32 1.0, %v2474_v60  ;;  %v2818_v8 = vsel %vm498_vm15, 1.0, %v3554_v35  ;;  %vm518_vm6 = vmand %vm510_vm1, %vm514_vm3  ;;  %vm531_vm7 = vcmp.ge.f32.partialorder %v2474_v60, -0.2  ;;  %vm534_vm8 = vcmp.lt.f32.partialorder %v2481_v62, 0.2 }
 0x188   :  { %3562 = vst [vmem:[#allocation33_spill] sm:$0xff] %v2818_v8  ;;  %2163 = vmatprep.subr.bf16.mxu0 %v2162_v15  ;;  %v2823_v31 = vsel %vm499_vm4, 1.0, %v3554_v35  ;;  %vm519_vm9 = vmand %vm511_vm2, %vm515_vm0  ;;  %vm535_vm10 = vcmp.lt.f32.partialorder %v2474_v60, 0.2  ;;  %vm550_vm11 = vcmp.ge.f32.partialorder %v2481_v62, 0.2 }
 0x189   :  { %3561 = vst [vmem:[#allocation32_spill] sm:$0xff] %v2815_v51  ;;  %v2828_v3 = vmul.f32 -2.5, %v2785_v30  ;;  %2165 = vmatpush3.bf16.msra.mxu0 %v2162_v15  ;;  %v1943_v46 = vsel %vm518_vm6, 1.0, %v3554_v35  ;;  %vm538_vm12 = vmand %vm530_vm5, %vm534_vm8  ;;  %vm551_vm13 = vcmp.ge.f32.partialorder %v2474_v60, 0.2  ;;  %v2834_v40 = vmul.f32 -2.5, %v2788_v33 }
 0x18a   :  { %vm554_vm14 = vcmp.lt.f32.partialorder %v2481_v62, 0.6  ;;  %v1944_v0 = vsel %vm519_vm9, 1.0, %v3554_v35  ;;  %vm539_vm15 = vmand %vm531_vm7, %vm535_vm10  ;;  %v1947_v44 = vsel %vm538_vm12, 1.0, %v3554_v35  ;;  %vm555_vm1 = vcmp.lt.f32.partialorder %v2474_v60, 0.6 }
 0x18b   :  { %3563 = vst [vmem:[#allocation34_spill] sm:$0xff] %v2828_v3  ;;  %3564 = vst [vmem:[#allocation35_spill] sm:$0xff] %v2834_v40  ;;  %v710_v45 = vmul.f32 2.5, %v2782_v4  ;;  %v1948_v25 = vsel %vm539_vm15, 1.0, %v3554_v35  ;;  %v711_v28 = vmul.f32 2.5, %v2815_v51  ;;  %v718_v12 = vmul.f32 -2.5, %v2791_v42 }
 0x18c   :  { %vm558_vm2 = vmand %vm550_vm11, %vm554_vm14  ;;  %v719_v10 = vmul.f32 -2.5, %v2794_v23  ;;  %v2207_v37 = vpop.eup %2206  ;;  %v730_v27 = vmul.f32 2.5, %v2785_v30  ;;  %v731_v47 = vmul.f32 2.5, %v2788_v33  ;;  %v739_v40 = vmul.f32 -2.5, %v2810_v11 }
 0x18d   :  { %vm559_vm3 = vmand %vm551_vm13, %vm555_vm1  ;;  %v2847_v43 = vsel %vm558_vm2, 1.0, %v3554_v35  ;;  %v714_v32 = vmul.f32 %v2818_v8, %v710_v45  ;;  %v2209_v14 = vpop.eup %2208  ;;  %v368_v15 = vadd.f32 1.0, %v2207_v37  ;;  %v715_v53 = vmul.f32 %v2823_v31, %v711_v28 }
 0x18e   :  { %v2853_v61 = vsel %vm559_vm3, 1.0, %v3554_v35  ;;  %v722_v49 = vmul.f32 %v1943_v46, %v718_v12  ;;  %v369_v48 = vadd.f32 1.0, %v2209_v14  ;;  %v723_v36 = vmul.f32 %v1944_v0, %v719_v10 }
 0x18f   :  { %v734_v34 = vmul.f32 %v1943_v46, %v730_v27  ;;  %v735_v24 = vmul.f32 %v1944_v0, %v731_v47  ;;  %2210 = vrcp.f32 %v368_v15  ;;  %v738_v45 = vmul.f32 -2.5, %v2797_v6 }
 0x190   :  { %v2856_v38 = vadd.f32 %v722_v49, %v714_v32  ;;  %2212 = vrcp.f32 %v369_v48  ;;  %v2860_v8 = vadd.f32 %v723_v36, %v715_v53  ;;  %v750_v37 = vmul.f32 2.5, %v2791_v42 }
 0x191   :  { %v751_v3 = vmul.f32 2.5, %v2794_v23  ;;  %v742_v28 = vmul.f32 %v1947_v44, %v738_v45  ;;  %v743_v12 = vmul.f32 %v1948_v25, %v739_v40  ;;  %v758_v10 = vmul.f32 -2.5, %v2675_v19 }
 0x192   :  { %3565 = vst [vmem:[#allocation36_spill] sm:$0xff] %v2856_v38  ;;  %3566 = vst [vmem:[#allocation37_spill] sm:$0xff] %v2860_v8  ;;  %v759_v46 = vmul.f32 -2.5, %v2680_v9  ;;  %v754_v0 = vmul.f32 %v1947_v44, %v750_v37  ;;  %v910_v32 = vmul.f32 1.25, %v2782_v4  ;;  %v911_v27 = vmul.f32 1.25, %v2815_v51 }
 0x193   :  { %v755_v49 = vmul.f32 %v1948_v25, %v751_v3  ;;  %v746_v47 = vadd.f32 %v742_v28, %v734_v34  ;;  %v747_v48 = vadd.f32 %v743_v12, %v735_v24  ;;  %v762_v36 = vmul.f32 %v2847_v43, %v758_v10 }
 0x194   :  { %v763_v53 = vmul.f32 %v2853_v61, %v759_v46  ;;  %v914_v14 = vmul.f32 %v910_v32, %v2856_v38  ;;  %v915_v40 = vmul.f32 %v911_v27, %v2860_v8  ;;  %v918_v15 = vmul.f32 -1.25, %v2797_v6 }
 0x195   :  { %v919_v45 = vmul.f32 -1.25, %v2810_v11  ;;  %v2874_v44 = vadd.f32 %v762_v36, %v754_v0  ;;  %v930_v25 = vmul.f32 1.25, %v2785_v30  ;;  %v931_v34 = vmul.f32 1.25, %v2788_v33 }
 0x196   :  { %v2876_v3 = vadd.f32 %v763_v53, %v755_v49  ;;  %v922_v24 = vmul.f32 %v918_v15, %v746_v47  ;;  %v938_v28 = vmul.f32 -1.25, %v2675_v19  ;;  %v939_v12 = vmul.f32 -1.25, %v2680_v9 }
 0x197   :  { %v923_v37 = vmul.f32 %v919_v45, %v747_v48  ;;  %v934_v10 = vmul.f32 %v930_v25, %v746_v47  ;;  %v935_v46 = vmul.f32 %v931_v34, %v747_v48  ;;  %v1090_v32 = vmul.f32 0.8333333, %v2782_v4 }
 0x198   :  { %v1091_v27 = vmul.f32 0.8333333, %v2815_v51  ;;  %v2884_v0 = vadd.f32 %v922_v24, %v914_v14  ;;  %v942_v36 = vmul.f32 %v938_v28, %v2874_v44  ;;  %v943_v53 = vmul.f32 %v939_v12, %v2876_v3 }
 0x199   :  { %v2886_v49 = vadd.f32 %v923_v37, %v915_v40  ;;  %v2211_v15 = vpop.eup %2210  ;;  %v1098_v45 = vmul.f32 -0.8333333, %v2675_v19  ;;  %v1099_v8 = vmul.f32 -0.8333333, %v2680_v9  ;;  %v358_v47 = vsub.f32 0.0, %v2481_v62 }
 0x19a   :  { %3567 = vst [vmem:[#allocation38_spill] sm:$0xff] %v2884_v0  ;;  %v359_v48 = vsub.f32 0.0, %v2474_v60  ;;  %v2213_v25 = vpop.eup %2212  ;;  %v373_v34 = vmul.f32 %v2211_v15, %v2450_v54  ;;  %v2895_v14 = vadd.f32 %v942_v36, %v934_v10  ;;  %v2897_v40 = vadd.f32 %v943_v53, %v935_v46 }
 0x19b   :  { %3568 = vst [vmem:[#allocation39_spill] sm:$0xff] %v2886_v49  ;;  %v1094_v24 = vmul.f32 %v1090_v32, %v2884_v0  ;;  %v375_v37 = vmul.f32 %v2213_v25, %v2448_v13  ;;  %v1095_v28 = vmul.f32 %v1091_v27, %v2886_v49  ;;  %v364_v19 = vmul.f32 1.442695, %v358_v47 }
 0x19c   :  { %v366_v12 = vmul.f32 1.442695, %v359_v48  ;;  %v1102_v9 = vmul.f32 %v1098_v45, %v2895_v14  ;;  %v1103_v38 = vmul.f32 %v1099_v8, %v2897_v40  ;;  %v768_v51 = vmul.f32 2.5, %v2469_v58 }
 0x19d   :  { %v769_v15 = vmul.f32 2.5, %v2472_v59  ;;  %v2128_v10 = vpack.c.bf16 %v375_v37, %v373_v34  ;;  %2214 = vpow2.f32 %v364_v19  ;;  %v948_v46 = vmul.f32 1.25, %v2466_v7 }
 0x19e   :  { %v949_v32 = vmul.f32 1.25, %v2462_v57  ;;  %v1106_v36 = vadd.f32 %v1102_v9, %v1094_v24  ;;  %v1107_v53 = vadd.f32 %v1103_v38, %v1095_v28  ;;  %2216 = vpow2.f32 %v366_v12 }
 0x19f   :  { %v772_v27 = vmul.f32 %v2520_v18, %v768_v51  ;;  %2129 = vmatpush3.bf16.msra.mxu1 %v2128_v10  ;;  %v773_v45 = vmul.f32 %v2526_v22, %v769_v15  ;;  %v952_v8 = vmul.f32 %v948_v46, %v2547_v16  ;;  %v956_v48 = vmul.f32 -1.25, %v2575_v29 }
 0x1a0   :  { %v953_v47 = vmul.f32 %v949_v32, %v2551_v52  ;;  %v2130_v25 = vpack.c.bf16 %v1107_v53, %v1106_v36  ;;  %v957_v37 = vmul.f32 -1.25, %v2580_v2  ;;  %v1108_v38 = vmul.f32 0.8333333, %v2459_v5 }
 0x1a1   :  { %v2914_v34 = vadd.f32 %v2766_v50, %v772_v27  ;;  %v2919_v24 = vadd.f32 %v2804_v17, %v773_v45  ;;  %v1109_v18 = vmul.f32 0.8333333, %v2453_v55  ;;  %v1116_v22 = vmul.f32 -0.8333333, %v2575_v29 }
 0x1a2   :  { %v1117_v16 = vmul.f32 -0.8333333, %v2580_v2  ;;  %2131 = vmatprep.subr.bf16.mxu1 %v2130_v25  ;;  %v1112_v51 = vmul.f32 %v1108_v38, %v2570_v26  ;;  %v2927_v50 = vadd.f32 2.2, %v2450_v54  ;;  %v2930_v28 = vadd.f32 2.2, %v2448_v13 }
 0x1a3   :  { %v960_v52 = vmul.f32 %v956_v48, %v2914_v34  ;;  %v961_v17 = vmul.f32 %v957_v37, %v2919_v24  ;;  %v1113_v19 = vmul.f32 %v1109_v18, %v2577_v41  ;;  %v2935_v12 = vadd.f32 1.8, %v2450_v54 }
 0x1a4   :  { %v2938_v29 = vadd.f32 1.8, %v2448_v13  ;;  %v2943_v26 = vadd.f32 1.4, %v2450_v54  ;;  %v2946_v9 = vadd.f32 1.4, %v2448_v13 }
 0x1a5   :  { %v2940_v2 = vadd.f32 %v960_v52, %v952_v8  ;;  %vm428_vm4 = vcmp.ge.f32.partialorder %v2450_v54, -2.2  ;;  %v2949_v15 = vadd.f32 %v961_v17, %v953_v47  ;;  %vm429_vm0 = vcmp.ge.f32.partialorder %v2448_v13, -2.2 }
 0x1a6   :  { %vm432_vm5 = vcmp.lt.f32.partialorder %v2450_v54, -1.8  ;;  %vm433_vm6 = vcmp.lt.f32.partialorder %v2448_v13, -1.8  ;;  %vm448_vm8 = vcmp.ge.f32.partialorder %v2450_v54, -1.8 }
 0x1a7   :  { %3569 = vst [vmem:[#allocation40_spill] sm:$0xff] %v2940_v2  ;;  %3570 = vst [vmem:[#allocation41_spill] sm:$0xff] %v2949_v15  ;;  %v1120_v41 = vmul.f32 %v1116_v22, %v2940_v2  ;;  %vm449_vm9 = vcmp.ge.f32.partialorder %v2448_v13, -1.8  ;;  %vm452_vm10 = vcmp.lt.f32.partialorder %v2450_v54, -1.4  ;;  %v2215_v10 = vpop.eup %2214  ;;  %v1121_v46 = vmul.f32 %v1117_v16, %v2949_v15 }
 0x1a8   :  { %vm436_vm7 = vmand %vm428_vm4, %vm432_vm5  ;;  %vm453_vm12 = vcmp.lt.f32.partialorder %v2448_v13, -1.4  ;;  %vm468_vm13 = vcmp.ge.f32.partialorder %v2450_v54, -1.4  ;;  %v2217_v36 = vpop.eup %2216  ;;  %v370_v53 = vadd.f32 1.0, %v2215_v10  ;;  %vm472_vm2 = vcmp.lt.f32.partialorder %v2450_v54, -1.0 }
 0x1a9   :  { %vm437_vm11 = vmand %vm429_vm0, %vm433_vm6  ;;  %v1925_v32 = vsel %vm436_vm7, 1.0, %v3554_v35  ;;  %v2962_v27 = vadd.f32 %v1120_v41, %v1112_v51  ;;  %vm469_vm15 = vcmp.ge.f32.partialorder %v2448_v13, -1.4  ;;  %v371_v8 = vadd.f32 1.0, %v2217_v36 }
 0x1aa   :  { %v1926_v45 = vsel %vm437_vm11, 1.0, %v3554_v35  ;;  %vm456_vm14 = vmand %vm448_vm8, %vm452_vm10  ;;  %v2966_v47 = vadd.f32 %v1121_v46, %v1113_v19  ;;  %2218 = vrcp.f32 %v370_v53  ;;  %vm473_vm3 = vcmp.lt.f32.partialorder %v2448_v13, -1.0 }
 0x1ab   :  { %vm457_vm1 = vmand %vm449_vm9, %vm453_vm12  ;;  %v1929_v48 = vsel %vm456_vm14, 1.0, %v3554_v35  ;;  %v648_v37 = vmul.f32 2.5, %v2927_v50  ;;  %2220 = vrcp.f32 %v371_v8  ;;  %v649_v22 = vmul.f32 2.5, %v2930_v28 }
 0x1ac   :  { %v1930_v25 = vsel %vm457_vm1, 1.0, %v3554_v35  ;;  %vm476_vm4 = vmand %vm468_vm13, %vm472_vm2  ;;  %v656_v51 = vmul.f32 -2.5, %v2943_v26  ;;  %v657_v13 = vmul.f32 -2.5, %v2946_v9  ;;  %v668_v17 = vmul.f32 2.5, %v2935_v12 }
 0x1ad   :  { %vm477_vm0 = vmand %vm469_vm15, %vm473_vm3  ;;  %v1933_v18 = vsel %vm476_vm4, 1.0, %v3554_v35  ;;  %v652_v52 = vmul.f32 %v1925_v32, %v648_v37  ;;  %v653_v54 = vmul.f32 %v1926_v45, %v649_v22  ;;  %v669_v19 = vmul.f32 2.5, %v2938_v29 }
 0x1ae   :  { %v1934_v16 = vsel %vm477_vm0, 1.0, %v3554_v35  ;;  %v676_v41 = vmul.f32 -2.5, %v2484_v63  ;;  %v660_v10 = vmul.f32 %v1929_v48, %v656_v51  ;;  %v661_v46 = vmul.f32 %v1930_v25, %v657_v13 }
 0x1af   :  { %v677_v36 = vmul.f32 -2.5, %v2456_v56  ;;  %v688_v53 = vmul.f32 2.5, %v2943_v26  ;;  %v672_v8 = vmul.f32 %v1929_v48, %v668_v17  ;;  %v673_v38 = vmul.f32 %v1930_v25, %v669_v19 }
 0x1b0   :  { %v680_v32 = vmul.f32 %v1933_v18, %v676_v41  ;;  %v689_v37 = vmul.f32 2.5, %v2946_v9  ;;  %v664_v49 = vadd.f32 %v660_v10, %v652_v52  ;;  %v665_v0 = vadd.f32 %v661_v46, %v653_v54 }
 0x1b1   :  { %v681_v45 = vmul.f32 %v1934_v16, %v677_v36  ;;  %v692_v22 = vmul.f32 %v1933_v18, %v688_v53  ;;  %v848_v57 = vmul.f32 1.25, %v2927_v50  ;;  %v849_v51 = vmul.f32 1.25, %v2930_v28 }
 0x1b2   :  { %v684_v15 = vadd.f32 %v680_v32, %v672_v8  ;;  %v693_v2 = vmul.f32 %v1934_v16, %v689_v37  ;;  %v856_v48 = vmul.f32 -1.25, %v2484_v63  ;;  %v857_v25 = vmul.f32 -1.25, %v2456_v56 }
 0x1b3   :  { %v685_v13 = vadd.f32 %v681_v45, %v673_v38  ;;  %v2993_v7 = vadd.f32 %v2565_v21, %v692_v22  ;;  %v852_v52 = vmul.f32 %v848_v57, %v664_v49  ;;  %v853_v54 = vmul.f32 %v849_v51, %v665_v0 }
 0x1b4   :  { %v2998_v17 = vadd.f32 %v2609_v39, %v693_v2  ;;  %v868_v18 = vmul.f32 1.25, %v2935_v12  ;;  %v2219_v16 = vpop.eup %2218  ;;  %v860_v19 = vmul.f32 %v856_v48, %v684_v15  ;;  %v869_v10 = vmul.f32 1.25, %v2938_v29 }
 0x1b5   :  { %v861_v41 = vmul.f32 %v857_v25, %v685_v13  ;;  %v876_v38 = vmul.f32 -1.25, %v2459_v5  ;;  %v2221_v21 = vpop.eup %2220  ;;  %v377_v46 = vmul.f32 %v2219_v16, %v2481_v62  ;;  %v877_v56 = vmul.f32 -1.25, %v2453_v55 }
 0x1b6   :  { %v872_v63 = vmul.f32 %v868_v18, %v684_v15  ;;  %v1028_v39 = vmul.f32 0.8333333, %v2927_v50  ;;  %v379_v57 = vmul.f32 %v2221_v21, %v2474_v60  ;;  %v864_v0 = vadd.f32 %v860_v19, %v852_v52 }
 0x1b7   :  { %v865_v49 = vadd.f32 %v861_v41, %v853_v54  ;;  %v873_v2 = vmul.f32 %v869_v10, %v685_v13  ;;  %v880_v36 = vmul.f32 %v876_v38, %v2993_v7  ;;  %v881_v53 = vmul.f32 %v877_v56, %v2998_v17  ;;  %v3572_v41 = vld [vmem:[#allocation34_spill] sm:$0xff] }
 0x1b8   :  { %v1029_v8 = vmul.f32 0.8333333, %v2930_v28  ;;  %v1036_v32 = vmul.f32 -0.8333333, %v2459_v5  ;;  %v2132_v37 = vpack.c.bf16 %v379_v57, %v377_v46  ;;  %v1032_v45 = vmul.f32 %v1028_v39, %v864_v0  ;;  %v3574_v38 = vld [vmem:[#allocation26_spill] sm:$0xff]  ;;  %v3575_v46 = vld [vmem:[#allocation27_spill] sm:$0xff] }
 0x1b9   :  { %v1037_v15 = vmul.f32 -0.8333333, %v2453_v55  ;;  %v770_v22 = vmul.f32 2.5, %v2797_v6  ;;  %v3013_v50 = vadd.f32 %v880_v36, %v872_v63  ;;  %v3015_v51 = vadd.f32 %v881_v53, %v873_v2 }
 0x1ba   :  { %v1033_v48 = vmul.f32 %v1029_v8, %v865_v49  ;;  %v771_v13 = vmul.f32 2.5, %v2810_v11  ;;  %2133 = vmatpush3.bf16.msra.mxu1 %v2132_v37  ;;  %v778_v28 = vmul.f32 -2.5, %v2683_v20  ;;  %v779_v5 = vmul.f32 -2.5, %v2686_v1 }
 0x1bb   :  { %v774_v25 = vmul.f32 %v2847_v43, %v770_v22  ;;  %v950_v52 = vmul.f32 1.25, %v2791_v42  ;;  %v3571_v55 = vpack.c.bf16 %v2966_v47, %v2962_v27  ;;  %v1040_v54 = vmul.f32 %v1036_v32, %v3013_v50  ;;  %v3573_v43 = vld [vmem:[#allocation33_spill] sm:$0xff] }
 0x1bc   :  { %v1041_v18 = vmul.f32 %v1037_v15, %v3015_v51  ;;  %v775_v16 = vmul.f32 %v2853_v61, %v771_v13  ;;  %v951_v19 = vmul.f32 1.25, %v2794_v23  ;;  %v3031_v10 = vmul.f32 %v3573_v43, %v3572_v41 }
 0x1bd   :  { %2135 = vmatprep.subr.bf16.mxu1 %v3571_v55  ;;  %v782_v21 = vmul.f32 %v3574_v38, %v778_v28  ;;  %v783_v63 = vmul.f32 %v3575_v46, %v779_v5  ;;  %v954_v56 = vmul.f32 %v950_v52, %v2874_v44  ;;  %v1044_v27 = vadd.f32 %v1040_v54, %v1032_v45 }
 0x1be   :  { %v1045_v47 = vadd.f32 %v1041_v18, %v1033_v48  ;;  %v955_v39 = vmul.f32 %v951_v19, %v2876_v3  ;;  %v958_v57 = vmul.f32 -1.25, %v2683_v20  ;;  %v959_v49 = vmul.f32 -1.25, %v2686_v1 }
 0x1bf   :  { %v3038_v0 = vadd.f32 %v782_v21, %v774_v25  ;;  %v3040_v61 = vadd.f32 %v783_v63, %v775_v16  ;;  %v1110_v2 = vmul.f32 0.8333333, %v2785_v30  ;;  %v1111_v53 = vmul.f32 0.8333333, %v2788_v33 }
 0x1c0   :  { %v2136_v36 = vpack.c.bf16 %v1045_v47, %v1044_v27  ;;  %v1118_v8 = vmul.f32 -0.8333333, %v2683_v20  ;;  %v1119_v44 = vmul.f32 -0.8333333, %v2686_v1  ;;  %v3051_v45 = vadd.f32 2.2, %v2481_v62 }
 0x1c1   :  { %v962_v32 = vmul.f32 %v958_v57, %v3038_v0  ;;  %v963_v3 = vmul.f32 %v959_v49, %v3040_v61  ;;  %v1114_v37 = vmul.f32 %v1110_v2, %v2895_v14  ;;  %v1115_v15 = vmul.f32 %v1111_v53, %v2897_v40  ;;  %v3576_v40 = vld [vmem:[#allocation35_spill] sm:$0xff]  ;;  %v3577_v53 = vld [vmem:[#allocation32_spill] sm:$0xff] }
 0x1c2   :  { %2137 = vmatpush3.bf16.msra.mxu1 %v2136_v36  ;;  %v3055_v22 = vadd.f32 2.2, %v2474_v60  ;;  %v3058_v48 = vadd.f32 1.8, %v2481_v62  ;;  %v3061_v20 = vadd.f32 1.8, %v2474_v60  ;;  %v703_v28 = vmul.f32 %v2823_v31, %v3576_v40 }
 0x1c3   :  { %v3063_v1 = vadd.f32 %v962_v32, %v954_v56  ;;  %v3065_v13 = vadd.f32 %v963_v3, %v955_v39  ;;  %v3068_v14 = vadd.f32 1.4, %v2481_v62  ;;  %v3071_v25 = vadd.f32 1.4, %v2474_v60 }
 0x1c4   :  { %vm430_vm5 = vcmp.ge.f32.partialorder %v2481_v62, -2.2  ;;  %vm431_vm6 = vcmp.ge.f32.partialorder %v2474_v60, -2.2  ;;  %vm434_vm7 = vcmp.lt.f32.partialorder %v2481_v62, -1.8 }
 0x1c5   :  { %v1122_v5 = vmul.f32 %v1118_v8, %v3063_v1  ;;  %v1123_v52 = vmul.f32 %v1119_v44, %v3065_v13  ;;  %vm435_vm8 = vcmp.lt.f32.partialorder %v2474_v60, -1.8  ;;  %vm438_vm9 = vmand %vm430_vm5, %vm434_vm7  ;;  %vm450_vm10 = vcmp.ge.f32.partialorder %v2481_v62, -1.8 }
 0x1c6   :  { %vm439_vm11 = vmand %vm431_vm6, %vm435_vm8  ;;  %v1927_v55 = vsel %vm438_vm9, 1.0, %v3554_v35  ;;  %vm451_vm12 = vcmp.ge.f32.partialorder %v2474_v60, -1.8  ;;  %vm454_vm13 = vcmp.lt.f32.partialorder %v2481_v62, -1.4  ;;  %vm474_vm14 = vcmp.lt.f32.partialorder %v2481_v62, -1.0 }
 0x1c7   :  { %v1126_v31 = vadd.f32 %v1122_v5, %v1114_v37  ;;  %v1127_v54 = vadd.f32 %v1123_v52, %v1115_v15  ;;  %v1928_v18 = vsel %vm439_vm11, 1.0, %v3554_v35  ;;  %vm455_vm15 = vcmp.lt.f32.partialorder %v2474_v60, -1.4  ;;  %vm458_vm1 = vmand %vm450_vm10, %vm454_vm13 }
 0x1c8   :  { %vm459_vm2 = vmand %vm451_vm12, %vm455_vm15  ;;  %v1931_v16 = vsel %vm458_vm1, 1.0, %v3554_v35  ;;  %vm470_vm3 = vcmp.ge.f32.partialorder %v2481_v62, -1.4  ;;  %vm471_vm4 = vcmp.ge.f32.partialorder %v2474_v60, -1.4  ;;  %vm475_vm0 = vcmp.lt.f32.partialorder %v2474_v60, -1.0 }
 0x1c9   :  { %v2138_v19 = vpack.c.bf16 %v1127_v54, %v1126_v31  ;;  %v1932_v41 = vsel %vm459_vm2, 1.0, %v3554_v35  ;;  %vm478_vm5 = vmand %vm470_vm3, %vm474_vm14  ;;  %v650_v43 = vmul.f32 2.5, %v3051_v45  ;;  %v651_v38 = vmul.f32 2.5, %v3055_v22 }
 0x1ca   :  { %vm479_vm6 = vmand %vm471_vm4, %vm475_vm0  ;;  %v1935_v21 = vsel %vm478_vm5, 1.0, %v3554_v35  ;;  %v658_v46 = vmul.f32 -2.5, %v3068_v14  ;;  %v659_v63 = vmul.f32 -2.5, %v3071_v25  ;;  %v670_v62 = vmul.f32 2.5, %v3058_v48 }
 0x1cb   :  { %2139 = vmatprep.subr.bf16.mxu1 %v2138_v19  ;;  %v1936_v60 = vsel %vm479_vm6, 1.0, %v3554_v35  ;;  %v654_v56 = vmul.f32 %v1927_v55, %v650_v43  ;;  %v655_v27 = vmul.f32 %v1928_v18, %v651_v38  ;;  %v671_v47 = vmul.f32 2.5, %v3061_v20 }
 0x1cc   :  { %v662_v39 = vmul.f32 %v1931_v16, %v658_v46  ;;  %v663_v57 = vmul.f32 %v1932_v41, %v659_v63  ;;  %v674_v49 = vmul.f32 %v1931_v16, %v670_v62  ;;  %v678_v2 = vmul.f32 -2.5, %v2782_v4 }
 0x1cd   :  { %v675_v36 = vmul.f32 %v1932_v41, %v671_v47  ;;  %v679_v8 = vmul.f32 -2.5, %v3577_v53  ;;  %v690_v44 = vmul.f32 2.5, %v3068_v14  ;;  %v691_v32 = vmul.f32 2.5, %v3071_v25 }
 0x1ce   :  { %v666_v3 = vadd.f32 %v662_v39, %v654_v56  ;;  %v667_v37 = vadd.f32 %v663_v57, %v655_v27  ;;  %v682_v15 = vmul.f32 %v1935_v21, %v678_v2  ;;  %v850_v40 = vmul.f32 1.25, %v3051_v45 }
 0x1cf   :  { %v683_v5 = vmul.f32 %v1936_v60, %v679_v8  ;;  %v694_v52 = vmul.f32 %v1935_v21, %v690_v44  ;;  %v695_v55 = vmul.f32 %v1936_v60, %v691_v32  ;;  %v851_v31 = vmul.f32 1.25, %v3055_v22 }
 0x1d0   :  { %v686_v54 = vadd.f32 %v682_v15, %v674_v49  ;;  %v854_v18 = vmul.f32 %v850_v40, %v666_v3  ;;  %v858_v16 = vmul.f32 -1.25, %v2782_v4  ;;  %v859_v19 = vmul.f32 -1.25, %v3577_v53  ;;  %v3579_v40 = vld [vmem:[#allocation15_spill] sm:$0xff] }
 0x1d1   :  { %v687_v41 = vadd.f32 %v683_v5, %v675_v36  ;;  %v3110_v43 = vadd.f32 %v3031_v10, %v694_v52  ;;  %v3112_v38 = vadd.f32 %v703_v28, %v695_v55  ;;  %v855_v46 = vmul.f32 %v851_v31, %v667_v37  ;;  %v3578_v37 = vld [vmem:[#allocation14_spill] sm:$0xff]  ;;  %v3580_v55 = vld [vmem:[#allocation9_spill] sm:$0xff] }
 0x1d2   :  { %v862_v63 = vmul.f32 %v858_v16, %v686_v54  ;;  %v870_v62 = vmul.f32 1.25, %v3058_v48  ;;  %v871_v21 = vmul.f32 1.25, %v3061_v20  ;;  %v878_v60 = vmul.f32 -1.25, %v2785_v30 }
 0x1d3   :  { %v863_v56 = vmul.f32 %v859_v19, %v687_v41  ;;  %v879_v27 = vmul.f32 -1.25, %v2788_v33  ;;  %v1030_v4 = vmul.f32 0.8333333, %v3051_v45  ;;  %v1031_v47 = vmul.f32 0.8333333, %v3055_v22  ;;  %v3582_v19 = vld [vmem:[#allocation19_spill] sm:$0xff] }
 0x1d4   :  { %v866_v39 = vadd.f32 %v862_v63, %v854_v18  ;;  %v874_v10 = vmul.f32 %v870_v62, %v686_v54  ;;  %v875_v57 = vmul.f32 %v871_v21, %v687_v41  ;;  %v882_v28 = vmul.f32 %v878_v60, %v3110_v43  ;;  %v3581_v18 = vld [vmem:[#allocation18_spill] sm:$0xff]  ;;  %v3584_v21 = vld [vmem:[#allocation40_spill] sm:$0xff] }
 0x1d5   :  { %v867_v49 = vadd.f32 %v863_v56, %v855_v46  ;;  %v883_v2 = vmul.f32 %v879_v27, %v3112_v38  ;;  %v1038_v36 = vmul.f32 -0.8333333, %v2785_v30  ;;  %v1039_v53 = vmul.f32 -0.8333333, %v2788_v33  ;;  %v3583_v46 = vld [vmem:[#allocation8_spill] sm:$0xff] }
 0x1d6   :  { %v3124_v8 = vadd.f32 %v882_v28, %v874_v10  ;;  %v1034_v44 = vmul.f32 %v1030_v4, %v866_v39  ;;  %v968_v32 = vmul.f32 1.25, %v2469_v58  ;;  %v969_v45 = vmul.f32 1.25, %v2472_v59 }
 0x1d7   :  { %v3128_v22 = vadd.f32 %v883_v2, %v875_v57  ;;  %v1035_v3 = vmul.f32 %v1031_v47, %v867_v49  ;;  %v976_v15 = vmul.f32 -1.25, %v3578_v37  ;;  %v977_v5 = vmul.f32 -1.25, %v3579_v40  ;;  %v3585_v47 = vld [vmem:[#allocation41_spill] sm:$0xff] }
 0x1d8   :  { %v1042_v52 = vmul.f32 %v1038_v36, %v3124_v8  ;;  %v972_v30 = vmul.f32 %v968_v32, %v2914_v34  ;;  %v973_v33 = vmul.f32 %v969_v45, %v2919_v24  ;;  %v1128_v31 = vmul.f32 0.8333333, %v3580_v55 }
 0x1d9   :  { %v1043_v54 = vmul.f32 %v1039_v53, %v3128_v22  ;;  %v980_v16 = vmul.f32 %v976_v15, %v3581_v18  ;;  %v981_v41 = vmul.f32 %v977_v5, %v3582_v19  ;;  %v1129_v63 = vmul.f32 0.8333333, %v3583_v46  ;;  %v3587_v15 = vld [vmem:[#allocation11_spill] sm:$0xff] }
 0x1da   :  { %v1046_v62 = vadd.f32 %v1042_v52, %v1034_v44  ;;  %v1132_v60 = vmul.f32 %v1128_v31, %v3584_v21  ;;  %v1136_v56 = vmul.f32 -0.8333333, %v3578_v37  ;;  %v1137_v27 = vmul.f32 -0.8333333, %v3579_v40 }
 0x1db   :  { %v1047_v34 = vadd.f32 %v1043_v54, %v1035_v3  ;;  %v3143_v4 = vadd.f32 %v980_v16, %v972_v30  ;;  %v3145_v24 = vadd.f32 %v981_v41, %v973_v33  ;;  %v1133_v39 = vmul.f32 %v1129_v63, %v3585_v47  ;;  %v3586_v3 = vld [vmem:[#allocation10_spill] sm:$0xff] }
 0x1dc   :  { %v888_v10 = vmul.f32 1.25, %v2943_v26  ;;  %v889_v57 = vmul.f32 1.25, %v2946_v9  ;;  %v896_v28 = vmul.f32 -1.25, %v3580_v55  ;;  %v897_v49 = vmul.f32 -1.25, %v3583_v46 }
 0x1dd   :  { %v2140_v2 = vpack.c.bf16 %v1047_v34, %v1046_v62  ;;  %v1140_v36 = vmul.f32 %v1136_v56, %v3143_v4  ;;  %v1141_v53 = vmul.f32 %v1137_v27, %v3145_v24  ;;  %v1048_v44 = vmul.f32 0.8333333, %v2935_v12  ;;  %v3589_v62 = vld [vmem:[#allocation23_spill] sm:$0xff]  ;;  %v3590_v34 = vld [vmem:[#allocation28_spill] sm:$0xff] }
 0x1de   :  { %v892_v32 = vmul.f32 %v888_v10, %v2993_v7  ;;  %v893_v45 = vmul.f32 %v889_v57, %v2998_v17  ;;  %v900_v37 = vmul.f32 %v896_v28, %v3586_v3  ;;  %v901_v40 = vmul.f32 %v897_v49, %v3587_v15 }
 0x1df   :  { %2141 = vmatpush3.bf16.msra.mxu1 %v2140_v2  ;;  %v1144_v5 = vadd.f32 %v1140_v36, %v1132_v60  ;;  %v1145_v52 = vadd.f32 %v1141_v53, %v1133_v39  ;;  %v1049_v30 = vmul.f32 0.8333333, %v2938_v29  ;;  %v1052_v33 = vmul.f32 %v1048_v44, %v3013_v50  ;;  %v3588_v50 = vld [vmem:[#allocation22_spill] sm:$0xff]  ;;  %v3591_v39 = vld [vmem:[#allocation29_spill] sm:$0xff] }
 0x1e0   :  { %v3161_v31 = vadd.f32 %v900_v37, %v892_v32  ;;  %v3163_v54 = vadd.f32 %v901_v40, %v893_v45  ;;  %v1056_v12 = vmul.f32 -0.8333333, %v3580_v55  ;;  %v1057_v7 = vmul.f32 -0.8333333, %v3583_v46 }
 0x1e1   :  { %v2142_v17 = vpack.c.bf16 %v1145_v52, %v1144_v5  ;;  %v1053_v18 = vmul.f32 %v1049_v30, %v3015_v51  ;;  %v970_v16 = vmul.f32 1.25, %v2797_v6  ;;  %v971_v19 = vmul.f32 1.25, %v2810_v11  ;;  %v3592_v5 = vld [vmem:[#allocation36_spill] sm:$0xff]  ;;  %v3593_v30 = vld [vmem:[#allocation37_spill] sm:$0xff] }
 0x1e2   :  { %v1060_v41 = vmul.f32 %v1056_v12, %v3161_v31  ;;  %v1061_v29 = vmul.f32 %v1057_v7, %v3163_v54  ;;  %v978_v63 = vmul.f32 -1.25, %v3588_v50  ;;  %v979_v21 = vmul.f32 -1.25, %v3589_v62 }
 0x1e3   :  { %2143 = vmatprep.subr.bf16.mxu1 %v2142_v17  ;;  %v974_v55 = vmul.f32 %v970_v16, %v3038_v0  ;;  %v975_v46 = vmul.f32 %v971_v19, %v3040_v61  ;;  %v1130_v60 = vmul.f32 0.8333333, %v2791_v42  ;;  %v1131_v51 = vmul.f32 0.8333333, %v2794_v23 }
 0x1e4   :  { %v1064_v56 = vadd.f32 %v1060_v41, %v1052_v33  ;;  %v1065_v27 = vadd.f32 %v1061_v29, %v1053_v18  ;;  %v982_v47 = vmul.f32 %v978_v63, %v3590_v34  ;;  %v983_v10 = vmul.f32 %v979_v21, %v3591_v39  ;;  %v3594_v29 = vld [vmem:[#allocation16_spill] sm:$0xff]  ;;  %v3595_v63 = vld [vmem:[#allocation17_spill] sm:$0xff] }
 0x1e5   :  { %v1134_v57 = vmul.f32 %v1130_v60, %v3063_v1  ;;  %v1135_v28 = vmul.f32 %v1131_v51, %v3065_v13  ;;  %v1138_v49 = vmul.f32 -0.8333333, %v3588_v50  ;;  %v1139_v0 = vmul.f32 -0.8333333, %v3589_v62  ;;  %v3597_v60 = vld [vmem:[#allocation21_spill] sm:$0xff] }
 0x1e6   :  { %v2144_v2 = vpack.c.bf16 %v1065_v27, %v1064_v56  ;;  %v986_v61 = vadd.f32 %v982_v47, %v974_v55  ;;  %v987_v36 = vadd.f32 %v983_v10, %v975_v46  ;;  %v890_v53 = vmul.f32 1.25, %v3068_v14  ;;  %v3596_v46 = vld [vmem:[#allocation20_spill] sm:$0xff] }
 0x1e7   :  { %v891_v44 = vmul.f32 1.25, %v3071_v25  ;;  %v898_v32 = vmul.f32 -1.25, %v2791_v42  ;;  %v899_v45 = vmul.f32 -1.25, %v2794_v23  ;;  %v1050_v3 = vmul.f32 0.8333333, %v3058_v48 }
 0x1e8   :  { %2145 = vmatpush3.bf16.msra.mxu1 %v2144_v2  ;;  %v1142_v1 = vmul.f32 %v1138_v49, %v986_v61  ;;  %v1143_v13 = vmul.f32 %v1139_v0, %v987_v36  ;;  %v894_v37 = vmul.f32 %v890_v53, %v3110_v43  ;;  %v1051_v15 = vmul.f32 0.8333333, %v3061_v20  ;;  %v3599_v53 = vld [vmem:[#allocation13_spill] sm:$0xff] }
 0x1e9   :  { %v895_v40 = vmul.f32 %v891_v44, %v3112_v38  ;;  %v902_v52 = vmul.f32 %v898_v32, %v3592_v5  ;;  %v903_v33 = vmul.f32 %v899_v45, %v3593_v30  ;;  %v1054_v12 = vmul.f32 %v1050_v3, %v3124_v8  ;;  %v3600_v32 = vld [vmem:[#allocation24_spill] sm:$0xff]  ;;  %v3601_v45 = vld [vmem:[#allocation25_spill] sm:$0xff]  ;;  %v3603_v5 = vld [vmem:[#allocation31_spill] sm:$0xff] }
 0x1ea   :  { %v1146_v7 = vadd.f32 %v1142_v1, %v1134_v57  ;;  %v1147_v17 = vadd.f32 %v1143_v13, %v1135_v28  ;;  %v1055_v18 = vmul.f32 %v1051_v15, %v3128_v22  ;;  %v1058_v48 = vmul.f32 -0.8333333, %v2791_v42  ;;  %v1190_v13 = vld [vmem:[#allocation4 + $0x10] sm:$0xff]  ;;  %v3602_v15 = vld [vmem:[#allocation30_spill] sm:$0xff] }
 0x1eb   :  { %v906_v16 = vadd.f32 %v902_v52, %v894_v37  ;;  %v907_v19 = vadd.f32 %v903_v33, %v895_v40  ;;  %v1059_v43 = vmul.f32 -0.8333333, %v2794_v23  ;;  %v1148_v20 = vmul.f32 0.8333333, %v2469_v58  ;;  %v1193_v33 = vld [vmem:[#allocation4 + $0x28] sm:$0xff] }
 0x1ec   :  { %v2146_v41 = vpack.c.bf16 %v1147_v17, %v1146_v7  ;;  %v1149_v38 = vmul.f32 0.8333333, %v2472_v59  ;;  %v1156_v50 = vmul.f32 -0.8333333, %v3594_v29  ;;  %v1157_v62 = vmul.f32 -0.8333333, %v3595_v63 }
 0x1ed   :  { %v1062_v8 = vmul.f32 %v1058_v48, %v906_v16  ;;  %v1063_v21 = vmul.f32 %v1059_v43, %v907_v19  ;;  %v1152_v55 = vmul.f32 %v1148_v20, %v3143_v4  ;;  %v1068_v22 = vmul.f32 0.8333333, %v2943_v26  ;;  %v3604_v48 = vld [vmem:[#allocation38_spill] sm:$0xff]  ;;  %v3605_v20 = vld [vmem:[#allocation39_spill] sm:$0xff] }
 0x1ee   :  { %2147 = vmatprep.subr.bf16.mxu1 %v2146_v41  ;;  %v1153_v42 = vmul.f32 %v1149_v38, %v3145_v24  ;;  %v1160_v23 = vmul.f32 %v1156_v50, %v3596_v46  ;;  %v1161_v51 = vmul.f32 %v1157_v62, %v3597_v60  ;;  %v1069_v56 = vmul.f32 0.8333333, %v2946_v9  ;;  %v3598_v24 = vld [vmem:[#allocation12_spill] sm:$0xff]  ;;  %v1191_v50 = vld [vmem:[#allocation4 + $0x18] sm:$0xff]  ;;  %v3230_v63 = vld [vmem:[%s3493_s3] sm:$0xff] }
 0x1ef   :  { %v1066_v27 = vadd.f32 %v1062_v8, %v1054_v12  ;;  %v1067_v34 = vadd.f32 %v1063_v21, %v1055_v18  ;;  %v1072_v47 = vmul.f32 %v1068_v22, %v3161_v31  ;;  %v1076_v39 = vmul.f32 -0.8333333, %v2469_v58 }
 0x1f0   :  { %v1164_v10 = vadd.f32 %v1160_v23, %v1152_v55  ;;  %v1165_v57 = vadd.f32 %v1161_v51, %v1153_v42  ;;  %v1073_v4 = vmul.f32 %v1069_v56, %v3163_v54  ;;  %v1077_v26 = vmul.f32 -0.8333333, %v2472_v59 }
 0x1f1   :  { %v2148_v28 = vpack.c.bf16 %v1067_v34, %v1066_v27  ;;  %v1080_v49 = vmul.f32 %v1076_v39, %v3598_v24  ;;  %v1150_v0 = vmul.f32 0.8333333, %v2797_v6  ;;  %v1151_v2 = vmul.f32 0.8333333, %v2810_v11 }
 0x1f2   :  { %v2150_v9 = vpack.c.bf16 %v1165_v57, %v1164_v10  ;;  %v1081_v44 = vmul.f32 %v1077_v26, %v3599_v53  ;;  %v1158_v31 = vmul.f32 -0.8333333, %v3600_v32  ;;  %v1159_v58 = vmul.f32 -0.8333333, %v3601_v45 }
 0x1f3   :  { %2149 = vmatpush3.bf16.msra.mxu1 %v2148_v28  ;;  %v1084_v3 = vadd.f32 %v1080_v49, %v1072_v47  ;;  %v1154_v1 = vmul.f32 %v1150_v0, %v986_v61  ;;  %v1155_v54 = vmul.f32 %v1151_v2, %v987_v36  ;;  %v1070_v59 = vmul.f32 0.8333333, %v3068_v14 }
 0x1f4   :  { %2151 = vmatprep.subr.bf16.mxu1 %v2150_v9  ;;  %v1085_v37 = vadd.f32 %v1081_v44, %v1073_v4  ;;  %v1162_v40 = vmul.f32 %v1158_v31, %v3602_v15  ;;  %v1163_v52 = vmul.f32 %v1159_v58, %v3603_v5  ;;  %v1071_v30 = vmul.f32 0.8333333, %v3071_v25 }
 0x1f5   :  { %v1074_v12 = vmul.f32 %v1070_v59, %v906_v16  ;;  %v1078_v7 = vmul.f32 -0.8333333, %v2797_v6  ;;  %v1079_v17 = vmul.f32 -0.8333333, %v2810_v11  ;;  %vm1194_vm7 = vcmask 261120   ;;  %v1188_v6 = vld [vmem:[#allocation4] sm:$0xff] }
 0x1f6   :  { %v2152_v61 = vpack.c.bf16 %v1085_v37, %v1084_v3  ;;  %v1166_v36 = vadd.f32 %v1162_v40, %v1154_v1  ;;  %v1167_v18 = vadd.f32 %v1163_v52, %v1155_v54  ;;  %v1075_v14 = vmul.f32 %v1071_v30, %v907_v19  ;;  %2107 = vmatprep.mubr.msk.f32.mxu0 %vm1194_vm7, %v1190_v13  ;;  %v1192_v11 = vld [vmem:[#allocation4 + $0x20] sm:$0xff] }
 0x1f7   :  { %v1082_v43 = vmul.f32 %v1078_v7, %v3604_v48  ;;  %v1083_v41 = vmul.f32 %v1079_v17, %v3605_v20  ;;  %2108 = vmatmul.mubr.msk.f32.vlgmr.msra.gmra.mrb[0].mxu0 %vm1194_vm7, %v1193_v33  ;;  %v2285_v19 = vmov 0.0|0.0   ;;  %vm1770_vm8 = vcmask 130048  }
 0x1f8   :  { %2153 = vmatpush3.bf16.msra.mxu1 %v2152_v61  ;;  %v2154_v38 = vpack.c.bf16 %v1167_v18, %v1166_v36  ;;  %2166 = vmatprep.subr.bf16.mxu0 %v2285_v19  ;;  %v1769_v62 = vcombine.high %v3230_v63, %v3230_v63 }
 0x1f9   :  { %v1086_v25 = vadd.f32 %v1082_v43, %v1074_v12  ;;  %v1087_v29 = vadd.f32 %v1083_v41, %v1075_v14 }
 0x1fa   :  { %2155 = vmatprep.subr.bf16.mxu1 %v2154_v38  ;;  %2017 = vmatprep.mubr.msk.f32.mxu0 %vm1770_vm8, %v1769_v62 }
 0x1fb   :  { %v2156_v16 = vpack.c.bf16 %v1087_v29, %v1086_v25 }
 0x1fd   :  { %2157 = vmatpush3.bf16.msra.mxu1 %v2156_v16 }
 0x200   :  { %1266 = vmatmul.mubr.f32.vlgmr.msra.gmra.mrb[4].mxu1 %v1188_v6 }
 0x201   :  { %1270 = vmatprep.mubr.f32.mxu1 %v1192_v11 }
 0x204   :  { %1271 = vmatmul.mubr.f32.gmra.mrb[6].mxu1 %v1191_v50 }
 0x2ca   :  { %v2109_v8 = vpop.f32.mrb[0].mxu0 }
 0x2cb   :  { %v1342_v21 = vpop.f32.mrb[1].mxu0 }
 0x2d3   :  { %v2063_v55 = vpop.f32.mrb[4].mxu1 }
 0x2d4   :  { %v2064_v22 = vpop.f32.mrb[5].mxu1 }
 0x2d5   :  { %v2065_v42 = vadd.f32 %v2064_v22, %v2063_v55 }
 0x2d7   :  { %v3234_v46 = vadd.f32 %v2065_v42, %v1342_v21  ;;  %v2066_v23 = vpop.f32.mrb[6].mxu1 }
 0x2d8   :  { %v2067_v60 = vpop.f32.mrb[7].mxu1 }
 0x2d9   :  { %v2068_v51 = vadd.f32 %v2067_v60, %v2066_v23  ;;  %v1351_v56 = vsub.f32 0.0, %v3234_v46  ;;  %v3238_v27 = vadd.f32 2.2, %v3234_v46  ;;  %v3241_v34 = vadd.f32 1.8, %v3234_v46 }
 0x2da   :  { %v3244_v47 = vadd.f32 1.4, %v3234_v46  ;;  %v3247_v39 = vadd.f32 1.0, %v3234_v46  ;;  %v3250_v10 = vadd.f32 0.6, %v3234_v46  ;;  %vm1409_vm9 = vcmp.lt.f32.partialorder %v3234_v46, -1.0 }
 0x2db   :  { %v3253_v57 = vadd.f32 %v2109_v8, %v2068_v51  ;;  %v1353_v4 = vmul.f32 1.442695, %v1351_v56  ;;  %vm1387_vm10 = vcmp.ge.f32.partialorder %v3234_v46, -2.2  ;;  %vm1389_vm11 = vcmp.lt.f32.partialorder %v3234_v46, -1.8 }
 0x2dc   :  { %vm1391_vm12 = vmand %vm1387_vm10, %vm1389_vm11  ;;  %vm1397_vm13 = vcmp.ge.f32.partialorder %v3234_v46, -1.8  ;;  %vm1399_vm14 = vcmp.lt.f32.partialorder %v3234_v46, -1.4  ;;  %vm1407_vm15 = vcmp.ge.f32.partialorder %v3234_v46, -1.4 }
 0x2dd   :  { %v1352_v26 = vsub.f32 0.0, %v3253_v57  ;;  %2222 = vpow2.f32 %v1353_v4  ;;  %v3262_v28 = vadd.f32 2.2, %v3253_v57  ;;  %v3265_v24 = vadd.f32 1.8, %v3253_v57  ;;  %vm1401_vm1 = vmand %vm1397_vm13, %vm1399_vm14 }
 0x2de   :  { %v3268_v49 = vadd.f32 1.4, %v3253_v57  ;;  %v3271_v0 = vadd.f32 1.0, %v3253_v57  ;;  %v3274_v2 = vadd.f32 0.6, %v3253_v57  ;;  %v1995_v9 = vsel %vm1391_vm12, 1.0, %v3554_v35  ;;  %vm1411_vm2 = vmand %vm1407_vm15, %vm1409_vm9 }
 0x2df   :  { %v1355_v53 = vmul.f32 1.442695, %v1352_v26  ;;  %vm1388_vm3 = vcmp.ge.f32.partialorder %v3253_v57, -2.2  ;;  %vm1390_vm4 = vcmp.lt.f32.partialorder %v3253_v57, -1.8 }
 0x2e0   :  { %vm1392_vm0 = vmand %vm1388_vm3, %vm1390_vm4  ;;  %vm1398_vm5 = vcmp.ge.f32.partialorder %v3253_v57, -1.8  ;;  %vm1400_vm6 = vcmp.lt.f32.partialorder %v3253_v57, -1.4  ;;  %v1997_v44 = vsel %vm1401_vm1, 1.0, %v3554_v35  ;;  %vm1410_vm7 = vcmp.lt.f32.partialorder %v3253_v57, -1.0 }
 0x2e1   :  { %2224 = vpow2.f32 %v1355_v53  ;;  %v1996_v32 = vsel %vm1392_vm0, 1.0, %v3554_v35  ;;  %vm1402_vm8 = vmand %vm1398_vm5, %vm1400_vm6  ;;  %vm1408_vm9 = vcmp.ge.f32.partialorder %v3253_v57, -1.4  ;;  %v1999_v31 = vsel %vm1411_vm2, 1.0, %v3554_v35 }
 0x2e2   :  { %v1998_v45 = vsel %vm1402_vm8, 1.0, %v3554_v35  ;;  %vm1412_vm10 = vmand %vm1408_vm9, %vm1410_vm7  ;;  %vm1417_vm11 = vcmp.ge.f32.partialorder %v3234_v46, -1.0  ;;  %vm1418_vm12 = vcmp.ge.f32.partialorder %v3253_v57, -1.0  ;;  %vm1419_vm13 = vcmp.lt.f32.partialorder %v3234_v46, -0.6 }
 0x2e3   :  { %v2000_v58 = vsel %vm1412_vm10, 1.0, %v3554_v35  ;;  %vm1420_vm14 = vcmp.lt.f32.partialorder %v3253_v57, -0.6  ;;  %vm1421_vm15 = vmand %vm1417_vm11, %vm1419_vm13  ;;  %v1497_v3 = vmul.f32 2.5, %v3238_v27  ;;  %v1498_v1 = vmul.f32 2.5, %v3262_v28 }
 0x2e4   :  { %vm1422_vm1 = vmand %vm1418_vm12, %vm1420_vm14  ;;  %v3297_v54 = vsel %vm1421_vm15, 1.0, %v3554_v35  ;;  %v1501_v59 = vmul.f32 -2.5, %v3244_v47  ;;  %v1502_v13 = vmul.f32 -2.5, %v3268_v49  ;;  %v1507_v37 = vmul.f32 2.5, %v3241_v34 }
 0x2e5   :  { %v3303_v15 = vsel %vm1422_vm1, 1.0, %v3554_v35  ;;  %v1499_v40 = vmul.f32 %v1995_v9, %v1497_v3  ;;  %v1500_v5 = vmul.f32 %v1996_v32, %v1498_v1  ;;  %v1508_v52 = vmul.f32 2.5, %v3265_v24 }
 0x2e6   :  { %v1503_v30 = vmul.f32 %v1997_v44, %v1501_v59  ;;  %v1504_v33 = vmul.f32 %v1998_v45, %v1502_v13  ;;  %v1509_v12 = vmul.f32 %v1997_v44, %v1507_v37  ;;  %v1511_v7 = vmul.f32 -2.5, %v3247_v39 }
 0x2e7   :  { %v2223_v17 = vpop.eup %2222  ;;  %v1510_v61 = vmul.f32 %v1998_v45, %v1508_v52  ;;  %v1512_v36 = vmul.f32 -2.5, %v3271_v0  ;;  %v1517_v18 = vmul.f32 2.5, %v3244_v47  ;;  %v1518_v14 = vmul.f32 2.5, %v3268_v49 }
 0x2e8   :  { %v1357_v48 = vadd.f32 1.0, %v2223_v17  ;;  %v1505_v43 = vadd.f32 %v1503_v30, %v1499_v40  ;;  %v1506_v20 = vadd.f32 %v1504_v33, %v1500_v5  ;;  %v1513_v41 = vmul.f32 %v1999_v31, %v1511_v7 }
 0x2e9   :  { %v1514_v38 = vmul.f32 %v2000_v58, %v1512_v36  ;;  %v1519_v25 = vmul.f32 %v1999_v31, %v1517_v18  ;;  %v1520_v29 = vmul.f32 %v2000_v58, %v1518_v14  ;;  %v1521_v16 = vmul.f32 -2.5, %v3250_v10 }
 0x2ea   :  { %2226 = vrcp.f32 %v1357_v48  ;;  %v1515_v6 = vadd.f32 %v1513_v41, %v1509_v12  ;;  %v1522_v11 = vmul.f32 -2.5, %v3274_v2  ;;  %v1597_v50 = vmul.f32 1.25, %v3238_v27 }
 0x2eb   :  { %v2225_v62 = vpop.eup %2224  ;;  %v1516_v8 = vadd.f32 %v1514_v38, %v1510_v61  ;;  %v1523_v21 = vmul.f32 %v3297_v54, %v1521_v16  ;;  %v1598_v55 = vmul.f32 1.25, %v3262_v28  ;;  %v1601_v22 = vmul.f32 -1.25, %v3247_v39 }
 0x2ec   :  { %v1358_v42 = vadd.f32 1.0, %v2225_v62  ;;  %v1524_v23 = vmul.f32 %v3303_v15, %v1522_v11  ;;  %v1599_v60 = vmul.f32 %v1597_v50, %v1505_v43  ;;  %v1602_v51 = vmul.f32 -1.25, %v3271_v0 }
 0x2ed   :  { %v1525_v56 = vadd.f32 %v1523_v21, %v1519_v25  ;;  %v1600_v4 = vmul.f32 %v1598_v55, %v1506_v20  ;;  %v1603_v26 = vmul.f32 %v1601_v22, %v1515_v6  ;;  %v1607_v9 = vmul.f32 1.25, %v3241_v34 }
 0x2ee   :  { %2228 = vrcp.f32 %v1358_v42  ;;  %v1526_v53 = vadd.f32 %v1524_v23, %v1520_v29  ;;  %v1604_v44 = vmul.f32 %v1602_v51, %v1516_v8  ;;  %v1608_v32 = vmul.f32 1.25, %v3265_v24 }
 0x2ef   :  { %v1605_v31 = vadd.f32 %v1603_v26, %v1599_v60  ;;  %v1609_v45 = vmul.f32 %v1607_v9, %v1515_v6  ;;  %v1611_v58 = vmul.f32 -1.25, %v3250_v10  ;;  %v1612_v3 = vmul.f32 -1.25, %v3274_v2 }
 0x2f0   :  { %v1606_v1 = vadd.f32 %v1604_v44, %v1600_v4  ;;  %v1610_v59 = vmul.f32 %v1608_v32, %v1516_v8  ;;  %v1687_v13 = vmul.f32 0.8333333, %v3238_v27  ;;  %v1688_v37 = vmul.f32 0.8333333, %v3262_v28 }
 0x2f1   :  { %v1613_v40 = vmul.f32 %v1611_v58, %v1525_v56  ;;  %v1614_v5 = vmul.f32 %v1612_v3, %v1526_v53  ;;  %v1691_v52 = vmul.f32 -0.8333333, %v3250_v10  ;;  %v1692_v30 = vmul.f32 -0.8333333, %v3274_v2 }
 0x2f2   :  { %v1689_v33 = vmul.f32 %v1687_v13, %v1605_v31  ;;  %v1690_v12 = vmul.f32 %v1688_v37, %v1606_v1  ;;  %v3327_v7 = vadd.f32 0.2, %v3234_v46  ;;  %v3330_v17 = vadd.f32 0.2, %v3253_v57 }
 0x2f3   :  { %v1615_v61 = vadd.f32 %v1613_v40, %v1609_v45  ;;  %v1616_v36 = vadd.f32 %v1614_v5, %v1610_v59  ;;  %vm1427_vm2 = vcmp.ge.f32.partialorder %v3234_v46, -0.6  ;;  %vm1428_vm3 = vcmp.ge.f32.partialorder %v3253_v57, -0.6 }
 0x2f4   :  { %v2227_v27 = vpop.eup %2226  ;;  %vm1429_vm4 = vcmp.lt.f32.partialorder %v3234_v46, -0.2  ;;  %vm1430_vm0 = vcmp.lt.f32.partialorder %v3253_v57, -0.2  ;;  %v1527_v28 = vmul.f32 2.5, %v3247_v39  ;;  %v1528_v18 = vmul.f32 2.5, %v3271_v0 }
 0x2f5   :  { %v1360_v14 = vmul.f32 %v2227_v27, %v3234_v46  ;;  %v1693_v48 = vmul.f32 %v1691_v52, %v1615_v61  ;;  %v1694_v43 = vmul.f32 %v1692_v30, %v1616_v36  ;;  %vm1431_vm5 = vmand %vm1427_vm2, %vm1429_vm4  ;;  %v1531_v20 = vmul.f32 -2.5, %v3327_v7 }
 0x2f6   :  { %vm1432_vm6 = vmand %vm1428_vm3, %vm1430_vm0  ;;  %v2003_v41 = vsel %vm1431_vm5, 1.0, %v3554_v35  ;;  %v1529_v38 = vmul.f32 %v3297_v54, %v1527_v28  ;;  %v1530_v25 = vmul.f32 %v3303_v15, %v1528_v18  ;;  %v1532_v29 = vmul.f32 -2.5, %v3330_v17 }
 0x2f7   :  { %v1695_v16 = vadd.f32 %v1693_v48, %v1689_v33  ;;  %v1696_v6 = vadd.f32 %v1694_v43, %v1690_v12  ;;  %v2004_v11 = vsel %vm1432_vm6, 1.0, %v3554_v35  ;;  %v1533_v50 = vmul.f32 %v2003_v41, %v1531_v20 }
 0x2f8   :  { %v2229_v62 = vpop.eup %2228  ;;  %v1534_v8 = vmul.f32 %v2004_v11, %v1532_v29  ;;  %v1617_v21 = vmul.f32 1.25, %v3244_v47  ;;  %v1618_v55 = vmul.f32 1.25, %v3268_v49  ;;  %v1621_v22 = vmul.f32 -1.25, %v3327_v7 }
 0x2f9   :  { %v1362_v42 = vmul.f32 %v2229_v62, %v3253_v57  ;;  %v2170_v54 = vpack.c.bf16 %v1696_v6, %v1695_v16  ;;  %v1535_v23 = vadd.f32 %v1533_v50, %v1529_v38  ;;  %v1622_v15 = vmul.f32 -1.25, %v3330_v17 }
 0x2fa   :  { %v1536_v60 = vadd.f32 %v1534_v8, %v1530_v25  ;;  %v1619_v51 = vmul.f32 %v1617_v21, %v1525_v56  ;;  %v1620_v4 = vmul.f32 %v1618_v55, %v1526_v53  ;;  %v1697_v26 = vmul.f32 0.8333333, %v3241_v34 }
 0x2fb   :  { %v2167_v9 = vpack.c.bf16 %v1362_v42, %v1360_v14  ;;  %v1623_v44 = vmul.f32 %v1621_v22, %v1535_v23  ;;  %v1698_v32 = vmul.f32 0.8333333, %v3265_v24  ;;  %v1701_v31 = vmul.f32 -0.8333333, %v3327_v7 }
 0x2fc   :  { %v1624_v45 = vmul.f32 %v1622_v15, %v1536_v60  ;;  %v1699_v58 = vmul.f32 %v1697_v26, %v1615_v61  ;;  %v1702_v3 = vmul.f32 -0.8333333, %v3330_v17  ;;  %v3355_v1 = vadd.f32 -0.2, %v3234_v46 }
 0x2fd   :  { %2168 = vmatpush1.bf16.msra.mxu0 %v2167_v9  ;;  %v1625_v59 = vadd.f32 %v1623_v44, %v1619_v51  ;;  %v1700_v13 = vmul.f32 %v1698_v32, %v1616_v36  ;;  %v3358_v56 = vadd.f32 -0.2, %v3253_v57  ;;  %vm1437_vm7 = vcmp.ge.f32.partialorder %v3234_v46, -0.2 }
 0x2fe   :  { %2169 = vmatprep.subr.bf16.mxu0 %v2285_v19  ;;  %v1626_v34 = vadd.f32 %v1624_v45, %v1620_v4  ;;  %vm1438_vm8 = vcmp.ge.f32.partialorder %v3253_v57, -0.2  ;;  %vm1439_vm9 = vcmp.lt.f32.partialorder %v3234_v46, 0.2  ;;  %vm1440_vm10 = vcmp.lt.f32.partialorder %v3253_v57, 0.2 }
 0x2ff   :  { %v1703_v24 = vmul.f32 %v1701_v31, %v1625_v59  ;;  %vm1441_vm11 = vmand %vm1437_vm7, %vm1439_vm9  ;;  %v1537_v53 = vmul.f32 2.5, %v3250_v10  ;;  %v1538_v37 = vmul.f32 2.5, %v3274_v2  ;;  %v1541_v40 = vmul.f32 -2.5, %v3355_v1 }
 0x300   :  { %v1704_v5 = vmul.f32 %v1702_v3, %v1626_v34  ;;  %vm1442_vm12 = vmand %vm1438_vm8, %vm1440_vm10  ;;  %v2005_v52 = vsel %vm1441_vm11, 1.0, %v3554_v35  ;;  %v1542_v30 = vmul.f32 -2.5, %v3358_v56  ;;  %v1627_v33 = vmul.f32 1.25, %v3247_v39 }
 0x301   :  { %2171 = vmatpush1.bf16.msra.mxu0 %v2170_v54  ;;  %v1705_v12 = vadd.f32 %v1703_v24, %v1699_v58  ;;  %v2006_v61 = vsel %vm1442_vm12, 1.0, %v3554_v35  ;;  %v1539_v36 = vmul.f32 %v2003_v41, %v1537_v53  ;;  %v1540_v27 = vmul.f32 %v2004_v11, %v1538_v37 }
 0x302   :  { %2172 = vmatprep.subr.bf16.mxu0 %v2285_v19  ;;  %v1706_v28 = vadd.f32 %v1704_v5, %v1700_v13  ;;  %v1543_v18 = vmul.f32 %v2005_v52, %v1541_v40  ;;  %v1544_v14 = vmul.f32 %v2006_v61, %v1542_v30  ;;  %v1628_v48 = vmul.f32 1.25, %v3271_v0 }
 0x303   :  { %v1629_v43 = vmul.f32 %v1627_v33, %v1535_v23  ;;  %v1631_v20 = vmul.f32 -1.25, %v3355_v1  ;;  %v1632_v38 = vmul.f32 -1.25, %v3358_v56  ;;  %v1707_v25 = vmul.f32 0.8333333, %v3244_v47 }
 0x304   :  { %v2173_v29 = vpack.c.bf16 %v1706_v28, %v1705_v12  ;;  %v1545_v16 = vadd.f32 %v1543_v18, %v1539_v36  ;;  %v1546_v6 = vadd.f32 %v1544_v14, %v1540_v27  ;;  %v1630_v50 = vmul.f32 %v1628_v48, %v1536_v60 }
 0x305   :  { %v1708_v41 = vmul.f32 0.8333333, %v3268_v49  ;;  %v1709_v11 = vmul.f32 %v1707_v25, %v1625_v59  ;;  %v1711_v62 = vmul.f32 -0.8333333, %v3355_v1  ;;  %v1712_v8 = vmul.f32 -0.8333333, %v3358_v56 }
 0x306   :  { %2174 = vmatpush1.bf16.msra.mxu0 %v2173_v29  ;;  %v1633_v21 = vmul.f32 %v1631_v20, %v1545_v16  ;;  %v1634_v55 = vmul.f32 %v1632_v38, %v1546_v6  ;;  %v3381_v22 = vadd.f32 -0.6, %v3234_v46  ;;  %v3384_v42 = vadd.f32 -0.6, %v3253_v57 }
 0x307   :  { %2175 = vmatprep.subr.bf16.mxu0 %v2285_v19  ;;  %v1710_v47 = vmul.f32 %v1708_v41, %v1626_v34  ;;  %vm1447_vm13 = vcmp.ge.f32.partialorder %v3234_v46, 0.2  ;;  %vm1448_vm14 = vcmp.ge.f32.partialorder %v3253_v57, 0.2  ;;  %vm1449_vm15 = vcmp.lt.f32.partialorder %v3234_v46, 0.6 }
 0x308   :  { %v1635_v49 = vadd.f32 %v1633_v21, %v1629_v43  ;;  %v1636_v54 = vadd.f32 %v1634_v55, %v1630_v50  ;;  %vm1450_vm1 = vcmp.lt.f32.partialorder %v3253_v57, 0.6  ;;  %vm1451_vm2 = vmand %vm1447_vm13, %vm1449_vm15  ;;  %v1547_v23 = vmul.f32 2.5, %v3327_v7 }
 0x309   :  { %vm1452_vm3 = vmand %vm1448_vm14, %vm1450_vm1  ;;  %v2007_v15 = vsel %vm1451_vm2, 1.0, %v3554_v35  ;;  %v1548_v60 = vmul.f32 2.5, %v3330_v17  ;;  %v1551_v51 = vmul.f32 -2.5, %v3381_v22  ;;  %v1552_v4 = vmul.f32 -2.5, %v3384_v42 }
 0x30a   :  { %v1713_v26 = vmul.f32 %v1711_v62, %v1635_v49  ;;  %v1714_v9 = vmul.f32 %v1712_v8, %v1636_v54  ;;  %v2008_v44 = vsel %vm1452_vm3, 1.0, %v3554_v35  ;;  %v1549_v32 = vmul.f32 %v2005_v52, %v1547_v23 }
 0x30b   :  { %v1550_v31 = vmul.f32 %v2006_v61, %v1548_v60  ;;  %v1553_v45 = vmul.f32 %v2007_v15, %v1551_v51  ;;  %v1554_v58 = vmul.f32 %v2008_v44, %v1552_v4  ;;  %v1637_v3 = vmul.f32 1.25, %v3250_v10 }
 0x30c   :  { %v1715_v59 = vadd.f32 %v1713_v26, %v1709_v11  ;;  %v1716_v13 = vadd.f32 %v1714_v9, %v1710_v47  ;;  %v1638_v34 = vmul.f32 1.25, %v3274_v2  ;;  %v1641_v24 = vmul.f32 -1.25, %v3381_v22 }
 0x30d   :  { %v1555_v53 = vadd.f32 %v1553_v45, %v1549_v32  ;;  %v1556_v37 = vadd.f32 %v1554_v58, %v1550_v31  ;;  %v1639_v40 = vmul.f32 %v1637_v3, %v1545_v16  ;;  %v1642_v5 = vmul.f32 -1.25, %v3384_v42 }
 0x30e   :  { %v2176_v30 = vpack.c.bf16 %v1716_v13, %v1715_v59  ;;  %v1640_v33 = vmul.f32 %v1638_v34, %v1546_v6  ;;  %v1717_v52 = vmul.f32 0.8333333, %v3247_v39  ;;  %v1718_v12 = vmul.f32 0.8333333, %v3271_v0 }
 0x30f   :  { %v1643_v61 = vmul.f32 %v1641_v24, %v1555_v53  ;;  %v1644_v36 = vmul.f32 %v1642_v5, %v1556_v37  ;;  %v1721_v27 = vmul.f32 -0.8333333, %v3381_v22  ;;  %v1722_v28 = vmul.f32 -0.8333333, %v3384_v42 }
 0x310   :  { %2177 = vmatpush1.bf16.msra.mxu0 %v2176_v30  ;;  %v1719_v18 = vmul.f32 %v1717_v52, %v1635_v49  ;;  %v1720_v14 = vmul.f32 %v1718_v12, %v1636_v54  ;;  %v3406_v48 = vadd.f32 -1.0, %v3234_v46  ;;  %v3409_v43 = vadd.f32 -1.0, %v3253_v57 }
 0x311   :  { %2178 = vmatprep.subr.bf16.mxu0 %v2285_v19  ;;  %v1645_v39 = vadd.f32 %v1643_v61, %v1639_v40  ;;  %v1646_v20 = vadd.f32 %v1644_v36, %v1640_v33  ;;  %vm1457_vm4 = vcmp.ge.f32.partialorder %v3234_v46, 0.6  ;;  %vm1458_vm0 = vcmp.ge.f32.partialorder %v3253_v57, 0.6 }
 0x312   :  { %vm1459_vm5 = vcmp.lt.f32.partialorder %v3234_v46, 1.0  ;;  %vm1460_vm6 = vcmp.lt.f32.partialorder %v3253_v57, 1.0  ;;  %v1557_v0 = vmul.f32 2.5, %v3355_v1  ;;  %v1558_v38 = vmul.f32 2.5, %v3358_v56 }
 0x313   :  { %v1723_v25 = vmul.f32 %v1721_v27, %v1645_v39  ;;  %v1724_v29 = vmul.f32 %v1722_v28, %v1646_v20  ;;  %vm1461_vm7 = vmand %vm1457_vm4, %vm1459_vm5  ;;  %v1561_v16 = vmul.f32 -2.5, %v3406_v48  ;;  %v1562_v6 = vmul.f32 -2.5, %v3409_v43 }
 0x314   :  { %vm1462_vm8 = vmand %vm1458_vm0, %vm1460_vm6  ;;  %v2009_v50 = vsel %vm1461_vm7, 1.0, %v3554_v35  ;;  %v1559_v41 = vmul.f32 %v2007_v15, %v1557_v0  ;;  %v1560_v11 = vmul.f32 %v2008_v44, %v1558_v38  ;;  %v1647_v62 = vmul.f32 1.25, %v3327_v7 }
 0x315   :  { %v1725_v8 = vadd.f32 %v1723_v25, %v1719_v18  ;;  %v1726_v21 = vadd.f32 %v1724_v29, %v1720_v14  ;;  %v2010_v55 = vsel %vm1462_vm8, 1.0, %v3554_v35  ;;  %v1563_v47 = vmul.f32 %v2009_v50, %v1561_v16 }
 0x316   :  { %v1564_v49 = vmul.f32 %v2010_v55, %v1562_v6  ;;  %v1648_v54 = vmul.f32 1.25, %v3330_v17  ;;  %v1649_v23 = vmul.f32 %v1647_v62, %v1555_v53  ;;  %v1651_v60 = vmul.f32 -1.25, %v3406_v48 }
 0x317   :  { %v2179_v51 = vpack.c.bf16 %v1726_v21, %v1725_v8  ;;  %v1565_v4 = vadd.f32 %v1563_v47, %v1559_v41  ;;  %v1652_v26 = vmul.f32 -1.25, %v3409_v43  ;;  %v1727_v15 = vmul.f32 0.8333333, %v3250_v10 }
 0x318   :  { %v1566_v9 = vadd.f32 %v1564_v49, %v1560_v11  ;;  %v1650_v44 = vmul.f32 %v1648_v54, %v1556_v37  ;;  %v1728_v32 = vmul.f32 0.8333333, %v3274_v2  ;;  %v1731_v31 = vmul.f32 -0.8333333, %v3406_v48 }
 0x319   :  { %2180 = vmatpush1.bf16.msra.mxu0 %v2179_v51  ;;  %v1653_v45 = vmul.f32 %v1651_v60, %v1565_v4  ;;  %v1729_v58 = vmul.f32 %v1727_v15, %v1645_v39  ;;  %v1732_v3 = vmul.f32 -0.8333333, %v3409_v43  ;;  %v3431_v59 = vadd.f32 -1.4, %v3234_v46 }
 0x31a   :  { %2181 = vmatprep.subr.bf16.mxu0 %v2285_v19  ;;  %v1654_v13 = vmul.f32 %v1652_v26, %v1566_v9  ;;  %v1730_v34 = vmul.f32 %v1728_v32, %v1646_v20  ;;  %v3435_v10 = vadd.f32 -1.4, %v3253_v57  ;;  %vm1467_vm9 = vcmp.ge.f32.partialorder %v3234_v46, 1.0 }
 0x31b   :  { %v1655_v2 = vadd.f32 %v1653_v45, %v1649_v23  ;;  %vm1468_vm10 = vcmp.ge.f32.partialorder %v3253_v57, 1.0  ;;  %vm1469_vm11 = vcmp.lt.f32.partialorder %v3234_v46, 1.4  ;;  %vm1470_vm12 = vcmp.lt.f32.partialorder %v3253_v57, 1.4 }
 0x31c   :  { %v1656_v24 = vadd.f32 %v1654_v13, %v1650_v44  ;;  %vm1471_vm13 = vmand %vm1467_vm9, %vm1469_vm11  ;;  %v1567_v53 = vmul.f32 2.5, %v3381_v22  ;;  %v1568_v37 = vmul.f32 2.5, %v3384_v42  ;;  %v1571_v40 = vmul.f32 -2.5, %v3431_v59 }
 0x31d   :  { %v1733_v5 = vmul.f32 %v1731_v31, %v1655_v2  ;;  %vm1472_vm14 = vmand %vm1468_vm10, %vm1470_vm12  ;;  %v2011_v30 = vsel %vm1471_vm13, 1.0, %v3554_v35  ;;  %v1572_v33 = vmul.f32 -2.5, %v3435_v10  ;;  %v1657_v52 = vmul.f32 1.25, %v3355_v1 }
 0x31e   :  { %v1734_v12 = vmul.f32 %v1732_v3, %v1656_v24  ;;  %v2012_v61 = vsel %vm1472_vm14, 1.0, %v3554_v35  ;;  %v1569_v36 = vmul.f32 %v2009_v50, %v1567_v53  ;;  %v1570_v27 = vmul.f32 %v2010_v55, %v1568_v37 }
 0x31f   :  { %v1735_v28 = vadd.f32 %v1733_v5, %v1729_v58  ;;  %v1573_v18 = vmul.f32 %v2011_v30, %v1571_v40  ;;  %v1574_v14 = vmul.f32 %v2012_v61, %v1572_v33  ;;  %v1658_v39 = vmul.f32 1.25, %v3358_v56 }
 0x320   :  { %v1736_v20 = vadd.f32 %v1734_v12, %v1730_v34  ;;  %v1659_v0 = vmul.f32 %v1657_v52, %v1565_v4  ;;  %v1661_v38 = vmul.f32 -1.25, %v3431_v59  ;;  %v1662_v25 = vmul.f32 -1.25, %v3435_v10 }
 0x321   :  { %v1575_v29 = vadd.f32 %v1573_v18, %v1569_v36  ;;  %v1576_v16 = vadd.f32 %v1574_v14, %v1570_v27  ;;  %v1660_v6 = vmul.f32 %v1658_v39, %v1566_v9  ;;  %v1737_v41 = vmul.f32 0.8333333, %v3327_v7 }
 0x322   :  { %v2182_v11 = vpack.c.bf16 %v1736_v20, %v1735_v28  ;;  %v1738_v50 = vmul.f32 0.8333333, %v3330_v17  ;;  %v1741_v62 = vmul.f32 -0.8333333, %v3431_v59  ;;  %v1742_v8 = vmul.f32 -0.8333333, %v3435_v10 }
 0x323   :  { %v1663_v21 = vmul.f32 %v1661_v38, %v1575_v29  ;;  %v1664_v55 = vmul.f32 %v1662_v25, %v1576_v16  ;;  %v1739_v47 = vmul.f32 %v1737_v41, %v1655_v2  ;;  %v1991_v49 = vadd.f32 -1.8, %v3234_v46 }
 0x324   :  { %2183 = vmatpush1.bf16.msra.mxu0 %v2182_v11  ;;  %v1740_v54 = vmul.f32 %v1738_v50, %v1656_v24  ;;  %v1992_v23 = vadd.f32 -1.8, %v3253_v57  ;;  %vm1477_vm15 = vcmp.ge.f32.partialorder %v3234_v46, 1.4  ;;  %vm1478_vm1 = vcmp.ge.f32.partialorder %v3253_v57, 1.4 }
 0x325   :  { %2184 = vmatprep.subr.bf16.mxu0 %v2285_v19  ;;  %v1665_v7 = vadd.f32 %v1663_v21, %v1659_v0  ;;  %v1666_v17 = vadd.f32 %v1664_v55, %v1660_v6  ;;  %vm1479_vm2 = vcmp.lt.f32.partialorder %v3234_v46, 1.8  ;;  %vm1480_vm3 = vcmp.lt.f32.partialorder %v3253_v57, 1.8 }
 0x326   :  { %vm1481_vm4 = vmand %vm1477_vm15, %vm1479_vm2  ;;  %v1577_v60 = vmul.f32 2.5, %v3406_v48  ;;  %v1578_v51 = vmul.f32 2.5, %v3409_v43  ;;  %v1581_v4 = vmul.f32 -2.5, %v1991_v49  ;;  %v1582_v26 = vmul.f32 -2.5, %v1992_v23 }
 0x327   :  { %v1743_v15 = vmul.f32 %v1741_v62, %v1665_v7  ;;  %v1744_v9 = vmul.f32 %v1742_v8, %v1666_v17  ;;  %vm1482_vm0 = vmand %vm1478_vm1, %vm1480_vm3  ;;  %v2013_v44 = vsel %vm1481_vm4, 1.0, %v3554_v35  ;;  %v1667_v32 = vmul.f32 1.25, %v3381_v22 }
 0x328   :  { %v2014_v31 = vsel %vm1482_vm0, 1.0, %v3554_v35  ;;  %v1579_v45 = vmul.f32 %v2011_v30, %v1577_v60  ;;  %v1580_v58 = vmul.f32 %v2012_v61, %v1578_v51  ;;  %v1583_v3 = vmul.f32 %v2013_v44, %v1581_v4 }
 0x329   :  { %v1745_v13 = vadd.f32 %v1743_v15, %v1739_v47  ;;  %v1746_v34 = vadd.f32 %v1744_v9, %v1740_v54  ;;  %v1584_v2 = vmul.f32 %v2014_v31, %v1582_v26  ;;  %v1668_v24 = vmul.f32 1.25, %v3384_v42 }
 0x32a   :  { %v1585_v53 = vadd.f32 %v1583_v3, %v1579_v45  ;;  %v1669_v37 = vmul.f32 %v1667_v32, %v1575_v29  ;;  %v1671_v40 = vmul.f32 -1.25, %v1991_v49  ;;  %v1672_v5 = vmul.f32 -1.25, %v1992_v23 }
 0x32b   :  { %v2185_v33 = vpack.c.bf16 %v1746_v34, %v1745_v13  ;;  %v1586_v52 = vadd.f32 %v1584_v2, %v1580_v58  ;;  %v1670_v12 = vmul.f32 %v1668_v24, %v1576_v16  ;;  %v1747_v36 = vmul.f32 0.8333333, %v3355_v1 }
 0x32c   :  { %v1673_v27 = vmul.f32 %v1671_v40, %v1585_v53  ;;  %v1748_v28 = vmul.f32 0.8333333, %v3358_v56  ;;  %v1751_v30 = vmul.f32 -0.8333333, %v1991_v49  ;;  %v1752_v61 = vmul.f32 -0.8333333, %v1992_v23 }
 0x32d   :  { %2186 = vmatpush1.bf16.msra.mxu0 %v2185_v33  ;;  %v1674_v18 = vmul.f32 %v1672_v5, %v1586_v52  ;;  %v1749_v14 = vmul.f32 %v1747_v36, %v1665_v7  ;;  %v1993_v39 = vadd.f32 -2.2, %v3234_v46  ;;  %v1994_v20 = vadd.f32 -2.2, %v3253_v57 }
 0x32e   :  { %2187 = vmatprep.subr.bf16.mxu0 %v2285_v19  ;;  %v1675_v0 = vadd.f32 %v1673_v27, %v1669_v37  ;;  %v1750_v38 = vmul.f32 %v1748_v28, %v1666_v17  ;;  %vm1487_vm5 = vcmp.ge.f32.partialorder %v3234_v46, 1.8  ;;  %vm1488_vm6 = vcmp.ge.f32.partialorder %v3253_v57, 1.8 }
 0x32f   :  { %v1676_v1 = vadd.f32 %v1674_v18, %v1670_v12  ;;  %vm1489_vm7 = vcmp.lt.f32.partialorder %v3234_v46, 2.2  ;;  %vm1490_vm8 = vcmp.lt.f32.partialorder %v3253_v57, 2.2  ;;  %v1587_v56 = vmul.f32 2.5, %v3431_v59 }
 0x330   :  { %v1753_v25 = vmul.f32 %v1751_v30, %v1675_v0  ;;  %vm1491_vm9 = vmand %vm1487_vm5, %vm1489_vm7  ;;  %v1588_v29 = vmul.f32 2.5, %v3435_v10  ;;  %v1591_v16 = vmul.f32 -2.5, %v1993_v39  ;;  %v1592_v6 = vmul.f32 -2.5, %v1994_v20 }
 0x331   :  { %v1754_v41 = vmul.f32 %v1752_v61, %v1676_v1  ;;  %vm1492_vm10 = vmand %vm1488_vm6, %vm1490_vm8  ;;  %v2015_v11 = vsel %vm1491_vm9, 1.0, %v3554_v35  ;;  %v1589_v50 = vmul.f32 %v2013_v44, %v1587_v56  ;;  %v1677_v46 = vmul.f32 1.25, %v3406_v48 }
 0x332   :  { %v2016_v62 = vsel %vm1492_vm10, 1.0, %v3554_v35  ;;  %v1590_v8 = vmul.f32 %v2014_v31, %v1588_v29  ;;  %v1593_v21 = vmul.f32 %v2015_v11, %v1591_v16  ;;  %v1755_v57 = vadd.f32 %v1753_v25, %v1749_v14 }
 0x333   :  { %v1756_v55 = vadd.f32 %v1754_v41, %v1750_v38  ;;  %v1594_v59 = vmul.f32 %v2016_v62, %v1592_v6  ;;  %v1678_v47 = vmul.f32 1.25, %v3409_v43  ;;  %v1679_v10 = vmul.f32 %v1677_v46, %v1585_v53 }
 0x334   :  { %v1595_v49 = vadd.f32 %v1593_v21, %v1589_v50  ;;  %v1681_v54 = vmul.f32 -1.25, %v1993_v39  ;;  %v1682_v60 = vmul.f32 -1.25, %v1994_v20  ;;  %v1757_v35 = vmul.f32 0.8333333, %v3381_v22 }
 0x335   :  { %v2188_v23 = vpack.c.bf16 %v1756_v55, %v1755_v57  ;;  %v1596_v7 = vadd.f32 %v1594_v59, %v1590_v8  ;;  %v1680_v17 = vmul.f32 %v1678_v47, %v1586_v52  ;;  %v1758_v26 = vmul.f32 0.8333333, %v3384_v42 }
 0x336   :  { %v1683_v51 = vmul.f32 %v1681_v54, %v1595_v49  ;;  %v1761_v15 = vmul.f32 -0.8333333, %v1993_v39  ;;  %v1759_v43 = vmul.f32 %v1757_v35, %v1675_v0  ;;  %v1762_v32 = vmul.f32 -0.8333333, %v1994_v20 }
 0x337   :  { %2189 = vmatpush1.bf16.msra.mxu0 %v2188_v23  ;;  %v1684_v4 = vmul.f32 %v1682_v60, %v1596_v7  ;;  %v1760_v44 = vmul.f32 %v1758_v26, %v1676_v1 }
 0x338   :  { %2190 = vmatprep.subr.bf16.mxu0 %v2285_v19  ;;  %v1685_v48 = vadd.f32 %v1683_v51, %v1679_v10 }
 0x339   :  { %v1686_v9 = vadd.f32 %v1684_v4, %v1680_v17 }
 0x33a   :  { %v1763_v31 = vmul.f32 %v1761_v15, %v1685_v48 }
 0x33b   :  { %v1764_v45 = vmul.f32 %v1762_v32, %v1686_v9 }
 0x33c   :  { %v1765_v58 = vadd.f32 %v1763_v31, %v1759_v43 }
 0x33d   :  { %v1766_v3 = vadd.f32 %v1764_v45, %v1760_v44 }
 0x33f   :  { %v2191_v13 = vpack.c.bf16 %v1766_v3, %v1765_v58 }
 0x341   :  { %2192 = vmatpush1.bf16.msra.mxu0 %v2191_v13 }
 0x344   :  { %1838 = vmatmul.mubr.f32.vlgmr.msra.gmra.mrb[2].mxu0 %v3230_v63 }
 0x417   :  { %v1839_v34 = vpop.f32.mrb[2].mxu0 }
 0x418   :  { %1843 = vst [vmem:[%s3494_s4] sm:$0xf] %v1839_v34  ;;  %v1841_v19 = vpop.f32.mrb[3].mxu0 }
 0x419   :  { %1848 = vsyncpa [#allocation3], 1 }
 0x41a   :  { %1849 = vsyncpa [#allocation5], 1 }

</bundles_post_ra>
